<compile_context>
chip_gen: v5e
topology: v5e:2x2
jax: 0.10.0
libtpu: 0.0.40
codegen_flags: <defaults>
</compile_context>

<pallas_src>
import functools

import jax
import jax.numpy as jnp
from jax.experimental import pallas as pl
from jax.experimental.pallas import tpu as pltpu


_VMEM_LIMIT_BYTES = 40 * 1024 * 1024  # > default scoped (16/32 MiB), < v7x 64 MiB


def _compiler_params():
    return pltpu.CompilerParams(dimension_semantics=("parallel",),
                                vmem_limit_bytes=_VMEM_LIMIT_BYTES)


# ---------------------------------------------------------------------------
# tiling helpers
# ---------------------------------------------------------------------------
def _pick_row_tile(n, target):
    """Largest multiple-of-8 divisor of n <= target (prefer >=2 tiles for
    megacore); fall back to the full dim (always legal as a block shape)."""
    cap = max(8, min(int(target), n))
    if n >= 16:
        cap = max(8, min(cap, n // 2))        # keep >=2 grid steps (v7x 2 TCs)
    for t in range(cap, 7, -1):
        if n % t == 0 and t % 8 == 0:
            return t
    return n                                   # single full-dim tile


def _pick_group_tile(n, target):
    """Divisor of n <= target for the leading (non-sublane) group axis."""
    cap = max(1, min(int(target), n))
    if n >= 2:
        cap = min(cap, max(1, n // 2))         # keep >=2 grid steps
    for t in range(cap, 0, -1):
        if n % t == 0:
            return t
    return 1


# ---------------------------------------------------------------------------
# LIF scan (forward only)
# ---------------------------------------------------------------------------
def _lif_scan(x, tau, threshold):
    """Multi-step LIF over the leading (time) axis. x: (T, m, C) f32 -> 0/1."""
    inv_tau = 1.0 / float(tau)                 # no per-step divide
    T = x.shape[0]
    mem = jnp.zeros(x.shape[1:], jnp.float32)
    outs = []
    for t in range(T):                         # T small & static -> unrolled
        mem = mem + (x[t] - mem) * inv_tau     # leaky integrate
        fire = mem > threshold
        outs.append(jnp.where(fire, 1.0, 0.0))
        mem = jnp.where(fire, 0.0, mem)        # hard reset
    return jnp.stack(outs, axis=0)


# ---------------------------------------------------------------------------
# Pass A: (optional pre BN+LIF) -> Linear (bf16 MXU, f32 accum) -> BN stats
# ---------------------------------------------------------------------------
def _linear_stats_kernel(*refs, pre, tau, threshold, mxu_dtype):
    if pre == "bn_lif":
        x_ref, ps_ref, pf_ref, w_ref, b_ref, y_ref, stats_ref = refs
    else:
        x_ref, w_ref, b_ref, y_ref, stats_ref = refs

    x = x_ref[...]                                            # (T, tm, Cin)
    T, tm, cin = x.shape
    if pre == "bn_lif":                                       # fused fc1 BN + LIF
        x = x.astype(jnp.float32) * ps_ref[...] + pf_ref[...]
        x = _lif_scan(x, tau, threshold)
    elif pre == "lif":                                        # fused attn_lif
        x = _lif_scan(x.astype(jnp.float32), tau, threshold)

    xin = x.reshape(T * tm, cin).astype(mxu_dtype)
    y = jnp.dot(xin, w_ref[...], preferred_element_type=jnp.float32)
    y = y + b_ref[...]                                        # (T*tm, Cout) f32
    y_ref[...] = y.reshape(T, tm, -1).astype(y_ref.dtype)     # bf16 store
    s = jnp.sum(y, axis=0, keepdims=True)                     # f32 stat partials
    ss = jnp.sum(y * y, axis=0, keepdims=True)
    stats_ref[...] = jnp.concatenate([s, ss], axis=0).reshape(1, 2, -1)


def linear_stats(x, w, b, *, pre=None, pre_scale=None, pre_shift=None,
                 tau=2.0, threshold=0.5, row_tile=256,
                 y_dtype=jnp.bfloat16, mxu_dtype=jnp.bfloat16):
    """Pass A: Linear + per-tile BN statistics. Returns (y, stats)."""
    T, M, Cin = x.shape
    Cout = w.shape[1]
    tm = _pick_row_tile(M, row_tile)
    n_tiles = M // tm

    wc = w.astype(mxu_dtype)
    b2 = b.reshape(1, Cout).astype(jnp.float32)

    inputs = [x]
    in_specs = [pl.BlockSpec((T, tm, Cin), lambda i: (0, i, 0))]
    if pre == "bn_lif":
        inputs += [pre_scale, pre_shift]
        in_specs += [pl.BlockSpec((1, 1, Cin), lambda i: (0, 0, 0)),
                     pl.BlockSpec((1, 1, Cin), lambda i: (0, 0, 0))]
    inputs += [wc, b2]
    # NOTE: weight/bias blocks are grid-invariant; single-buffering them
    # (pl.Buffered(1)) would save VMEM but is left off for lowering safety.
    in_specs += [pl.BlockSpec((Cin, Cout), lambda i: (0, 0)),
                 pl.BlockSpec((1, Cout), lambda i: (0, 0))]

    flops = 2 * T * M * Cin * Cout
    bytes_a = (T * M * Cin * x.dtype.itemsize
               + Cin * Cout * jnp.dtype(mxu_dtype).itemsize + Cout * 4
               + T * M * Cout * jnp.dtype(y_dtype).itemsize
               + n_tiles * 2 * Cout * 4)

    y, stats = pl.pallas_call(
        functools.partial(_linear_stats_kernel, pre=pre, tau=tau,
                          threshold=threshold, mxu_dtype=mxu_dtype),
        out_shape=(jax.ShapeDtypeStruct((T, M, Cout), y_dtype),
                   jax.ShapeDtypeStruct((n_tiles, 2, Cout), jnp.float32)),
        grid=(n_tiles,),
        in_specs=in_specs,
        out_specs=(pl.BlockSpec((T, tm, Cout), lambda i: (0, i, 0)),
                   pl.BlockSpec((1, 2, Cout), lambda i: (i, 0, 0))),
        compiler_params=_compiler_params(),
        cost_estimate=pl.CostEstimate(flops=int(flops), transcendentals=0,
                                      bytes_accessed=int(bytes_a)),
    )(*inputs)
    return y, stats


def _bn_scale_shift(stats, gamma, beta, count, eps):
    """Reduce per-tile stats -> BN affine (training-mode, biased variance)."""
    tot = jnp.sum(stats, axis=0)                              # (2, C)
    mean = tot[0] / count
    var = tot[1] / count - mean * mean
    scale = gamma * jax.lax.rsqrt(var + eps)
    shift = beta - mean * scale
    C = scale.shape[0]
    return (scale.reshape(1, 1, C).astype(jnp.float32),
            shift.reshape(1, 1, C).astype(jnp.float32))


# ---------------------------------------------------------------------------
# Pass B: BN affine -> multi-step LIF -> (+ fused residual)
# ---------------------------------------------------------------------------
def _bn_lif_kernel(*refs, tau, threshold, with_residual):
    if with_residual:
        y_ref, scale_ref, shift_ref, res_ref, o_ref = refs
    else:
        y_ref, scale_ref, shift_ref, o_ref = refs
    yh = y_ref[...].astype(jnp.float32) * scale_ref[...] + shift_ref[...]
    spikes = _lif_scan(yh, tau, threshold)
    if with_residual:
        spikes = spikes + res_ref[...].astype(jnp.float32)    # fused residual
    o_ref[...] = spikes.astype(o_ref.dtype)


def bn_lif_pass(y, scale3, shift3, *, tau=2.0, threshold=0.5, residual=None,
                out_dtype=jnp.bfloat16, row_tile=256):
    T, M, Cout = y.shape
    tm = _pick_row_tile(M, row_tile)
    n_tiles = M // tm
    with_res = residual is not None

    inputs = [y, scale3, shift3]
    in_specs = [pl.BlockSpec((T, tm, Cout), lambda i: (0, i, 0)),
                pl.BlockSpec((1, 1, Cout), lambda i: (0, 0, 0)),
                pl.BlockSpec((1, 1, Cout), lambda i: (0, 0, 0))]
    if with_res:
        inputs.append(residual)
        in_specs.append(pl.BlockSpec((T, tm, Cout), lambda i: (0, i, 0)))

    bytes_a = T * M * Cout * (y.dtype.itemsize + jnp.dtype(out_dtype).itemsize
                              + (residual.dtype.itemsize if with_res else 0))
    bytes_a += 2 * Cout * 4

    return pl.pallas_call(
        functools.partial(_bn_lif_kernel, tau=tau, threshold=threshold,
                          with_residual=with_res),
        out_shape=jax.ShapeDtypeStruct((T, M, Cout), out_dtype),
        grid=(n_tiles,),
        in_specs=in_specs,
        out_specs=pl.BlockSpec((T, tm, Cout), lambda i: (0, i, 0)),
        compiler_params=_compiler_params(),
        cost_estimate=pl.CostEstimate(flops=0, transcendentals=0,
                                      bytes_accessed=int(bytes_a)),
    )(*inputs)


# ---------------------------------------------------------------------------
# Spiking attention:  r = q @ (k^T v) * scale^2  (exact: no softmax between
# the matmuls, spikes are 0/1). Heads are sliced on the lane axis in-VMEM and
# each head's result is stored directly into its output lane slice.
# ---------------------------------------------------------------------------
def _attn_kernel(qkv_ref, o_ref, *, num_heads, scale, embed_dim):
    C = embed_dim
    coh = C // num_heads
    s2 = float(scale) * float(scale)                          # fold both scales
    qkv = qkv_ref[...]                                        # (gb, N, 3C) bf16
    _, N, _ = qkv.shape
    q = qkv[:, :, 0:C]
    k = qkv[:, :, C:2 * C]
    v = qkv[:, :, 2 * C:3 * C]
    for h in range(num_heads):                                # static head loop
        lo = h * coh
        qh = q[:, :, lo:lo + coh]
        kh = k[:, :, lo:lo + coh]
        vh = v[:, :, lo:lo + coh]
        # k^T v first: (coh, coh) integer spike co-occurrence counts.
        kv = jnp.einsum('gnd,gne->gde', kh, vh,
                        preferred_element_type=jnp.float32)
        if N <= 256:
            kv_in = kv.astype(qh.dtype)                       # counts <= N exact
            q_in = qh
        else:
            kv_in, q_in = kv, qh.astype(jnp.float32)
        rh = jnp.einsum('gnd,gde->gne', q_in, kv_in,
                        preferred_element_type=jnp.float32) * s2
        o_ref[:, :, lo:lo + coh] = rh.astype(o_ref.dtype)     # direct lane-slice store


def spiking_attention(qkv, *, num_heads, embed_dim, scale, group_tile=8,
                      out_dtype=jnp.bfloat16):
    G, N, C3 = qkv.shape                                      # G = T*B, C3 = 3C
    C = embed_dim
    coh = C // num_heads
    gb = _pick_group_tile(G, group_tile)
    flops = 4 * G * N * C * coh
    bytes_a = G * N * C3 * qkv.dtype.itemsize + G * N * C * jnp.dtype(out_dtype).itemsize
    return pl.pallas_call(
        functools.partial(_attn_kernel, num_heads=num_heads, scale=scale,
                          embed_dim=C),
        out_shape=jax.ShapeDtypeStruct((G, N, C), out_dtype),
        grid=(G // gb,),
        in_specs=[pl.BlockSpec((gb, N, C3), lambda i: (i, 0, 0))],
        out_specs=pl.BlockSpec((gb, N, C), lambda i: (i, 0, 0)),
        compiler_params=_compiler_params(),
        cost_estimate=pl.CostEstimate(flops=int(flops), transcendentals=0,
                                      bytes_accessed=int(bytes_a)),
    )(qkv)


# ---------------------------------------------------------------------------
# Parameter init (deterministic, PyTorch-default-like)
# ---------------------------------------------------------------------------
def _init_linear(key, cin, cout):
    kw, kb = jax.random.split(key)
    bound = 1.0 / (cin ** 0.5)
    w = jax.random.uniform(kw, (cin, cout), jnp.float32, -bound, bound)
    b = jax.random.uniform(kb, (cout,), jnp.float32, -bound, bound)
    return w, b


def init_params(key, embed_dim, mlp_hidden):
    names = [("q", embed_dim, embed_dim), ("k", embed_dim, embed_dim),
             ("v", embed_dim, embed_dim), ("proj", embed_dim, embed_dim),
             ("fc1", embed_dim, mlp_hidden), ("fc2", mlp_hidden, embed_dim)]
    keys = jax.random.split(key, len(names))
    params = {}
    for (name, cin, cout), k_ in zip(names, keys):
        w, b = _init_linear(k_, cin, cout)
        params[name] = dict(w=w, b=b,
                            gamma=jnp.ones((cout,), jnp.float32),   # BN defaults
                            beta=jnp.zeros((cout,), jnp.float32))
    return params


# ---------------------------------------------------------------------------
# Full Spikf_Block_s forward (if_TIM=False)
# ---------------------------------------------------------------------------
def spikf_block_forward(x, params, *, num_heads, scale, tau=2.0, threshold=0.5,
                        eps=1e-5, row_tile=256, group_tile=8):
    T, B, N, C = x.shape
    M = B * N
    x3 = x.reshape(T, M, C)                                   # free reshape
    cnt = jnp.float32(T * M)

    # --- SSA_s: fused q|k|v projection (x read from HBM once) ---
    w_qkv = jnp.concatenate([params["q"]["w"], params["k"]["w"], params["v"]["w"]], axis=1)
    b_qkv = jnp.concatenate([params["q"]["b"], params["k"]["b"], params["v"]["b"]], axis=0)
    g_qkv = jnp.concatenate([params["q"]["gamma"], params["k"]["gamma"], params["v"]["gamma"]], axis=0)
    be_qkv = jnp.concatenate([params["q"]["beta"], params["k"]["beta"], params["v"]["beta"]], axis=0)

    y_qkv, st_qkv = linear_stats(x3, w_qkv, b_qkv, tau=tau, threshold=threshold,
                                 row_tile=row_tile)
    sc_qkv, sh_qkv = _bn_scale_shift(st_qkv, g_qkv, be_qkv, cnt, eps)
    qkv_spk = bn_lif_pass(y_qkv, sc_qkv, sh_qkv, tau=tau, threshold=threshold,
                          row_tile=row_tile, out_dtype=jnp.bfloat16)   # (T, M, 3C)

    # --- spiking attention: heads sliced on the lane axis, q @ (k^T v) ---
    r = spiking_attention(qkv_spk.reshape(T * B, N, 3 * C), num_heads=num_heads,
                          embed_dim=C, scale=scale, group_tile=group_tile)
    r = r.reshape(T, M, C)                                    # bf16, free reshape

    # --- proj: attn_lif fused as pre-LIF in pass A; residual x fused in pass B ---
    y_p, st_p = linear_stats(r, params["proj"]["w"], params["proj"]["b"], pre="lif",
                             tau=tau, threshold=threshold, row_tile=row_tile)
    sc_p, sh_p = _bn_scale_shift(st_p, params["proj"]["gamma"], params["proj"]["beta"], cnt, eps)
    x1 = bn_lif_pass(y_p, sc_p, sh_p, tau=tau, threshold=threshold, residual=x3,
                     row_tile=row_tile, out_dtype=jnp.float32)         # = x + SSA_s(x)

    # --- MLP_s: fc1 pass A only; fc1 BN+LIF fused into fc2's pass A ---
    y_f1, st_f1 = linear_stats(x1, params["fc1"]["w"], params["fc1"]["b"],
                               tau=tau, threshold=threshold, row_tile=row_tile)
    sc_f1, sh_f1 = _bn_scale_shift(st_f1, params["fc1"]["gamma"], params["fc1"]["beta"], cnt, eps)
    y_f2, st_f2 = linear_stats(y_f1, params["fc2"]["w"], params["fc2"]["b"], pre="bn_lif",
                               pre_scale=sc_f1, pre_shift=sh_f1,
                               tau=tau, threshold=threshold, row_tile=row_tile)
    sc_f2, sh_f2 = _bn_scale_shift(st_f2, params["fc2"]["gamma"], params["fc2"]["beta"], cnt, eps)
    out = bn_lif_pass(y_f2, sc_f2, sh_f2, tau=tau, threshold=threshold, residual=x1,
                      row_tile=row_tile, out_dtype=jnp.float32)        # = x1 + MLP_s(x1)
    return out.reshape(T, B, N, C)


# ---------------------------------------------------------------------------
if __name__ == "__main__":
    # Small shapes consistent with the module: T=step, (B, N, C) token grid.
    T, B, N, C = 4, 2, 8, 32
    num_heads = 4
    mlp_hidden = int(C * 4.0)
    # Note: Spikf_Block_s's default scale=0.0 zeroes the attention branch;
    # we use the SSA_s default 0.125 for a non-degenerate demo.
    scale = 0.125

    key = jax.random.PRNGKey(0)
    kx, kp = jax.random.split(key)
    x = jax.random.normal(kx, (T, B, N, C), jnp.float32)
    params = init_params(kp, C, mlp_hidden)

    # Small explicit tiles so the demo exercises the multi-tile grid path;
    # at real model sizes use the defaults (row_tile=256, group_tile=8).
    fwd = jax.jit(functools.partial(spikf_block_forward, num_heads=num_heads,
                                    scale=scale, tau=2.0, threshold=0.5,
                                    row_tile=8, group_tile=2))
    out = fwd(x, params)
    jax.block_until_ready(out)
    assert out.shape == (T, B, N, C)
    print("KERNEL_OK")
</pallas_src>

<mosaic_0001>
module attributes {stable_mosaic.version = 11 : i64} {
  func.func @_linear_stats_kernel(%arg0: i32, %arg1: memref<4x8x32xf32, #tpu.memory_space<vmem>>, %arg2: memref<32x96xbf16, #tpu.memory_space<vmem>>, %arg3: memref<1x96xf32, #tpu.memory_space<vmem>>, %arg4: memref<4x8x96xbf16, #tpu.memory_space<vmem>>, %arg5: memref<1x2x96xf32, #tpu.memory_space<vmem>>) attributes {dimension_semantics = [#tpu.dimension_semantics<parallel>], iteration_bounds = array<i64: 2>, scalar_prefetch = 0 : i64, scratch_operands = 0 : i64, tpu.core_type = #tpu.core_type<tc>, window_params = [{transform_indices = @transform_0, window_bounds = array<i64: 4, 8, 32>}, {pipeline_mode = #tpu.pipeline_mode<synchronous>, transform_indices = @transform_1, window_bounds = array<i64: 32, 96>}, {pipeline_mode = #tpu.pipeline_mode<synchronous>, transform_indices = @transform_2, window_bounds = array<i64: 1, 96>}, {transform_indices = @transform_3, window_bounds = array<i64: 4, 8, 96>}, {transform_indices = @transform_4, window_bounds = array<i64: 1, 2, 96>}]} {
    %c0 = arith.constant 0 : index
    %c0_0 = arith.constant 0 : index
    %c0_1 = arith.constant 0 : index
    %0 = vector.load %arg1[%c0, %c0_0, %c0_1] : memref<4x8x32xf32, #tpu.memory_space<vmem>>, vector<4x8x32xf32>
    %1 = vector.shape_cast %0 : vector<4x8x32xf32> to vector<32x32xf32>
    %2 = arith.truncf %1 : vector<32x32xf32> to vector<32x32xbf16>
    %c0_2 = arith.constant 0 : index
    %c0_3 = arith.constant 0 : index
    %3 = vector.load %arg2[%c0_2, %c0_3] : memref<32x96xbf16, #tpu.memory_space<vmem>>, vector<32x96xbf16>
    %cst = arith.constant dense<0.000000e+00> : vector<32x96xf32>
    %4 = tpu.matmul %2, %3, %cst {dimension_numbers = #tpu.dot_dimension_numbers<[1], [0], [0], [1], [0, 0, 1, 1], [], []>} : vector<32x32xbf16>, vector<32x96xbf16>, vector<32x96xf32> -> vector<32x96xf32>
    %c0_4 = arith.constant 0 : index
    %c0_5 = arith.constant 0 : index
    %5 = vector.load %arg3[%c0_4, %c0_5] : memref<1x96xf32, #tpu.memory_space<vmem>>, vector<1x96xf32>
    %6 = vector.broadcast %5 : vector<1x96xf32> to vector<32x96xf32>
    %7 = arith.addf %4, %6 : vector<32x96xf32>
    %8 = vector.shape_cast %7 : vector<32x96xf32> to vector<4x8x96xf32>
    %9 = arith.truncf %8 : vector<4x8x96xf32> to vector<4x8x96xbf16>
    %c0_6 = arith.constant 0 : index
    %c0_7 = arith.constant 0 : index
    %c0_8 = arith.constant 0 : index
    %10 = vector.load %arg4[%c0_6, %c0_7, %c0_8] : memref<4x8x96xbf16, #tpu.memory_space<vmem>>, vector<4x8x96xbf16>
    tpu.vector_store %arg4[%c0_6, %c0_7, %c0_8], %9 {strides = array<i32>} : memref<4x8x96xbf16, #tpu.memory_space<vmem>>, vector<4x8x96xbf16>,
    %cst_9 = arith.constant dense<0.000000e+00> : vector<96xf32>
    %11 = vector.multi_reduction <add>, %7, %cst_9 [0] : vector<32x96xf32> to vector<96xf32>
    %12 = vector.shape_cast %11 : vector<96xf32> to vector<1x96xf32>
    %13 = arith.mulf %7, %7 : vector<32x96xf32>
    %cst_10 = arith.constant dense<0.000000e+00> : vector<96xf32>
    %14 = vector.multi_reduction <add>, %13, %cst_10 [0] : vector<32x96xf32> to vector<96xf32>
    %15 = vector.shape_cast %14 : vector<96xf32> to vector<1x96xf32>
    %16 = tpu.concatenate %12, %15 in 0 : vector<1x96xf32>, vector<1x96xf32> -> vector<2x96xf32>
    %17 = vector.shape_cast %16 : vector<2x96xf32> to vector<1x2x96xf32>
    %c0_11 = arith.constant 0 : index
    %c0_12 = arith.constant 0 : index
    %c0_13 = arith.constant 0 : index
    %18 = vector.load %arg5[%c0_11, %c0_12, %c0_13] : memref<1x2x96xf32, #tpu.memory_space<vmem>>, vector<1x2x96xf32>
    tpu.vector_store %arg5[%c0_11, %c0_12, %c0_13], %17 {strides = array<i32>} : memref<1x2x96xf32, #tpu.memory_space<vmem>>, vector<1x2x96xf32>,
    return
  }
  func.func @transform_0(%arg0: i32) -> (i32, i32, i32) {
    %c0_i32 = arith.constant 0 : i32
    %c0_i32_0 = arith.constant 0 : i32
    %c0_i32_1 = arith.constant 0 : i32
    return %c0_i32, %arg0, %c0_i32_0 : i32, i32, i32
  }
  func.func @transform_1(%arg0: i32) -> (i32, i32) {
    %c0_i32 = arith.constant 0 : i32
    %c0_i32_0 = arith.constant 0 : i32
    %c0_i32_1 = arith.constant 0 : i32
    return %c0_i32, %c0_i32_0 : i32, i32
  }
  func.func @transform_2(%arg0: i32) -> (i32, i32) {
    %c0_i32 = arith.constant 0 : i32
    %c0_i32_0 = arith.constant 0 : i32
    %c0_i32_1 = arith.constant 0 : i32
    return %c0_i32, %c0_i32_0 : i32, i32
  }
  func.func @transform_3(%arg0: i32) -> (i32, i32, i32) {
    %c0_i32 = arith.constant 0 : i32
    %c0_i32_0 = arith.constant 0 : i32
    %c0_i32_1 = arith.constant 0 : i32
    return %c0_i32, %arg0, %c0_i32_0 : i32, i32, i32
  }
  func.func @transform_4(%arg0: i32) -> (i32, i32, i32) {
    %c0_i32 = arith.constant 0 : i32
    %c0_i32_0 = arith.constant 0 : i32
    %c0_i32_1 = arith.constant 0 : i32
    return %arg0, %c0_i32, %c0_i32_0 : i32, i32, i32
  }
}

module attributes {stable_mosaic.version = 11 : i64} {
  func.func @_bn_lif_kernel(%arg0: i32, %arg1: memref<4x8x96xbf16, #tpu.memory_space<vmem>>, %arg2: memref<1x1x96xf32, #tpu.memory_space<vmem>>, %arg3: memref<1x1x96xf32, #tpu.memory_space<vmem>>, %arg4: memref<4x8x96xbf16, #tpu.memory_space<vmem>>) attributes {dimension_semantics = [#tpu.dimension_semantics<parallel>], iteration_bounds = array<i64: 2>, scalar_prefetch = 0 : i64, scratch_operands = 0 : i64, tpu.core_type = #tpu.core_type<tc>, window_params = [{transform_indices = @transform_0, window_bounds = array<i64: 4, 8, 96>}, {pipeline_mode = #tpu.pipeline_mode<synchronous>, transform_indices = @transform_1, window_bounds = array<i64: 1, 1, 96>}, {pipeline_mode = #tpu.pipeline_mode<synchronous>, transform_indices = @transform_2, window_bounds = array<i64: 1, 1, 96>}, {transform_indices = @transform_3, window_bounds = array<i64: 4, 8, 96>}]} {
    %c0 = arith.constant 0 : index
    %c0_0 = arith.constant 0 : index
    %c0_1 = arith.constant 0 : index
    %0 = vector.load %arg1[%c0, %c0_0, %c0_1] : memref<4x8x96xbf16, #tpu.memory_space<vmem>>, vector<4x8x96xbf16>
    %1 = arith.extf %0 : vector<4x8x96xbf16> to vector<4x8x96xf32>
    %c0_2 = arith.constant 0 : index
    %c0_3 = arith.constant 0 : index
    %c0_4 = arith.constant 0 : index
    %2 = vector.load %arg2[%c0_2, %c0_3, %c0_4] : memref<1x1x96xf32, #tpu.memory_space<vmem>>, vector<1x1x96xf32>
    %3 = vector.broadcast %2 : vector<1x1x96xf32> to vector<4x8x96xf32>
    %4 = arith.mulf %1, %3 : vector<4x8x96xf32>
    %c0_5 = arith.constant 0 : index
    %c0_6 = arith.constant 0 : index
    %c0_7 = arith.constant 0 : index
    %5 = vector.load %arg3[%c0_5, %c0_6, %c0_7] : memref<1x1x96xf32, #tpu.memory_space<vmem>>, vector<1x1x96xf32>
    %6 = vector.broadcast %5 : vector<1x1x96xf32> to vector<4x8x96xf32>
    %7 = arith.addf %4, %6 : vector<4x8x96xf32>
    %cst = arith.constant 0.000000e+00 : f32
    %8 = vector.broadcast %cst : f32 to vector<8x96xf32>
    %9 = vector.extract_strided_slice %7 {offsets = [0, 0, 0], sizes = [1, 8, 96], strides = [1, 1, 1]} : vector<4x8x96xf32> to vector<1x8x96xf32>
    %10 = vector.shape_cast %9 : vector<1x8x96xf32> to vector<8x96xf32>
    %11 = arith.subf %10, %8 : vector<8x96xf32>
    %cst_8 = arith.constant 5.000000e-01 : f32
    %12 = vector.broadcast %cst_8 : f32 to vector<8x96xf32>
    %13 = arith.mulf %11, %12 : vector<8x96xf32>
    %14 = arith.addf %8, %13 : vector<8x96xf32>
    %cst_9 = arith.constant 5.000000e-01 : f32
    %15 = vector.broadcast %cst_9 : f32 to vector<8x96xf32>
    %16 = arith.cmpf ogt, %14, %15 : vector<8x96xf32>
    %cst_10 = arith.constant 1.000000e+00 : f32
    %cst_11 = arith.constant 0.000000e+00 : f32
    %17 = vector.broadcast %cst_10 : f32 to vector<8x96xf32>
    %18 = vector.broadcast %cst_11 : f32 to vector<8x96xf32>
    %19 = arith.select %16, %17, %18 : vector<8x96xi1>, vector<8x96xf32>
    %cst_12 = arith.constant 0.000000e+00 : f32
    %20 = vector.broadcast %cst_12 : f32 to vector<8x96xf32>
    %21 = arith.select %16, %20, %14 : vector<8x96xi1>, vector<8x96xf32>
    %22 = vector.extract_strided_slice %7 {offsets = [1, 0, 0], sizes = [1, 8, 96], strides = [1, 1, 1]} : vector<4x8x96xf32> to vector<1x8x96xf32>
    %23 = vector.shape_cast %22 : vector<1x8x96xf32> to vector<8x96xf32>
    %24 = arith.subf %23, %21 : vector<8x96xf32>
    %cst_13 = arith.constant 5.000000e-01 : f32
    %25 = vector.broadcast %cst_13 : f32 to vector<8x96xf32>
    %26 = arith.mulf %24, %25 : vector<8x96xf32>
    %27 = arith.addf %21, %26 : vector<8x96xf32>
    %cst_14 = arith.constant 5.000000e-01 : f32
    %28 = vector.broadcast %cst_14 : f32 to vector<8x96xf32>
    %29 = arith.cmpf ogt, %27, %28 : vector<8x96xf32>
    %cst_15 = arith.constant 1.000000e+00 : f32
    %cst_16 = arith.constant 0.000000e+00 : f32
    %30 = vector.broadcast %cst_15 : f32 to vector<8x96xf32>
    %31 = vector.broadcast %cst_16 : f32 to vector<8x96xf32>
    %32 = arith.select %29, %30, %31 : vector<8x96xi1>, vector<8x96xf32>
    %cst_17 = arith.constant 0.000000e+00 : f32
    %33 = vector.broadcast %cst_17 : f32 to vector<8x96xf32>
    %34 = arith.select %29, %33, %27 : vector<8x96xi1>, vector<8x96xf32>
    %35 = vector.extract_strided_slice %7 {offsets = [2, 0, 0], sizes = [1, 8, 96], strides = [1, 1, 1]} : vector<4x8x96xf32> to vector<1x8x96xf32>
    %36 = vector.shape_cast %35 : vector<1x8x96xf32> to vector<8x96xf32>
    %37 = arith.subf %36, %34 : vector<8x96xf32>
    %cst_18 = arith.constant 5.000000e-01 : f32
    %38 = vector.broadcast %cst_18 : f32 to vector<8x96xf32>
    %39 = arith.mulf %37, %38 : vector<8x96xf32>
    %40 = arith.addf %34, %39 : vector<8x96xf32>
    %cst_19 = arith.constant 5.000000e-01 : f32
    %41 = vector.broadcast %cst_19 : f32 to vector<8x96xf32>
    %42 = arith.cmpf ogt, %40, %41 : vector<8x96xf32>
    %cst_20 = arith.constant 1.000000e+00 : f32
    %cst_21 = arith.constant 0.000000e+00 : f32
    %43 = vector.broadcast %cst_20 : f32 to vector<8x96xf32>
    %44 = vector.broadcast %cst_21 : f32 to vector<8x96xf32>
    %45 = arith.select %42, %43, %44 : vector<8x96xi1>, vector<8x96xf32>
    %cst_22 = arith.constant 0.000000e+00 : f32
    %46 = vector.broadcast %cst_22 : f32 to vector<8x96xf32>
    %47 = arith.select %42, %46, %40 : vector<8x96xi1>, vector<8x96xf32>
    %48 = vector.extract_strided_slice %7 {offsets = [3, 0, 0], sizes = [1, 8, 96], strides = [1, 1, 1]} : vector<4x8x96xf32> to vector<1x8x96xf32>
    %49 = vector.shape_cast %48 : vector<1x8x96xf32> to vector<8x96xf32>
    %50 = arith.subf %49, %47 : vector<8x96xf32>
    %cst_23 = arith.constant 5.000000e-01 : f32
    %51 = vector.broadcast %cst_23 : f32 to vector<8x96xf32>
    %52 = arith.mulf %50, %51 : vector<8x96xf32>
    %53 = arith.addf %47, %52 : vector<8x96xf32>
    %cst_24 = arith.constant 5.000000e-01 : f32
    %54 = vector.broadcast %cst_24 : f32 to vector<8x96xf32>
    %55 = arith.cmpf ogt, %53, %54 : vector<8x96xf32>
    %cst_25 = arith.constant 1.000000e+00 : f32
    %cst_26 = arith.constant 0.000000e+00 : f32
    %56 = vector.broadcast %cst_25 : f32 to vector<8x96xf32>
    %57 = vector.broadcast %cst_26 : f32 to vector<8x96xf32>
    %58 = arith.select %55, %56, %57 : vector<8x96xi1>, vector<8x96xf32>
    %59 = vector.shape_cast %19 : vector<8x96xf32> to vector<1x8x96xf32>
    %60 = vector.shape_cast %32 : vector<8x96xf32> to vector<1x8x96xf32>
    %61 = vector.shape_cast %45 : vector<8x96xf32> to vector<1x8x96xf32>
    %62 = vector.shape_cast %58 : vector<8x96xf32> to vector<1x8x96xf32>
    %63 = tpu.concatenate %59, %60, %61, %62 in 0 : vector<1x8x96xf32>, vector<1x8x96xf32>, vector<1x8x96xf32>, vector<1x8x96xf32> -> vector<4x8x96xf32>
    %64 = arith.truncf %63 : vector<4x8x96xf32> to vector<4x8x96xbf16>
    %c0_27 = arith.constant 0 : index
    %c0_28 = arith.constant 0 : index
    %c0_29 = arith.constant 0 : index
    %65 = vector.load %arg4[%c0_27, %c0_28, %c0_29] : memref<4x8x96xbf16, #tpu.memory_space<vmem>>, vector<4x8x96xbf16>
    tpu.vector_store %arg4[%c0_27, %c0_28, %c0_29], %64 {strides = array<i32>} : memref<4x8x96xbf16, #tpu.memory_space<vmem>>, vector<4x8x96xbf16>,
    return
  }
  func.func @transform_0(%arg0: i32) -> (i32, i32, i32) {
    %c0_i32 = arith.constant 0 : i32
    %c0_i32_0 = arith.constant 0 : i32
    %c0_i32_1 = arith.constant 0 : i32
    return %c0_i32, %arg0, %c0_i32_0 : i32, i32, i32
  }
  func.func @transform_1(%arg0: i32) -> (i32, i32, i32) {
    %c0_i32 = arith.constant 0 : i32
    %c0_i32_0 = arith.constant 0 : i32
    %c0_i32_1 = arith.constant 0 : i32
    %c0_i32_2 = arith.constant 0 : i32
    return %c0_i32, %c0_i32_0, %c0_i32_1 : i32, i32, i32
  }
  func.func @transform_2(%arg0: i32) -> (i32, i32, i32) {
    %c0_i32 = arith.constant 0 : i32
    %c0_i32_0 = arith.constant 0 : i32
    %c0_i32_1 = arith.constant 0 : i32
    %c0_i32_2 = arith.constant 0 : i32
    return %c0_i32, %c0_i32_0, %c0_i32_1 : i32, i32, i32
  }
  func.func @transform_3(%arg0: i32) -> (i32, i32, i32) {
    %c0_i32 = arith.constant 0 : i32
    %c0_i32_0 = arith.constant 0 : i32
    %c0_i32_1 = arith.constant 0 : i32
    return %c0_i32, %arg0, %c0_i32_0 : i32, i32, i32
  }
}

module attributes {stable_mosaic.version = 11 : i64} {
  func.func @_attn_kernel(%arg0: i32, %arg1: memref<2x8x96xbf16, #tpu.memory_space<vmem>>, %arg2: memref<2x8x32xbf16, #tpu.memory_space<vmem>>) attributes {dimension_semantics = [#tpu.dimension_semantics<parallel>], iteration_bounds = array<i64: 4>, scalar_prefetch = 0 : i64, scratch_operands = 0 : i64, tpu.core_type = #tpu.core_type<tc>, window_params = [{transform_indices = @transform_0, window_bounds = array<i64: 2, 8, 96>}, {transform_indices = @transform_1, window_bounds = array<i64: 2, 8, 32>}]} {
    %c0 = arith.constant 0 : index
    %c0_0 = arith.constant 0 : index
    %c0_1 = arith.constant 0 : index
    %0 = vector.load %arg1[%c0, %c0_0, %c0_1] : memref<2x8x96xbf16, #tpu.memory_space<vmem>>, vector<2x8x96xbf16>
    %1 = vector.extract_strided_slice %0 {offsets = [0, 0, 0], sizes = [2, 8, 32], strides = [1, 1, 1]} : vector<2x8x96xbf16> to vector<2x8x32xbf16>
    %2 = vector.extract_strided_slice %0 {offsets = [0, 0, 32], sizes = [2, 8, 32], strides = [1, 1, 1]} : vector<2x8x96xbf16> to vector<2x8x32xbf16>
    %3 = vector.extract_strided_slice %0 {offsets = [0, 0, 64], sizes = [2, 8, 32], strides = [1, 1, 1]} : vector<2x8x96xbf16> to vector<2x8x32xbf16>
    %4 = vector.extract_strided_slice %1 {offsets = [0, 0, 0], sizes = [2, 8, 8], strides = [1, 1, 1]} : vector<2x8x32xbf16> to vector<2x8x8xbf16>
    %5 = vector.extract_strided_slice %2 {offsets = [0, 0, 0], sizes = [2, 8, 8], strides = [1, 1, 1]} : vector<2x8x32xbf16> to vector<2x8x8xbf16>
    %6 = vector.extract_strided_slice %3 {offsets = [0, 0, 0], sizes = [2, 8, 8], strides = [1, 1, 1]} : vector<2x8x32xbf16> to vector<2x8x8xbf16>
    "tpu.trace_start"() <{level = 10 : i32, message = "gnd,gne->gde"}> : () -> ()
    %cst = arith.constant dense<0.000000e+00> : vector<2x8x8xf32>
    %7 = tpu.matmul %5, %6, %cst {dimension_numbers = #tpu.dot_dimension_numbers<[1], [1], [2], [2], [0, 0, 0, 2, 1, 2], [0], [0]>} : vector<2x8x8xbf16>, vector<2x8x8xbf16>, vector<2x8x8xf32> -> vector<2x8x8xf32>
    "tpu.trace_stop"() : () -> ()
    %8 = arith.truncf %7 : vector<2x8x8xf32> to vector<2x8x8xbf16>
    "tpu.trace_start"() <{level = 10 : i32, message = "gnd,gde->gne"}> : () -> ()
    %cst_2 = arith.constant dense<0.000000e+00> : vector<2x8x8xf32>
    %9 = tpu.matmul %4, %8, %cst_2 {dimension_numbers = #tpu.dot_dimension_numbers<[2], [1], [1], [2], [0, 0, 0, 1, 1, 2], [0], [0]>} : vector<2x8x8xbf16>, vector<2x8x8xbf16>, vector<2x8x8xf32> -> vector<2x8x8xf32>
    "tpu.trace_stop"() : () -> ()
    %cst_3 = arith.constant 1.562500e-02 : f32
    %10 = vector.broadcast %cst_3 : f32 to vector<2x8x8xf32>
    %11 = arith.mulf %9, %10 : vector<2x8x8xf32>
    %12 = arith.truncf %11 : vector<2x8x8xf32> to vector<2x8x8xbf16>
    %c0_4 = arith.constant 0 : index
    %c0_5 = arith.constant 0 : index
    %c0_6 = arith.constant 0 : index
    %13 = vector.load %arg2[%c0_4, %c0_5, %c0_6] : memref<2x8x32xbf16, #tpu.memory_space<vmem>>, vector<2x8x8xbf16>
    tpu.vector_store %arg2[%c0_4, %c0_5, %c0_6], %12 {strides = array<i32>} : memref<2x8x32xbf16, #tpu.memory_space<vmem>>, vector<2x8x8xbf16>,
    %14 = vector.extract_strided_slice %1 {offsets = [0, 0, 8], sizes = [2, 8, 8], strides = [1, 1, 1]} : vector<2x8x32xbf16> to vector<2x8x8xbf16>
    %15 = vector.extract_strided_slice %2 {offsets = [0, 0, 8], sizes = [2, 8, 8], strides = [1, 1, 1]} : vector<2x8x32xbf16> to vector<2x8x8xbf16>
    %16 = vector.extract_strided_slice %3 {offsets = [0, 0, 8], sizes = [2, 8, 8], strides = [1, 1, 1]} : vector<2x8x32xbf16> to vector<2x8x8xbf16>
    "tpu.trace_start"() <{level = 10 : i32, message = "gnd,gne->gde"}> : () -> ()
    %cst_7 = arith.constant dense<0.000000e+00> : vector<2x8x8xf32>
    %17 = tpu.matmul %15, %16, %cst_7 {dimension_numbers = #tpu.dot_dimension_numbers<[1], [1], [2], [2], [0, 0, 0, 2, 1, 2], [0], [0]>} : vector<2x8x8xbf16>, vector<2x8x8xbf16>, vector<2x8x8xf32> -> vector<2x8x8xf32>
    "tpu.trace_stop"() : () -> ()
    %18 = arith.truncf %17 : vector<2x8x8xf32> to vector<2x8x8xbf16>
    "tpu.trace_start"() <{level = 10 : i32, message = "gnd,gde->gne"}> : () -> ()
    %cst_8 = arith.constant dense<0.000000e+00> : vector<2x8x8xf32>
    %19 = tpu.matmul %14, %18, %cst_8 {dimension_numbers = #tpu.dot_dimension_numbers<[2], [1], [1], [2], [0, 0, 0, 1, 1, 2], [0], [0]>} : vector<2x8x8xbf16>, vector<2x8x8xbf16>, vector<2x8x8xf32> -> vector<2x8x8xf32>
    "tpu.trace_stop"() : () -> ()
    %cst_9 = arith.constant 1.562500e-02 : f32
    %20 = vector.broadcast %cst_9 : f32 to vector<2x8x8xf32>
    %21 = arith.mulf %19, %20 : vector<2x8x8xf32>
    %22 = arith.truncf %21 : vector<2x8x8xf32> to vector<2x8x8xbf16>
    %c0_10 = arith.constant 0 : index
    %c0_11 = arith.constant 0 : index
    %c8 = arith.constant 8 : index
    %23 = vector.load %arg2[%c0_10, %c0_11, %c8] : memref<2x8x32xbf16, #tpu.memory_space<vmem>>, vector<2x8x8xbf16>
    tpu.vector_store %arg2[%c0_10, %c0_11, %c8], %22 {strides = array<i32>} : memref<2x8x32xbf16, #tpu.memory_space<vmem>>, vector<2x8x8xbf16>,
    %24 = vector.extract_strided_slice %1 {offsets = [0, 0, 16], sizes = [2, 8, 8], strides = [1, 1, 1]} : vector<2x8x32xbf16> to vector<2x8x8xbf16>
    %25 = vector.extract_strided_slice %2 {offsets = [0, 0, 16], sizes = [2, 8, 8], strides = [1, 1, 1]} : vector<2x8x32xbf16> to vector<2x8x8xbf16>
    %26 = vector.extract_strided_slice %3 {offsets = [0, 0, 16], sizes = [2, 8, 8], strides = [1, 1, 1]} : vector<2x8x32xbf16> to vector<2x8x8xbf16>
    "tpu.trace_start"() <{level = 10 : i32, message = "gnd,gne->gde"}> : () -> ()
    %cst_12 = arith.constant dense<0.000000e+00> : vector<2x8x8xf32>
    %27 = tpu.matmul %25, %26, %cst_12 {dimension_numbers = #tpu.dot_dimension_numbers<[1], [1], [2], [2], [0, 0, 0, 2, 1, 2], [0], [0]>} : vector<2x8x8xbf16>, vector<2x8x8xbf16>, vector<2x8x8xf32> -> vector<2x8x8xf32>
    "tpu.trace_stop"() : () -> ()
    %28 = arith.truncf %27 : vector<2x8x8xf32> to vector<2x8x8xbf16>
    "tpu.trace_start"() <{level = 10 : i32, message = "gnd,gde->gne"}> : () -> ()
    %cst_13 = arith.constant dense<0.000000e+00> : vector<2x8x8xf32>
    %29 = tpu.matmul %24, %28, %cst_13 {dimension_numbers = #tpu.dot_dimension_numbers<[2], [1], [1], [2], [0, 0, 0, 1, 1, 2], [0], [0]>} : vector<2x8x8xbf16>, vector<2x8x8xbf16>, vector<2x8x8xf32> -> vector<2x8x8xf32>
    "tpu.trace_stop"() : () -> ()
    %cst_14 = arith.constant 1.562500e-02 : f32
    %30 = vector.broadcast %cst_14 : f32 to vector<2x8x8xf32>
    %31 = arith.mulf %29, %30 : vector<2x8x8xf32>
    %32 = arith.truncf %31 : vector<2x8x8xf32> to vector<2x8x8xbf16>
    %c0_15 = arith.constant 0 : index
    %c0_16 = arith.constant 0 : index
    %c16 = arith.constant 16 : index
    %33 = vector.load %arg2[%c0_15, %c0_16, %c16] : memref<2x8x32xbf16, #tpu.memory_space<vmem>>, vector<2x8x8xbf16>
    tpu.vector_store %arg2[%c0_15, %c0_16, %c16], %32 {strides = array<i32>} : memref<2x8x32xbf16, #tpu.memory_space<vmem>>, vector<2x8x8xbf16>,
    %34 = vector.extract_strided_slice %1 {offsets = [0, 0, 24], sizes = [2, 8, 8], strides = [1, 1, 1]} : vector<2x8x32xbf16> to vector<2x8x8xbf16>
    %35 = vector.extract_strided_slice %2 {offsets = [0, 0, 24], sizes = [2, 8, 8], strides = [1, 1, 1]} : vector<2x8x32xbf16> to vector<2x8x8xbf16>
    %36 = vector.extract_strided_slice %3 {offsets = [0, 0, 24], sizes = [2, 8, 8], strides = [1, 1, 1]} : vector<2x8x32xbf16> to vector<2x8x8xbf16>
    "tpu.trace_start"() <{level = 10 : i32, message = "gnd,gne->gde"}> : () -> ()
    %cst_17 = arith.constant dense<0.000000e+00> : vector<2x8x8xf32>
    %37 = tpu.matmul %35, %36, %cst_17 {dimension_numbers = #tpu.dot_dimension_numbers<[1], [1], [2], [2], [0, 0, 0, 2, 1, 2], [0], [0]>} : vector<2x8x8xbf16>, vector<2x8x8xbf16>, vector<2x8x8xf32> -> vector<2x8x8xf32>
    "tpu.trace_stop"() : () -> ()
    %38 = arith.truncf %37 : vector<2x8x8xf32> to vector<2x8x8xbf16>
    "tpu.trace_start"() <{level = 10 : i32, message = "gnd,gde->gne"}> : () -> ()
    %cst_18 = arith.constant dense<0.000000e+00> : vector<2x8x8xf32>
    %39 = tpu.matmul %34, %38, %cst_18 {dimension_numbers = #tpu.dot_dimension_numbers<[2], [1], [1], [2], [0, 0, 0, 1, 1, 2], [0], [0]>} : vector<2x8x8xbf16>, vector<2x8x8xbf16>, vector<2x8x8xf32> -> vector<2x8x8xf32>
    "tpu.trace_stop"() : () -> ()
    %cst_19 = arith.constant 1.562500e-02 : f32
    %40 = vector.broadcast %cst_19 : f32 to vector<2x8x8xf32>
    %41 = arith.mulf %39, %40 : vector<2x8x8xf32>
    %42 = arith.truncf %41 : vector<2x8x8xf32> to vector<2x8x8xbf16>
    %c0_20 = arith.constant 0 : index
    %c0_21 = arith.constant 0 : index
    %c24 = arith.constant 24 : index
    %43 = vector.load %arg2[%c0_20, %c0_21, %c24] : memref<2x8x32xbf16, #tpu.memory_space<vmem>>, vector<2x8x8xbf16>
    tpu.vector_store %arg2[%c0_20, %c0_21, %c24], %42 {strides = array<i32>} : memref<2x8x32xbf16, #tpu.memory_space<vmem>>, vector<2x8x8xbf16>,
    return
  }
  func.func @transform_0(%arg0: i32) -> (i32, i32, i32) {
    %c0_i32 = arith.constant 0 : i32
    %c0_i32_0 = arith.constant 0 : i32
    %c0_i32_1 = arith.constant 0 : i32
    return %arg0, %c0_i32, %c0_i32_0 : i32, i32, i32
  }
  func.func @transform_1(%arg0: i32) -> (i32, i32, i32) {
    %c0_i32 = arith.constant 0 : i32
    %c0_i32_0 = arith.constant 0 : i32
    %c0_i32_1 = arith.constant 0 : i32
    return %arg0, %c0_i32, %c0_i32_0 : i32, i32, i32
  }
}

module attributes {stable_mosaic.version = 11 : i64} {
  func.func @_linear_stats_kernel(%arg0: i32, %arg1: memref<4x8x32xbf16, #tpu.memory_space<vmem>>, %arg2: memref<32x32xbf16, #tpu.memory_space<vmem>>, %arg3: memref<1x32xf32, #tpu.memory_space<vmem>>, %arg4: memref<4x8x32xbf16, #tpu.memory_space<vmem>>, %arg5: memref<1x2x32xf32, #tpu.memory_space<vmem>>) attributes {dimension_semantics = [#tpu.dimension_semantics<parallel>], iteration_bounds = array<i64: 2>, scalar_prefetch = 0 : i64, scratch_operands = 0 : i64, tpu.core_type = #tpu.core_type<tc>, window_params = [{transform_indices = @transform_0, window_bounds = array<i64: 4, 8, 32>}, {pipeline_mode = #tpu.pipeline_mode<synchronous>, transform_indices = @transform_1, window_bounds = array<i64: 32, 32>}, {pipeline_mode = #tpu.pipeline_mode<synchronous>, transform_indices = @transform_2, window_bounds = array<i64: 1, 32>}, {transform_indices = @transform_3, window_bounds = array<i64: 4, 8, 32>}, {transform_indices = @transform_4, window_bounds = array<i64: 1, 2, 32>}]} {
    %c0 = arith.constant 0 : index
    %c0_0 = arith.constant 0 : index
    %c0_1 = arith.constant 0 : index
    %0 = vector.load %arg1[%c0, %c0_0, %c0_1] : memref<4x8x32xbf16, #tpu.memory_space<vmem>>, vector<4x8x32xbf16>
    %1 = arith.extf %0 : vector<4x8x32xbf16> to vector<4x8x32xf32>
    %cst = arith.constant 0.000000e+00 : f32
    %2 = vector.broadcast %cst : f32 to vector<8x32xf32>
    %3 = vector.extract_strided_slice %1 {offsets = [0, 0, 0], sizes = [1, 8, 32], strides = [1, 1, 1]} : vector<4x8x32xf32> to vector<1x8x32xf32>
    %4 = vector.shape_cast %3 : vector<1x8x32xf32> to vector<8x32xf32>
    %5 = arith.subf %4, %2 : vector<8x32xf32>
    %cst_2 = arith.constant 5.000000e-01 : f32
    %6 = vector.broadcast %cst_2 : f32 to vector<8x32xf32>
    %7 = arith.mulf %5, %6 : vector<8x32xf32>
    %8 = arith.addf %2, %7 : vector<8x32xf32>
    %cst_3 = arith.constant 5.000000e-01 : f32
    %9 = vector.broadcast %cst_3 : f32 to vector<8x32xf32>
    %10 = arith.cmpf ogt, %8, %9 : vector<8x32xf32>
    %cst_4 = arith.constant 1.000000e+00 : f32
    %cst_5 = arith.constant 0.000000e+00 : f32
    %11 = vector.broadcast %cst_4 : f32 to vector<8x32xf32>
    %12 = vector.broadcast %cst_5 : f32 to vector<8x32xf32>
    %13 = arith.select %10, %11, %12 : vector<8x32xi1>, vector<8x32xf32>
    %cst_6 = arith.constant 0.000000e+00 : f32
    %14 = vector.broadcast %cst_6 : f32 to vector<8x32xf32>
    %15 = arith.select %10, %14, %8 : vector<8x32xi1>, vector<8x32xf32>
    %16 = vector.extract_strided_slice %1 {offsets = [1, 0, 0], sizes = [1, 8, 32], strides = [1, 1, 1]} : vector<4x8x32xf32> to vector<1x8x32xf32>
    %17 = vector.shape_cast %16 : vector<1x8x32xf32> to vector<8x32xf32>
    %18 = arith.subf %17, %15 : vector<8x32xf32>
    %cst_7 = arith.constant 5.000000e-01 : f32
    %19 = vector.broadcast %cst_7 : f32 to vector<8x32xf32>
    %20 = arith.mulf %18, %19 : vector<8x32xf32>
    %21 = arith.addf %15, %20 : vector<8x32xf32>
    %cst_8 = arith.constant 5.000000e-01 : f32
    %22 = vector.broadcast %cst_8 : f32 to vector<8x32xf32>
    %23 = arith.cmpf ogt, %21, %22 : vector<8x32xf32>
    %cst_9 = arith.constant 1.000000e+00 : f32
    %cst_10 = arith.constant 0.000000e+00 : f32
    %24 = vector.broadcast %cst_9 : f32 to vector<8x32xf32>
    %25 = vector.broadcast %cst_10 : f32 to vector<8x32xf32>
    %26 = arith.select %23, %24, %25 : vector<8x32xi1>, vector<8x32xf32>
    %cst_11 = arith.constant 0.000000e+00 : f32
    %27 = vector.broadcast %cst_11 : f32 to vector<8x32xf32>
    %28 = arith.select %23, %27, %21 : vector<8x32xi1>, vector<8x32xf32>
    %29 = vector.extract_strided_slice %1 {offsets = [2, 0, 0], sizes = [1, 8, 32], strides = [1, 1, 1]} : vector<4x8x32xf32> to vector<1x8x32xf32>
    %30 = vector.shape_cast %29 : vector<1x8x32xf32> to vector<8x32xf32>
    %31 = arith.subf %30, %28 : vector<8x32xf32>
    %cst_12 = arith.constant 5.000000e-01 : f32
    %32 = vector.broadcast %cst_12 : f32 to vector<8x32xf32>
    %33 = arith.mulf %31, %32 : vector<8x32xf32>
    %34 = arith.addf %28, %33 : vector<8x32xf32>
    %cst_13 = arith.constant 5.000000e-01 : f32
    %35 = vector.broadcast %cst_13 : f32 to vector<8x32xf32>
    %36 = arith.cmpf ogt, %34, %35 : vector<8x32xf32>
    %cst_14 = arith.constant 1.000000e+00 : f32
    %cst_15 = arith.constant 0.000000e+00 : f32
    %37 = vector.broadcast %cst_14 : f32 to vector<8x32xf32>
    %38 = vector.broadcast %cst_15 : f32 to vector<8x32xf32>
    %39 = arith.select %36, %37, %38 : vector<8x32xi1>, vector<8x32xf32>
    %cst_16 = arith.constant 0.000000e+00 : f32
    %40 = vector.broadcast %cst_16 : f32 to vector<8x32xf32>
    %41 = arith.select %36, %40, %34 : vector<8x32xi1>, vector<8x32xf32>
    %42 = vector.extract_strided_slice %1 {offsets = [3, 0, 0], sizes = [1, 8, 32], strides = [1, 1, 1]} : vector<4x8x32xf32> to vector<1x8x32xf32>
    %43 = vector.shape_cast %42 : vector<1x8x32xf32> to vector<8x32xf32>
    %44 = arith.subf %43, %41 : vector<8x32xf32>
    %cst_17 = arith.constant 5.000000e-01 : f32
    %45 = vector.broadcast %cst_17 : f32 to vector<8x32xf32>
    %46 = arith.mulf %44, %45 : vector<8x32xf32>
    %47 = arith.addf %41, %46 : vector<8x32xf32>
    %cst_18 = arith.constant 5.000000e-01 : f32
    %48 = vector.broadcast %cst_18 : f32 to vector<8x32xf32>
    %49 = arith.cmpf ogt, %47, %48 : vector<8x32xf32>
    %cst_19 = arith.constant 1.000000e+00 : f32
    %cst_20 = arith.constant 0.000000e+00 : f32
    %50 = vector.broadcast %cst_19 : f32 to vector<8x32xf32>
    %51 = vector.broadcast %cst_20 : f32 to vector<8x32xf32>
    %52 = arith.select %49, %50, %51 : vector<8x32xi1>, vector<8x32xf32>
    %53 = vector.shape_cast %13 : vector<8x32xf32> to vector<1x8x32xf32>
    %54 = vector.shape_cast %26 : vector<8x32xf32> to vector<1x8x32xf32>
    %55 = vector.shape_cast %39 : vector<8x32xf32> to vector<1x8x32xf32>
    %56 = vector.shape_cast %52 : vector<8x32xf32> to vector<1x8x32xf32>
    %57 = tpu.concatenate %53, %54, %55, %56 in 0 : vector<1x8x32xf32>, vector<1x8x32xf32>, vector<1x8x32xf32>, vector<1x8x32xf32> -> vector<4x8x32xf32>
    %58 = vector.shape_cast %57 : vector<4x8x32xf32> to vector<32x32xf32>
    %59 = arith.truncf %58 : vector<32x32xf32> to vector<32x32xbf16>
    %c0_21 = arith.constant 0 : index
    %c0_22 = arith.constant 0 : index
    %60 = vector.load %arg2[%c0_21, %c0_22] : memref<32x32xbf16, #tpu.memory_space<vmem>>, vector<32x32xbf16>
    %cst_23 = arith.constant dense<0.000000e+00> : vector<32x32xf32>
    %61 = tpu.matmul %59, %60, %cst_23 {dimension_numbers = #tpu.dot_dimension_numbers<[1], [0], [0], [1], [0, 0, 1, 1], [], []>} : vector<32x32xbf16>, vector<32x32xbf16>, vector<32x32xf32> -> vector<32x32xf32>
    %c0_24 = arith.constant 0 : index
    %c0_25 = arith.constant 0 : index
    %62 = vector.load %arg3[%c0_24, %c0_25] : memref<1x32xf32, #tpu.memory_space<vmem>>, vector<1x32xf32>
    %63 = vector.broadcast %62 : vector<1x32xf32> to vector<32x32xf32>
    %64 = arith.addf %61, %63 : vector<32x32xf32>
    %65 = vector.shape_cast %64 : vector<32x32xf32> to vector<4x8x32xf32>
    %66 = arith.truncf %65 : vector<4x8x32xf32> to vector<4x8x32xbf16>
    %c0_26 = arith.constant 0 : index
    %c0_27 = arith.constant 0 : index
    %c0_28 = arith.constant 0 : index
    %67 = vector.load %arg4[%c0_26, %c0_27, %c0_28] : memref<4x8x32xbf16, #tpu.memory_space<vmem>>, vector<4x8x32xbf16>
    tpu.vector_store %arg4[%c0_26, %c0_27, %c0_28], %66 {strides = array<i32>} : memref<4x8x32xbf16, #tpu.memory_space<vmem>>, vector<4x8x32xbf16>,
    %cst_29 = arith.constant dense<0.000000e+00> : vector<32xf32>
    %68 = vector.multi_reduction <add>, %64, %cst_29 [0] : vector<32x32xf32> to vector<32xf32>
    %69 = vector.shape_cast %68 : vector<32xf32> to vector<1x32xf32>
    %70 = arith.mulf %64, %64 : vector<32x32xf32>
    %cst_30 = arith.constant dense<0.000000e+00> : vector<32xf32>
    %71 = vector.multi_reduction <add>, %70, %cst_30 [0] : vector<32x32xf32> to vector<32xf32>
    %72 = vector.shape_cast %71 : vector<32xf32> to vector<1x32xf32>
    %73 = tpu.concatenate %69, %72 in 0 : vector<1x32xf32>, vector<1x32xf32> -> vector<2x32xf32>
    %74 = vector.shape_cast %73 : vector<2x32xf32> to vector<1x2x32xf32>
    %c0_31 = arith.constant 0 : index
    %c0_32 = arith.constant 0 : index
    %c0_33 = arith.constant 0 : index
    %75 = vector.load %arg5[%c0_31, %c0_32, %c0_33] : memref<1x2x32xf32, #tpu.memory_space<vmem>>, vector<1x2x32xf32>
    tpu.vector_store %arg5[%c0_31, %c0_32, %c0_33], %74 {strides = array<i32>} : memref<1x2x32xf32, #tpu.memory_space<vmem>>, vector<1x2x32xf32>,
    return
  }
  func.func @transform_0(%arg0: i32) -> (i32, i32, i32) {
    %c0_i32 = arith.constant 0 : i32
    %c0_i32_0 = arith.constant 0 : i32
    %c0_i32_1 = arith.constant 0 : i32
    return %c0_i32, %arg0, %c0_i32_0 : i32, i32, i32
  }
  func.func @transform_1(%arg0: i32) -> (i32, i32) {
    %c0_i32 = arith.constant 0 : i32
    %c0_i32_0 = arith.constant 0 : i32
    %c0_i32_1 = arith.constant 0 : i32
    return %c0_i32, %c0_i32_0 : i32, i32
  }
  func.func @transform_2(%arg0: i32) -> (i32, i32) {
    %c0_i32 = arith.constant 0 : i32
    %c0_i32_0 = arith.constant 0 : i32
    %c0_i32_1 = arith.constant 0 : i32
    return %c0_i32, %c0_i32_0 : i32, i32
  }
  func.func @transform_3(%arg0: i32) -> (i32, i32, i32) {
    %c0_i32 = arith.constant 0 : i32
    %c0_i32_0 = arith.constant 0 : i32
    %c0_i32_1 = arith.constant 0 : i32
    return %c0_i32, %arg0, %c0_i32_0 : i32, i32, i32
  }
  func.func @transform_4(%arg0: i32) -> (i32, i32, i32) {
    %c0_i32 = arith.constant 0 : i32
    %c0_i32_0 = arith.constant 0 : i32
    %c0_i32_1 = arith.constant 0 : i32
    return %arg0, %c0_i32, %c0_i32_0 : i32, i32, i32
  }
}

module attributes {stable_mosaic.version = 11 : i64} {
  func.func @_bn_lif_kernel(%arg0: i32, %arg1: memref<4x8x32xbf16, #tpu.memory_space<vmem>>, %arg2: memref<1x1x32xf32, #tpu.memory_space<vmem>>, %arg3: memref<1x1x32xf32, #tpu.memory_space<vmem>>, %arg4: memref<4x8x32xf32, #tpu.memory_space<vmem>>, %arg5: memref<4x8x32xf32, #tpu.memory_space<vmem>>) attributes {dimension_semantics = [#tpu.dimension_semantics<parallel>], iteration_bounds = array<i64: 2>, scalar_prefetch = 0 : i64, scratch_operands = 0 : i64, tpu.core_type = #tpu.core_type<tc>, window_params = [{transform_indices = @transform_0, window_bounds = array<i64: 4, 8, 32>}, {pipeline_mode = #tpu.pipeline_mode<synchronous>, transform_indices = @transform_1, window_bounds = array<i64: 1, 1, 32>}, {pipeline_mode = #tpu.pipeline_mode<synchronous>, transform_indices = @transform_2, window_bounds = array<i64: 1, 1, 32>}, {transform_indices = @transform_3, window_bounds = array<i64: 4, 8, 32>}, {transform_indices = @transform_4, window_bounds = array<i64: 4, 8, 32>}]} {
    %c0 = arith.constant 0 : index
    %c0_0 = arith.constant 0 : index
    %c0_1 = arith.constant 0 : index
    %0 = vector.load %arg1[%c0, %c0_0, %c0_1] : memref<4x8x32xbf16, #tpu.memory_space<vmem>>, vector<4x8x32xbf16>
    %1 = arith.extf %0 : vector<4x8x32xbf16> to vector<4x8x32xf32>
    %c0_2 = arith.constant 0 : index
    %c0_3 = arith.constant 0 : index
    %c0_4 = arith.constant 0 : index
    %2 = vector.load %arg2[%c0_2, %c0_3, %c0_4] : memref<1x1x32xf32, #tpu.memory_space<vmem>>, vector<1x1x32xf32>
    %3 = vector.broadcast %2 : vector<1x1x32xf32> to vector<4x8x32xf32>
    %4 = arith.mulf %1, %3 : vector<4x8x32xf32>
    %c0_5 = arith.constant 0 : index
    %c0_6 = arith.constant 0 : index
    %c0_7 = arith.constant 0 : index
    %5 = vector.load %arg3[%c0_5, %c0_6, %c0_7] : memref<1x1x32xf32, #tpu.memory_space<vmem>>, vector<1x1x32xf32>
    %6 = vector.broadcast %5 : vector<1x1x32xf32> to vector<4x8x32xf32>
    %7 = arith.addf %4, %6 : vector<4x8x32xf32>
    %cst = arith.constant 0.000000e+00 : f32
    %8 = vector.broadcast %cst : f32 to vector<8x32xf32>
    %9 = vector.extract_strided_slice %7 {offsets = [0, 0, 0], sizes = [1, 8, 32], strides = [1, 1, 1]} : vector<4x8x32xf32> to vector<1x8x32xf32>
    %10 = vector.shape_cast %9 : vector<1x8x32xf32> to vector<8x32xf32>
    %11 = arith.subf %10, %8 : vector<8x32xf32>
    %cst_8 = arith.constant 5.000000e-01 : f32
    %12 = vector.broadcast %cst_8 : f32 to vector<8x32xf32>
    %13 = arith.mulf %11, %12 : vector<8x32xf32>
    %14 = arith.addf %8, %13 : vector<8x32xf32>
    %cst_9 = arith.constant 5.000000e-01 : f32
    %15 = vector.broadcast %cst_9 : f32 to vector<8x32xf32>
    %16 = arith.cmpf ogt, %14, %15 : vector<8x32xf32>
    %cst_10 = arith.constant 1.000000e+00 : f32
    %cst_11 = arith.constant 0.000000e+00 : f32
    %17 = vector.broadcast %cst_10 : f32 to vector<8x32xf32>
    %18 = vector.broadcast %cst_11 : f32 to vector<8x32xf32>
    %19 = arith.select %16, %17, %18 : vector<8x32xi1>, vector<8x32xf32>
    %cst_12 = arith.constant 0.000000e+00 : f32
    %20 = vector.broadcast %cst_12 : f32 to vector<8x32xf32>
    %21 = arith.select %16, %20, %14 : vector<8x32xi1>, vector<8x32xf32>
    %22 = vector.extract_strided_slice %7 {offsets = [1, 0, 0], sizes = [1, 8, 32], strides = [1, 1, 1]} : vector<4x8x32xf32> to vector<1x8x32xf32>
    %23 = vector.shape_cast %22 : vector<1x8x32xf32> to vector<8x32xf32>
    %24 = arith.subf %23, %21 : vector<8x32xf32>
    %cst_13 = arith.constant 5.000000e-01 : f32
    %25 = vector.broadcast %cst_13 : f32 to vector<8x32xf32>
    %26 = arith.mulf %24, %25 : vector<8x32xf32>
    %27 = arith.addf %21, %26 : vector<8x32xf32>
    %cst_14 = arith.constant 5.000000e-01 : f32
    %28 = vector.broadcast %cst_14 : f32 to vector<8x32xf32>
    %29 = arith.cmpf ogt, %27, %28 : vector<8x32xf32>
    %cst_15 = arith.constant 1.000000e+00 : f32
    %cst_16 = arith.constant 0.000000e+00 : f32
    %30 = vector.broadcast %cst_15 : f32 to vector<8x32xf32>
    %31 = vector.broadcast %cst_16 : f32 to vector<8x32xf32>
    %32 = arith.select %29, %30, %31 : vector<8x32xi1>, vector<8x32xf32>
    %cst_17 = arith.constant 0.000000e+00 : f32
    %33 = vector.broadcast %cst_17 : f32 to vector<8x32xf32>
    %34 = arith.select %29, %33, %27 : vector<8x32xi1>, vector<8x32xf32>
    %35 = vector.extract_strided_slice %7 {offsets = [2, 0, 0], sizes = [1, 8, 32], strides = [1, 1, 1]} : vector<4x8x32xf32> to vector<1x8x32xf32>
    %36 = vector.shape_cast %35 : vector<1x8x32xf32> to vector<8x32xf32>
    %37 = arith.subf %36, %34 : vector<8x32xf32>
    %cst_18 = arith.constant 5.000000e-01 : f32
    %38 = vector.broadcast %cst_18 : f32 to vector<8x32xf32>
    %39 = arith.mulf %37, %38 : vector<8x32xf32>
    %40 = arith.addf %34, %39 : vector<8x32xf32>
    %cst_19 = arith.constant 5.000000e-01 : f32
    %41 = vector.broadcast %cst_19 : f32 to vector<8x32xf32>
    %42 = arith.cmpf ogt, %40, %41 : vector<8x32xf32>
    %cst_20 = arith.constant 1.000000e+00 : f32
    %cst_21 = arith.constant 0.000000e+00 : f32
    %43 = vector.broadcast %cst_20 : f32 to vector<8x32xf32>
    %44 = vector.broadcast %cst_21 : f32 to vector<8x32xf32>
    %45 = arith.select %42, %43, %44 : vector<8x32xi1>, vector<8x32xf32>
    %cst_22 = arith.constant 0.000000e+00 : f32
    %46 = vector.broadcast %cst_22 : f32 to vector<8x32xf32>
    %47 = arith.select %42, %46, %40 : vector<8x32xi1>, vector<8x32xf32>
    %48 = vector.extract_strided_slice %7 {offsets = [3, 0, 0], sizes = [1, 8, 32], strides = [1, 1, 1]} : vector<4x8x32xf32> to vector<1x8x32xf32>
    %49 = vector.shape_cast %48 : vector<1x8x32xf32> to vector<8x32xf32>
    %50 = arith.subf %49, %47 : vector<8x32xf32>
    %cst_23 = arith.constant 5.000000e-01 : f32
    %51 = vector.broadcast %cst_23 : f32 to vector<8x32xf32>
    %52 = arith.mulf %50, %51 : vector<8x32xf32>
    %53 = arith.addf %47, %52 : vector<8x32xf32>
    %cst_24 = arith.constant 5.000000e-01 : f32
    %54 = vector.broadcast %cst_24 : f32 to vector<8x32xf32>
    %55 = arith.cmpf ogt, %53, %54 : vector<8x32xf32>
    %cst_25 = arith.constant 1.000000e+00 : f32
    %cst_26 = arith.constant 0.000000e+00 : f32
    %56 = vector.broadcast %cst_25 : f32 to vector<8x32xf32>
    %57 = vector.broadcast %cst_26 : f32 to vector<8x32xf32>
    %58 = arith.select %55, %56, %57 : vector<8x32xi1>, vector<8x32xf32>
    %59 = vector.shape_cast %19 : vector<8x32xf32> to vector<1x8x32xf32>
    %60 = vector.shape_cast %32 : vector<8x32xf32> to vector<1x8x32xf32>
    %61 = vector.shape_cast %45 : vector<8x32xf32> to vector<1x8x32xf32>
    %62 = vector.shape_cast %58 : vector<8x32xf32> to vector<1x8x32xf32>
    %63 = tpu.concatenate %59, %60, %61, %62 in 0 : vector<1x8x32xf32>, vector<1x8x32xf32>, vector<1x8x32xf32>, vector<1x8x32xf32> -> vector<4x8x32xf32>
    %c0_27 = arith.constant 0 : index
    %c0_28 = arith.constant 0 : index
    %c0_29 = arith.constant 0 : index
    %64 = vector.load %arg4[%c0_27, %c0_28, %c0_29] : memref<4x8x32xf32, #tpu.memory_space<vmem>>, vector<4x8x32xf32>
    %65 = arith.addf %63, %64 : vector<4x8x32xf32>
    %c0_30 = arith.constant 0 : index
    %c0_31 = arith.constant 0 : index
    %c0_32 = arith.constant 0 : index
    %66 = vector.load %arg5[%c0_30, %c0_31, %c0_32] : memref<4x8x32xf32, #tpu.memory_space<vmem>>, vector<4x8x32xf32>
    tpu.vector_store %arg5[%c0_30, %c0_31, %c0_32], %65 {strides = array<i32>} : memref<4x8x32xf32, #tpu.memory_space<vmem>>, vector<4x8x32xf32>,
    return
  }
  func.func @transform_0(%arg0: i32) -> (i32, i32, i32) {
    %c0_i32 = arith.constant 0 : i32
    %c0_i32_0 = arith.constant 0 : i32
    %c0_i32_1 = arith.constant 0 : i32
    return %c0_i32, %arg0, %c0_i32_0 : i32, i32, i32
  }
  func.func @transform_1(%arg0: i32) -> (i32, i32, i32) {
    %c0_i32 = arith.constant 0 : i32
    %c0_i32_0 = arith.constant 0 : i32
    %c0_i32_1 = arith.constant 0 : i32
    %c0_i32_2 = arith.constant 0 : i32
    return %c0_i32, %c0_i32_0, %c0_i32_1 : i32, i32, i32
  }
  func.func @transform_2(%arg0: i32) -> (i32, i32, i32) {
    %c0_i32 = arith.constant 0 : i32
    %c0_i32_0 = arith.constant 0 : i32
    %c0_i32_1 = arith.constant 0 : i32
    %c0_i32_2 = arith.constant 0 : i32
    return %c0_i32, %c0_i32_0, %c0_i32_1 : i32, i32, i32
  }
  func.func @transform_3(%arg0: i32) -> (i32, i32, i32) {
    %c0_i32 = arith.constant 0 : i32
    %c0_i32_0 = arith.constant 0 : i32
    %c0_i32_1 = arith.constant 0 : i32
    return %c0_i32, %arg0, %c0_i32_0 : i32, i32, i32
  }
  func.func @transform_4(%arg0: i32) -> (i32, i32, i32) {
    %c0_i32 = arith.constant 0 : i32
    %c0_i32_0 = arith.constant 0 : i32
    %c0_i32_1 = arith.constant 0 : i32
    return %c0_i32, %arg0, %c0_i32_0 : i32, i32, i32
  }
}

module attributes {stable_mosaic.version = 11 : i64} {
  func.func @_linear_stats_kernel(%arg0: i32, %arg1: memref<4x8x32xf32, #tpu.memory_space<vmem>>, %arg2: memref<32x128xbf16, #tpu.memory_space<vmem>>, %arg3: memref<1x128xf32, #tpu.memory_space<vmem>>, %arg4: memref<4x8x128xbf16, #tpu.memory_space<vmem>>, %arg5: memref<1x2x128xf32, #tpu.memory_space<vmem>>) attributes {dimension_semantics = [#tpu.dimension_semantics<parallel>], iteration_bounds = array<i64: 2>, scalar_prefetch = 0 : i64, scratch_operands = 0 : i64, tpu.core_type = #tpu.core_type<tc>, window_params = [{transform_indices = @transform_0, window_bounds = array<i64: 4, 8, 32>}, {pipeline_mode = #tpu.pipeline_mode<synchronous>, transform_indices = @transform_1, window_bounds = array<i64: 32, 128>}, {pipeline_mode = #tpu.pipeline_mode<synchronous>, transform_indices = @transform_2, window_bounds = array<i64: 1, 128>}, {transform_indices = @transform_3, window_bounds = array<i64: 4, 8, 128>}, {transform_indices = @transform_4, window_bounds = array<i64: 1, 2, 128>}]} {
    %c0 = arith.constant 0 : index
    %c0_0 = arith.constant 0 : index
    %c0_1 = arith.constant 0 : index
    %0 = vector.load %arg1[%c0, %c0_0, %c0_1] : memref<4x8x32xf32, #tpu.memory_space<vmem>>, vector<4x8x32xf32>
    %1 = vector.shape_cast %0 : vector<4x8x32xf32> to vector<32x32xf32>
    %2 = arith.truncf %1 : vector<32x32xf32> to vector<32x32xbf16>
    %c0_2 = arith.constant 0 : index
    %c0_3 = arith.constant 0 : index
    %3 = vector.load %arg2[%c0_2, %c0_3] : memref<32x128xbf16, #tpu.memory_space<vmem>>, vector<32x128xbf16>
    %cst = arith.constant dense<0.000000e+00> : vector<32x128xf32>
    %4 = tpu.matmul %2, %3, %cst {dimension_numbers = #tpu.dot_dimension_numbers<[1], [0], [0], [1], [0, 0, 1, 1], [], []>} : vector<32x32xbf16>, vector<32x128xbf16>, vector<32x128xf32> -> vector<32x128xf32>
    %c0_4 = arith.constant 0 : index
    %c0_5 = arith.constant 0 : index
    %5 = vector.load %arg3[%c0_4, %c0_5] : memref<1x128xf32, #tpu.memory_space<vmem>>, vector<1x128xf32>
    %6 = vector.broadcast %5 : vector<1x128xf32> to vector<32x128xf32>
    %7 = arith.addf %4, %6 : vector<32x128xf32>
    %8 = vector.shape_cast %7 : vector<32x128xf32> to vector<4x8x128xf32>
    %9 = arith.truncf %8 : vector<4x8x128xf32> to vector<4x8x128xbf16>
    %c0_6 = arith.constant 0 : index
    %c0_7 = arith.constant 0 : index
    %c0_8 = arith.constant 0 : index
    %10 = vector.load %arg4[%c0_6, %c0_7, %c0_8] : memref<4x8x128xbf16, #tpu.memory_space<vmem>>, vector<4x8x128xbf16>
    tpu.vector_store %arg4[%c0_6, %c0_7, %c0_8], %9 {strides = array<i32>} : memref<4x8x128xbf16, #tpu.memory_space<vmem>>, vector<4x8x128xbf16>,
    %cst_9 = arith.constant dense<0.000000e+00> : vector<128xf32>
    %11 = vector.multi_reduction <add>, %7, %cst_9 [0] : vector<32x128xf32> to vector<128xf32>
    %12 = vector.shape_cast %11 : vector<128xf32> to vector<1x128xf32>
    %13 = arith.mulf %7, %7 : vector<32x128xf32>
    %cst_10 = arith.constant dense<0.000000e+00> : vector<128xf32>
    %14 = vector.multi_reduction <add>, %13, %cst_10 [0] : vector<32x128xf32> to vector<128xf32>
    %15 = vector.shape_cast %14 : vector<128xf32> to vector<1x128xf32>
    %16 = tpu.concatenate %12, %15 in 0 : vector<1x128xf32>, vector<1x128xf32> -> vector<2x128xf32>
    %17 = vector.shape_cast %16 : vector<2x128xf32> to vector<1x2x128xf32>
    %c0_11 = arith.constant 0 : index
    %c0_12 = arith.constant 0 : index
    %c0_13 = arith.constant 0 : index
    %18 = vector.load %arg5[%c0_11, %c0_12, %c0_13] : memref<1x2x128xf32, #tpu.memory_space<vmem>>, vector<1x2x128xf32>
    tpu.vector_store %arg5[%c0_11, %c0_12, %c0_13], %17 {strides = array<i32>} : memref<1x2x128xf32, #tpu.memory_space<vmem>>, vector<1x2x128xf32>,
    return
  }
  func.func @transform_0(%arg0: i32) -> (i32, i32, i32) {
    %c0_i32 = arith.constant 0 : i32
    %c0_i32_0 = arith.constant 0 : i32
    %c0_i32_1 = arith.constant 0 : i32
    return %c0_i32, %arg0, %c0_i32_0 : i32, i32, i32
  }
  func.func @transform_1(%arg0: i32) -> (i32, i32) {
    %c0_i32 = arith.constant 0 : i32
    %c0_i32_0 = arith.constant 0 : i32
    %c0_i32_1 = arith.constant 0 : i32
    return %c0_i32, %c0_i32_0 : i32, i32
  }
  func.func @transform_2(%arg0: i32) -> (i32, i32) {
    %c0_i32 = arith.constant 0 : i32
    %c0_i32_0 = arith.constant 0 : i32
    %c0_i32_1 = arith.constant 0 : i32
    return %c0_i32, %c0_i32_0 : i32, i32
  }
  func.func @transform_3(%arg0: i32) -> (i32, i32, i32) {
    %c0_i32 = arith.constant 0 : i32
    %c0_i32_0 = arith.constant 0 : i32
    %c0_i32_1 = arith.constant 0 : i32
    return %c0_i32, %arg0, %c0_i32_0 : i32, i32, i32
  }
  func.func @transform_4(%arg0: i32) -> (i32, i32, i32) {
    %c0_i32 = arith.constant 0 : i32
    %c0_i32_0 = arith.constant 0 : i32
    %c0_i32_1 = arith.constant 0 : i32
    return %arg0, %c0_i32, %c0_i32_0 : i32, i32, i32
  }
}

module attributes {stable_mosaic.version = 11 : i64} {
  func.func @_linear_stats_kernel(%arg0: i32, %arg1: memref<4x8x128xbf16, #tpu.memory_space<vmem>>, %arg2: memref<1x1x128xf32, #tpu.memory_space<vmem>>, %arg3: memref<1x1x128xf32, #tpu.memory_space<vmem>>, %arg4: memref<128x32xbf16, #tpu.memory_space<vmem>>, %arg5: memref<1x32xf32, #tpu.memory_space<vmem>>, %arg6: memref<4x8x32xbf16, #tpu.memory_space<vmem>>, %arg7: memref<1x2x32xf32, #tpu.memory_space<vmem>>) attributes {dimension_semantics = [#tpu.dimension_semantics<parallel>], iteration_bounds = array<i64: 2>, scalar_prefetch = 0 : i64, scratch_operands = 0 : i64, tpu.core_type = #tpu.core_type<tc>, window_params = [{transform_indices = @transform_0, window_bounds = array<i64: 4, 8, 128>}, {pipeline_mode = #tpu.pipeline_mode<synchronous>, transform_indices = @transform_1, window_bounds = array<i64: 1, 1, 128>}, {pipeline_mode = #tpu.pipeline_mode<synchronous>, transform_indices = @transform_2, window_bounds = array<i64: 1, 1, 128>}, {pipeline_mode = #tpu.pipeline_mode<synchronous>, transform_indices = @transform_3, window_bounds = array<i64: 128, 32>}, {pipeline_mode = #tpu.pipeline_mode<synchronous>, transform_indices = @transform_4, window_bounds = array<i64: 1, 32>}, {transform_indices = @transform_5, window_bounds = array<i64: 4, 8, 32>}, {transform_indices = @transform_6, window_bounds = array<i64: 1, 2, 32>}]} {
    %c0 = arith.constant 0 : index
    %c0_0 = arith.constant 0 : index
    %c0_1 = arith.constant 0 : index
    %0 = vector.load %arg1[%c0, %c0_0, %c0_1] : memref<4x8x128xbf16, #tpu.memory_space<vmem>>, vector<4x8x128xbf16>
    %1 = arith.extf %0 : vector<4x8x128xbf16> to vector<4x8x128xf32>
    %c0_2 = arith.constant 0 : index
    %c0_3 = arith.constant 0 : index
    %c0_4 = arith.constant 0 : index
    %2 = vector.load %arg2[%c0_2, %c0_3, %c0_4] : memref<1x1x128xf32, #tpu.memory_space<vmem>>, vector<1x1x128xf32>
    %3 = vector.broadcast %2 : vector<1x1x128xf32> to vector<4x8x128xf32>
    %4 = arith.mulf %1, %3 : vector<4x8x128xf32>
    %c0_5 = arith.constant 0 : index
    %c0_6 = arith.constant 0 : index
    %c0_7 = arith.constant 0 : index
    %5 = vector.load %arg3[%c0_5, %c0_6, %c0_7] : memref<1x1x128xf32, #tpu.memory_space<vmem>>, vector<1x1x128xf32>
    %6 = vector.broadcast %5 : vector<1x1x128xf32> to vector<4x8x128xf32>
    %7 = arith.addf %4, %6 : vector<4x8x128xf32>
    %cst = arith.constant 0.000000e+00 : f32
    %8 = vector.broadcast %cst : f32 to vector<8x128xf32>
    %9 = vector.extract_strided_slice %7 {offsets = [0, 0, 0], sizes = [1, 8, 128], strides = [1, 1, 1]} : vector<4x8x128xf32> to vector<1x8x128xf32>
    %10 = vector.shape_cast %9 : vector<1x8x128xf32> to vector<8x128xf32>
    %11 = arith.subf %10, %8 : vector<8x128xf32>
    %cst_8 = arith.constant 5.000000e-01 : f32
    %12 = vector.broadcast %cst_8 : f32 to vector<8x128xf32>
    %13 = arith.mulf %11, %12 : vector<8x128xf32>
    %14 = arith.addf %8, %13 : vector<8x128xf32>
    %cst_9 = arith.constant 5.000000e-01 : f32
    %15 = vector.broadcast %cst_9 : f32 to vector<8x128xf32>
    %16 = arith.cmpf ogt, %14, %15 : vector<8x128xf32>
    %cst_10 = arith.constant 1.000000e+00 : f32
    %cst_11 = arith.constant 0.000000e+00 : f32
    %17 = vector.broadcast %cst_10 : f32 to vector<8x128xf32>
    %18 = vector.broadcast %cst_11 : f32 to vector<8x128xf32>
    %19 = arith.select %16, %17, %18 : vector<8x128xi1>, vector<8x128xf32>
    %cst_12 = arith.constant 0.000000e+00 : f32
    %20 = vector.broadcast %cst_12 : f32 to vector<8x128xf32>
    %21 = arith.select %16, %20, %14 : vector<8x128xi1>, vector<8x128xf32>
    %22 = vector.extract_strided_slice %7 {offsets = [1, 0, 0], sizes = [1, 8, 128], strides = [1, 1, 1]} : vector<4x8x128xf32> to vector<1x8x128xf32>
    %23 = vector.shape_cast %22 : vector<1x8x128xf32> to vector<8x128xf32>
    %24 = arith.subf %23, %21 : vector<8x128xf32>
    %cst_13 = arith.constant 5.000000e-01 : f32
    %25 = vector.broadcast %cst_13 : f32 to vector<8x128xf32>
    %26 = arith.mulf %24, %25 : vector<8x128xf32>
    %27 = arith.addf %21, %26 : vector<8x128xf32>
    %cst_14 = arith.constant 5.000000e-01 : f32
    %28 = vector.broadcast %cst_14 : f32 to vector<8x128xf32>
    %29 = arith.cmpf ogt, %27, %28 : vector<8x128xf32>
    %cst_15 = arith.constant 1.000000e+00 : f32
    %cst_16 = arith.constant 0.000000e+00 : f32
    %30 = vector.broadcast %cst_15 : f32 to vector<8x128xf32>
    %31 = vector.broadcast %cst_16 : f32 to vector<8x128xf32>
    %32 = arith.select %29, %30, %31 : vector<8x128xi1>, vector<8x128xf32>
    %cst_17 = arith.constant 0.000000e+00 : f32
    %33 = vector.broadcast %cst_17 : f32 to vector<8x128xf32>
    %34 = arith.select %29, %33, %27 : vector<8x128xi1>, vector<8x128xf32>
    %35 = vector.extract_strided_slice %7 {offsets = [2, 0, 0], sizes = [1, 8, 128], strides = [1, 1, 1]} : vector<4x8x128xf32> to vector<1x8x128xf32>
    %36 = vector.shape_cast %35 : vector<1x8x128xf32> to vector<8x128xf32>
    %37 = arith.subf %36, %34 : vector<8x128xf32>
    %cst_18 = arith.constant 5.000000e-01 : f32
    %38 = vector.broadcast %cst_18 : f32 to vector<8x128xf32>
    %39 = arith.mulf %37, %38 : vector<8x128xf32>
    %40 = arith.addf %34, %39 : vector<8x128xf32>
    %cst_19 = arith.constant 5.000000e-01 : f32
    %41 = vector.broadcast %cst_19 : f32 to vector<8x128xf32>
    %42 = arith.cmpf ogt, %40, %41 : vector<8x128xf32>
    %cst_20 = arith.constant 1.000000e+00 : f32
    %cst_21 = arith.constant 0.000000e+00 : f32
    %43 = vector.broadcast %cst_20 : f32 to vector<8x128xf32>
    %44 = vector.broadcast %cst_21 : f32 to vector<8x128xf32>
    %45 = arith.select %42, %43, %44 : vector<8x128xi1>, vector<8x128xf32>
    %cst_22 = arith.constant 0.000000e+00 : f32
    %46 = vector.broadcast %cst_22 : f32 to vector<8x128xf32>
    %47 = arith.select %42, %46, %40 : vector<8x128xi1>, vector<8x128xf32>
    %48 = vector.extract_strided_slice %7 {offsets = [3, 0, 0], sizes = [1, 8, 128], strides = [1, 1, 1]} : vector<4x8x128xf32> to vector<1x8x128xf32>
    %49 = vector.shape_cast %48 : vector<1x8x128xf32> to vector<8x128xf32>
    %50 = arith.subf %49, %47 : vector<8x128xf32>
    %cst_23 = arith.constant 5.000000e-01 : f32
    %51 = vector.broadcast %cst_23 : f32 to vector<8x128xf32>
    %52 = arith.mulf %50, %51 : vector<8x128xf32>
    %53 = arith.addf %47, %52 : vector<8x128xf32>
    %cst_24 = arith.constant 5.000000e-01 : f32
    %54 = vector.broadcast %cst_24 : f32 to vector<8x128xf32>
    %55 = arith.cmpf ogt, %53, %54 : vector<8x128xf32>
    %cst_25 = arith.constant 1.000000e+00 : f32
    %cst_26 = arith.constant 0.000000e+00 : f32
    %56 = vector.broadcast %cst_25 : f32 to vector<8x128xf32>
    %57 = vector.broadcast %cst_26 : f32 to vector<8x128xf32>
    %58 = arith.select %55, %56, %57 : vector<8x128xi1>, vector<8x128xf32>
    %59 = vector.shape_cast %19 : vector<8x128xf32> to vector<1x8x128xf32>
    %60 = vector.shape_cast %32 : vector<8x128xf32> to vector<1x8x128xf32>
    %61 = vector.shape_cast %45 : vector<8x128xf32> to vector<1x8x128xf32>
    %62 = vector.shape_cast %58 : vector<8x128xf32> to vector<1x8x128xf32>
    %63 = tpu.concatenate %59, %60, %61, %62 in 0 : vector<1x8x128xf32>, vector<1x8x128xf32>, vector<1x8x128xf32>, vector<1x8x128xf32> -> vector<4x8x128xf32>
    %64 = vector.shape_cast %63 : vector<4x8x128xf32> to vector<32x128xf32>
    %65 = arith.truncf %64 : vector<32x128xf32> to vector<32x128xbf16>
    %c0_27 = arith.constant 0 : index
    %c0_28 = arith.constant 0 : index
    %66 = vector.load %arg4[%c0_27, %c0_28] : memref<128x32xbf16, #tpu.memory_space<vmem>>, vector<128x32xbf16>
    %cst_29 = arith.constant dense<0.000000e+00> : vector<32x32xf32>
    %67 = tpu.matmul %65, %66, %cst_29 {dimension_numbers = #tpu.dot_dimension_numbers<[1], [0], [0], [1], [0, 0, 1, 1], [], []>} : vector<32x128xbf16>, vector<128x32xbf16>, vector<32x32xf32> -> vector<32x32xf32>
    %c0_30 = arith.constant 0 : index
    %c0_31 = arith.constant 0 : index
    %68 = vector.load %arg5[%c0_30, %c0_31] : memref<1x32xf32, #tpu.memory_space<vmem>>, vector<1x32xf32>
    %69 = vector.broadcast %68 : vector<1x32xf32> to vector<32x32xf32>
    %70 = arith.addf %67, %69 : vector<32x32xf32>
    %71 = vector.shape_cast %70 : vector<32x32xf32> to vector<4x8x32xf32>
    %72 = arith.truncf %71 : vector<4x8x32xf32> to vector<4x8x32xbf16>
    %c0_32 = arith.constant 0 : index
    %c0_33 = arith.constant 0 : index
    %c0_34 = arith.constant 0 : index
    %73 = vector.load %arg6[%c0_32, %c0_33, %c0_34] : memref<4x8x32xbf16, #tpu.memory_space<vmem>>, vector<4x8x32xbf16>
    tpu.vector_store %arg6[%c0_32, %c0_33, %c0_34], %72 {strides = array<i32>} : memref<4x8x32xbf16, #tpu.memory_space<vmem>>, vector<4x8x32xbf16>,
    %cst_35 = arith.constant dense<0.000000e+00> : vector<32xf32>
    %74 = vector.multi_reduction <add>, %70, %cst_35 [0] : vector<32x32xf32> to vector<32xf32>
    %75 = vector.shape_cast %74 : vector<32xf32> to vector<1x32xf32>
    %76 = arith.mulf %70, %70 : vector<32x32xf32>
    %cst_36 = arith.constant dense<0.000000e+00> : vector<32xf32>
    %77 = vector.multi_reduction <add>, %76, %cst_36 [0] : vector<32x32xf32> to vector<32xf32>
    %78 = vector.shape_cast %77 : vector<32xf32> to vector<1x32xf32>
    %79 = tpu.concatenate %75, %78 in 0 : vector<1x32xf32>, vector<1x32xf32> -> vector<2x32xf32>
    %80 = vector.shape_cast %79 : vector<2x32xf32> to vector<1x2x32xf32>
    %c0_37 = arith.constant 0 : index
    %c0_38 = arith.constant 0 : index
    %c0_39 = arith.constant 0 : index
    %81 = vector.load %arg7[%c0_37, %c0_38, %c0_39] : memref<1x2x32xf32, #tpu.memory_space<vmem>>, vector<1x2x32xf32>
    tpu.vector_store %arg7[%c0_37, %c0_38, %c0_39], %80 {strides = array<i32>} : memref<1x2x32xf32, #tpu.memory_space<vmem>>, vector<1x2x32xf32>,
    return
  }
  func.func @transform_0(%arg0: i32) -> (i32, i32, i32) {
    %c0_i32 = arith.constant 0 : i32
    %c0_i32_0 = arith.constant 0 : i32
    %c0_i32_1 = arith.constant 0 : i32
    return %c0_i32, %arg0, %c0_i32_0 : i32, i32, i32
  }
  func.func @transform_1(%arg0: i32) -> (i32, i32, i32) {
    %c0_i32 = arith.constant 0 : i32
    %c0_i32_0 = arith.constant 0 : i32
    %c0_i32_1 = arith.constant 0 : i32
    %c0_i32_2 = arith.constant 0 : i32
    return %c0_i32, %c0_i32_0, %c0_i32_1 : i32, i32, i32
  }
  func.func @transform_2(%arg0: i32) -> (i32, i32, i32) {
    %c0_i32 = arith.constant 0 : i32
    %c0_i32_0 = arith.constant 0 : i32
    %c0_i32_1 = arith.constant 0 : i32
    %c0_i32_2 = arith.constant 0 : i32
    return %c0_i32, %c0_i32_0, %c0_i32_1 : i32, i32, i32
  }
  func.func @transform_3(%arg0: i32) -> (i32, i32) {
    %c0_i32 = arith.constant 0 : i32
    %c0_i32_0 = arith.constant 0 : i32
    %c0_i32_1 = arith.constant 0 : i32
    return %c0_i32, %c0_i32_0 : i32, i32
  }
  func.func @transform_4(%arg0: i32) -> (i32, i32) {
    %c0_i32 = arith.constant 0 : i32
    %c0_i32_0 = arith.constant 0 : i32
    %c0_i32_1 = arith.constant 0 : i32
    return %c0_i32, %c0_i32_0 : i32, i32
  }
  func.func @transform_5(%arg0: i32) -> (i32, i32, i32) {
    %c0_i32 = arith.constant 0 : i32
    %c0_i32_0 = arith.constant 0 : i32
    %c0_i32_1 = arith.constant 0 : i32
    return %c0_i32, %arg0, %c0_i32_0 : i32, i32, i32
  }
  func.func @transform_6(%arg0: i32) -> (i32, i32, i32) {
    %c0_i32 = arith.constant 0 : i32
    %c0_i32_0 = arith.constant 0 : i32
    %c0_i32_1 = arith.constant 0 : i32
    return %arg0, %c0_i32, %c0_i32_0 : i32, i32, i32
  }
}

module attributes {stable_mosaic.version = 11 : i64} {
  func.func @_bn_lif_kernel(%arg0: i32, %arg1: memref<4x8x32xbf16, #tpu.memory_space<vmem>>, %arg2: memref<1x1x32xf32, #tpu.memory_space<vmem>>, %arg3: memref<1x1x32xf32, #tpu.memory_space<vmem>>, %arg4: memref<4x8x32xf32, #tpu.memory_space<vmem>>, %arg5: memref<4x8x32xf32, #tpu.memory_space<vmem>>) attributes {dimension_semantics = [#tpu.dimension_semantics<parallel>], iteration_bounds = array<i64: 2>, scalar_prefetch = 0 : i64, scratch_operands = 0 : i64, tpu.core_type = #tpu.core_type<tc>, window_params = [{transform_indices = @transform_0, window_bounds = array<i64: 4, 8, 32>}, {pipeline_mode = #tpu.pipeline_mode<synchronous>, transform_indices = @transform_1, window_bounds = array<i64: 1, 1, 32>}, {pipeline_mode = #tpu.pipeline_mode<synchronous>, transform_indices = @transform_2, window_bounds = array<i64: 1, 1, 32>}, {transform_indices = @transform_3, window_bounds = array<i64: 4, 8, 32>}, {transform_indices = @transform_4, window_bounds = array<i64: 4, 8, 32>}]} {
    %c0 = arith.constant 0 : index
    %c0_0 = arith.constant 0 : index
    %c0_1 = arith.constant 0 : index
    %0 = vector.load %arg1[%c0, %c0_0, %c0_1] : memref<4x8x32xbf16, #tpu.memory_space<vmem>>, vector<4x8x32xbf16>
    %1 = arith.extf %0 : vector<4x8x32xbf16> to vector<4x8x32xf32>
    %c0_2 = arith.constant 0 : index
    %c0_3 = arith.constant 0 : index
    %c0_4 = arith.constant 0 : index
    %2 = vector.load %arg2[%c0_2, %c0_3, %c0_4] : memref<1x1x32xf32, #tpu.memory_space<vmem>>, vector<1x1x32xf32>
    %3 = vector.broadcast %2 : vector<1x1x32xf32> to vector<4x8x32xf32>
    %4 = arith.mulf %1, %3 : vector<4x8x32xf32>
    %c0_5 = arith.constant 0 : index
    %c0_6 = arith.constant 0 : index
    %c0_7 = arith.constant 0 : index
    %5 = vector.load %arg3[%c0_5, %c0_6, %c0_7] : memref<1x1x32xf32, #tpu.memory_space<vmem>>, vector<1x1x32xf32>
    %6 = vector.broadcast %5 : vector<1x1x32xf32> to vector<4x8x32xf32>
    %7 = arith.addf %4, %6 : vector<4x8x32xf32>
    %cst = arith.constant 0.000000e+00 : f32
    %8 = vector.broadcast %cst : f32 to vector<8x32xf32>
    %9 = vector.extract_strided_slice %7 {offsets = [0, 0, 0], sizes = [1, 8, 32], strides = [1, 1, 1]} : vector<4x8x32xf32> to vector<1x8x32xf32>
    %10 = vector.shape_cast %9 : vector<1x8x32xf32> to vector<8x32xf32>
    %11 = arith.subf %10, %8 : vector<8x32xf32>
    %cst_8 = arith.constant 5.000000e-01 : f32
    %12 = vector.broadcast %cst_8 : f32 to vector<8x32xf32>
    %13 = arith.mulf %11, %12 : vector<8x32xf32>
    %14 = arith.addf %8, %13 : vector<8x32xf32>
    %cst_9 = arith.constant 5.000000e-01 : f32
    %15 = vector.broadcast %cst_9 : f32 to vector<8x32xf32>
    %16 = arith.cmpf ogt, %14, %15 : vector<8x32xf32>
    %cst_10 = arith.constant 1.000000e+00 : f32
    %cst_11 = arith.constant 0.000000e+00 : f32
    %17 = vector.broadcast %cst_10 : f32 to vector<8x32xf32>
    %18 = vector.broadcast %cst_11 : f32 to vector<8x32xf32>
    %19 = arith.select %16, %17, %18 : vector<8x32xi1>, vector<8x32xf32>
    %cst_12 = arith.constant 0.000000e+00 : f32
    %20 = vector.broadcast %cst_12 : f32 to vector<8x32xf32>
    %21 = arith.select %16, %20, %14 : vector<8x32xi1>, vector<8x32xf32>
    %22 = vector.extract_strided_slice %7 {offsets = [1, 0, 0], sizes = [1, 8, 32], strides = [1, 1, 1]} : vector<4x8x32xf32> to vector<1x8x32xf32>
    %23 = vector.shape_cast %22 : vector<1x8x32xf32> to vector<8x32xf32>
    %24 = arith.subf %23, %21 : vector<8x32xf32>
    %cst_13 = arith.constant 5.000000e-01 : f32
    %25 = vector.broadcast %cst_13 : f32 to vector<8x32xf32>
    %26 = arith.mulf %24, %25 : vector<8x32xf32>
    %27 = arith.addf %21, %26 : vector<8x32xf32>
    %cst_14 = arith.constant 5.000000e-01 : f32
    %28 = vector.broadcast %cst_14 : f32 to vector<8x32xf32>
    %29 = arith.cmpf ogt, %27, %28 : vector<8x32xf32>
    %cst_15 = arith.constant 1.000000e+00 : f32
    %cst_16 = arith.constant 0.000000e+00 : f32
    %30 = vector.broadcast %cst_15 : f32 to vector<8x32xf32>
    %31 = vector.broadcast %cst_16 : f32 to vector<8x32xf32>
    %32 = arith.select %29, %30, %31 : vector<8x32xi1>, vector<8x32xf32>
    %cst_17 = arith.constant 0.000000e+00 : f32
    %33 = vector.broadcast %cst_17 : f32 to vector<8x32xf32>
    %34 = arith.select %29, %33, %27 : vector<8x32xi1>, vector<8x32xf32>
    %35 = vector.extract_strided_slice %7 {offsets = [2, 0, 0], sizes = [1, 8, 32], strides = [1, 1, 1]} : vector<4x8x32xf32> to vector<1x8x32xf32>
    %36 = vector.shape_cast %35 : vector<1x8x32xf32> to vector<8x32xf32>
    %37 = arith.subf %36, %34 : vector<8x32xf32>
    %cst_18 = arith.constant 5.000000e-01 : f32
    %38 = vector.broadcast %cst_18 : f32 to vector<8x32xf32>
    %39 = arith.mulf %37, %38 : vector<8x32xf32>
    %40 = arith.addf %34, %39 : vector<8x32xf32>
    %cst_19 = arith.constant 5.000000e-01 : f32
    %41 = vector.broadcast %cst_19 : f32 to vector<8x32xf32>
    %42 = arith.cmpf ogt, %40, %41 : vector<8x32xf32>
    %cst_20 = arith.constant 1.000000e+00 : f32
    %cst_21 = arith.constant 0.000000e+00 : f32
    %43 = vector.broadcast %cst_20 : f32 to vector<8x32xf32>
    %44 = vector.broadcast %cst_21 : f32 to vector<8x32xf32>
    %45 = arith.select %42, %43, %44 : vector<8x32xi1>, vector<8x32xf32>
    %cst_22 = arith.constant 0.000000e+00 : f32
    %46 = vector.broadcast %cst_22 : f32 to vector<8x32xf32>
    %47 = arith.select %42, %46, %40 : vector<8x32xi1>, vector<8x32xf32>
    %48 = vector.extract_strided_slice %7 {offsets = [3, 0, 0], sizes = [1, 8, 32], strides = [1, 1, 1]} : vector<4x8x32xf32> to vector<1x8x32xf32>
    %49 = vector.shape_cast %48 : vector<1x8x32xf32> to vector<8x32xf32>
    %50 = arith.subf %49, %47 : vector<8x32xf32>
    %cst_23 = arith.constant 5.000000e-01 : f32
    %51 = vector.broadcast %cst_23 : f32 to vector<8x32xf32>
    %52 = arith.mulf %50, %51 : vector<8x32xf32>
    %53 = arith.addf %47, %52 : vector<8x32xf32>
    %cst_24 = arith.constant 5.000000e-01 : f32
    %54 = vector.broadcast %cst_24 : f32 to vector<8x32xf32>
    %55 = arith.cmpf ogt, %53, %54 : vector<8x32xf32>
    %cst_25 = arith.constant 1.000000e+00 : f32
    %cst_26 = arith.constant 0.000000e+00 : f32
    %56 = vector.broadcast %cst_25 : f32 to vector<8x32xf32>
    %57 = vector.broadcast %cst_26 : f32 to vector<8x32xf32>
    %58 = arith.select %55, %56, %57 : vector<8x32xi1>, vector<8x32xf32>
    %59 = vector.shape_cast %19 : vector<8x32xf32> to vector<1x8x32xf32>
    %60 = vector.shape_cast %32 : vector<8x32xf32> to vector<1x8x32xf32>
    %61 = vector.shape_cast %45 : vector<8x32xf32> to vector<1x8x32xf32>
    %62 = vector.shape_cast %58 : vector<8x32xf32> to vector<1x8x32xf32>
    %63 = tpu.concatenate %59, %60, %61, %62 in 0 : vector<1x8x32xf32>, vector<1x8x32xf32>, vector<1x8x32xf32>, vector<1x8x32xf32> -> vector<4x8x32xf32>
    %c0_27 = arith.constant 0 : index
    %c0_28 = arith.constant 0 : index
    %c0_29 = arith.constant 0 : index
    %64 = vector.load %arg4[%c0_27, %c0_28, %c0_29] : memref<4x8x32xf32, #tpu.memory_space<vmem>>, vector<4x8x32xf32>
    %65 = arith.addf %63, %64 : vector<4x8x32xf32>
    %c0_30 = arith.constant 0 : index
    %c0_31 = arith.constant 0 : index
    %c0_32 = arith.constant 0 : index
    %66 = vector.load %arg5[%c0_30, %c0_31, %c0_32] : memref<4x8x32xf32, #tpu.memory_space<vmem>>, vector<4x8x32xf32>
    tpu.vector_store %arg5[%c0_30, %c0_31, %c0_32], %65 {strides = array<i32>} : memref<4x8x32xf32, #tpu.memory_space<vmem>>, vector<4x8x32xf32>,
    return
  }
  func.func @transform_0(%arg0: i32) -> (i32, i32, i32) {
    %c0_i32 = arith.constant 0 : i32
    %c0_i32_0 = arith.constant 0 : i32
    %c0_i32_1 = arith.constant 0 : i32
    return %c0_i32, %arg0, %c0_i32_0 : i32, i32, i32
  }
  func.func @transform_1(%arg0: i32) -> (i32, i32, i32) {
    %c0_i32 = arith.constant 0 : i32
    %c0_i32_0 = arith.constant 0 : i32
    %c0_i32_1 = arith.constant 0 : i32
    %c0_i32_2 = arith.constant 0 : i32
    return %c0_i32, %c0_i32_0, %c0_i32_1 : i32, i32, i32
  }
  func.func @transform_2(%arg0: i32) -> (i32, i32, i32) {
    %c0_i32 = arith.constant 0 : i32
    %c0_i32_0 = arith.constant 0 : i32
    %c0_i32_1 = arith.constant 0 : i32
    %c0_i32_2 = arith.constant 0 : i32
    return %c0_i32, %c0_i32_0, %c0_i32_1 : i32, i32, i32
  }
  func.func @transform_3(%arg0: i32) -> (i32, i32, i32) {
    %c0_i32 = arith.constant 0 : i32
    %c0_i32_0 = arith.constant 0 : i32
    %c0_i32_1 = arith.constant 0 : i32
    return %c0_i32, %arg0, %c0_i32_0 : i32, i32, i32
  }
  func.func @transform_4(%arg0: i32) -> (i32, i32, i32) {
    %c0_i32 = arith.constant 0 : i32
    %c0_i32_0 = arith.constant 0 : i32
    %c0_i32_1 = arith.constant 0 : i32
    return %c0_i32, %arg0, %c0_i32_0 : i32, i32, i32
  }
}

</mosaic_0001>

<bundles_post_ra>
// kernel: spikf_block_forward.9
= control target key start
LH: loop header
LB: loop body
LE: loop exit
PB: predicated region body
PF: predicated region fallthrough
CT: control target
= control target key end

     0   :  { %s487_s12 = smov 0   ;;  %s489_s13 = smov 0   ;;  %s567_s0 = inlined_call_operand.vmem [shape: bf16[4,16,96], index: 0, kind: input, shape index: {}]   ;;  %s568_s1 = inlined_call_operand.vmem [shape: f32[1,1,96], index: 1, kind: input, shape index: {}]   ;;  %s569_s2 = inlined_call_operand.vmem [shape: f32[1,1,96], index: 2, kind: input, shape index: {}]   ;;  %s570_s3 = inlined_call_operand.vmem [shape: bf16[4,16,96], index: 3, kind: output, shape index: {}]  }
   0x1   :  { %s491_s14 = smov 0  }
   0x2 LB: > { %s393_s15 = sadd.s32 4294967295, %s464_s14   ;;  %s504_s16 = sadd.s32 1, %s464_s14   ;;  %s464_s14 = sphi %s491_s14, %s574_s14   ;;  %s460_s13 = sphi %s489_s13, %s573_s13   ;;  %s456_s12 = sphi %s487_s12, %s572_s12  }
   0x3   : > { %s17_s17 = ssub.s32 %s464_s14, %s504_s16  ;;  %s20_s18 = sadd.s32 1, %s460_s13 }
   0x4   : > { %p18_p0 = scmp.eq.s32.totalorder %s17_s17, 0  ;;  %p27_p1 = scmp.ne.s32.totalorder %s460_s13, %s456_s12 }
   0x5   : > { %p28_p2 = scmp.eq.s32.totalorder %s464_s14, 0  ;;  %p99_p3 = scmp.eq.s32.totalorder %s393_s15, 1 }
   0x6   : > { %s515_s19 = scalar_select %p18_p0, %s460_s13, %s20_s18  }
   0x7   : > { %p29_p4 = por %p28_p2, %p27_p1  ;;  %p517_p5 = por %p99_p3, %p27_p1 }
   0x8   : > { %p396_p6 = scmp.ge.s32.totalorder %s464_s14, 2 }
   0xa   : > { %127 = sbr.rel (%p396_p6) target bundleno = 23 (0x17), region = 24 }
   0xf   : > { %130 = sbr.rel (!%p29_p4) target bundleno = 23 (0x17), region = 28  ;;  %s132_s21 = sand.u32 (%p29_p4), 1, %s460_s13  }
  0x10   : > { %s398_s22 = sshll.u32 (%p29_p4), %s464_s14, 2  ;;  %s397_s23 = sshll.u32 (%p29_p4), %s132_s21, 4 }
  0x11   : > { %s136_s26 = scalar_lea.vmem (%p29_p4), %s567_s0, %s398_s22  ;;  %s134_s27 = scalar_lea.vmem (%p29_p4), [#allocation2], %s397_s23 }
  0x12   : > { %v153_v0 = vld [vmem:[%s136_s26] sm:$0xf] (%p29_p4)  ;;  %v155_v1 = vld [vmem:[%s136_s26 + $0x8] sm:$0xf] (%p29_p4)  ;;  %v157_v2 = vld [vmem:[%s136_s26 + $0x10] sm:$0xf] (%p29_p4) }
  0x13   : > { %154 = vst [vmem:[%s134_s27] sm:$0xf] (%p29_p4), %v153_v0  ;;  %v159_v3 = vld [vmem:[%s136_s26 + $0x18] sm:$0xf] (%p29_p4) }
  0x14   : > { %156 = vst [vmem:[%s134_s27 + $0x4] sm:$0xf] %v155_v1 }
  0x15   : > { %158 = vst [vmem:[%s134_s27 + $0x8] sm:$0xf] %v157_v2 }
  0x16   : > { %160 = vst [vmem:[%s134_s27 + $0xc] sm:$0xf] %v159_v3 }
  0x17 PF: > { %p399_p7 = scmp.ge.s32.totalorder %s464_s14, 1  ;;  %p191_p8 = scmp.lt.s32.totalorder %s464_s14, 3 }
  0x19   : > { %p192_p9 = pnand %p399_p7, %p191_p8 }
  0x1a   : > { %s198_s28 = sand.u32 (!%p192_p9), 1, %s456_s12  }
  0x1b   : > { %195 = sbr.rel (%p192_p9) target bundleno = 79 (0x4f), region = 69  ;;  %s400_s29 = sshll.u32 (!%p192_p9), %s198_s28, 4 }
  0x1c   : > { %s200_s5 = scalar_lea.vmem (!%p192_p9), [#allocation2], %s400_s29  ;;  %s536_s8 = scalar_lea.vmem (!%p192_p9), [#allocation3], %s400_s29 }
  0x20   : > { %v440_v4 = vld [vmem:[%s568_s1] ss:$0 sm:$0xff]  ;;  %v414_v11 = vld [vmem:[%s200_s5 + $0x8] sm:$0xff]   ;;  %v466_v16 = vmov 0.0   ;;  %vm270_vm1 = vcmask 781312   ;;  %s403_s9 = sshll.u32 (%p517_p5), %s393_s15, 2 }
  0x21   : > { %v407_v5 = vld [vmem:[%s200_s5] sm:$0xff]   ;;  %v412_v13 = vunpack.c.l.bf16 %v414_v11  ;;  %v413_v23 = vunpack.c.h.bf16 %v414_v11  ;;  %s283_s12 = scalar_lea.vmem (%p517_p5), %s570_s3, %s403_s9 }
  0x22   : > { %v408_v6 = vunpack.c.l.bf16 %v407_v5  ;;  %v409_v7 = vunpack.c.h.bf16 %v407_v5  ;;  %v441_v8 = vld [vmem:[%s569_s2] ss:$0 sm:$0xff] }
  0x23   : > { %v234_v19 = vmul.f32 %v440_v4, %v412_v13  ;;  %v235_v28 = vmul.f32 %v440_v4, %v413_v23 }
  0x24   : > { %v232_v9 = vmul.f32 %v440_v4, %v408_v6  ;;  %v233_v10 = vmul.f32 %v440_v4, %v409_v7 }
  0x25   : > { %v242_v24 = vadd.f32 %v441_v8, %v234_v19  ;;  %v243_v32 = vadd.f32 %v441_v8, %v235_v28 }
  0x26   : > { %v240_v12 = vadd.f32 %v441_v8, %v232_v9  ;;  %v241_v14 = vadd.f32 %v441_v8, %v233_v10 }
  0x28   : > { %v244_v15 = vmul.f32 0.5, %v240_v12 }
  0x2a   : > { %vm246_vm0 = vcmp.gt.f32.partialorder %v244_v15, 0.5 }
  0x2b   : > { %v247_v17 = vsel %vm246_vm0, 1.0, %v466_v16  ;;  %v248_v18 = vsel %vm246_vm0, 0.0, %v244_v15 }
  0x2c   : > { %v249_v20 = vsub.f32 %v241_v14, %v248_v18  ;;  %v266_v21 = vpack.c.bf16 %v247_v17, %v247_v17 }
  0x2e   : > { %v250_v22 = vmul.f32 0.5, %v249_v20  ;;  %271 = vst.msk [vmem:[%s536_s8] sm:$0xf] %vm270_vm1, %v266_v21 }
  0x30   : > { %v251_v25 = vadd.f32 %v250_v22, %v248_v18 }
  0x32   : > { %vm252_vm2 = vcmp.gt.f32.partialorder %v251_v25, 0.5 }
  0x33   : > { %v253_v26 = vsel %vm252_vm2, 1.0, %v466_v16  ;;  %v254_v27 = vsel %vm252_vm2, 0.0, %v251_v25 }
  0x34   : > { %v255_v29 = vsub.f32 %v242_v24, %v254_v27  ;;  %v267_v30 = vpack.c.bf16 %v253_v26, %v253_v26 }
  0x35   : > { %v300_v42 = vld [vmem:[%s536_s8] sm:$0xf] (%p517_p5) }
  0x36   : > { %v256_v31 = vmul.f32 0.5, %v255_v29  ;;  %272 = vst.msk [vmem:[%s536_s8 + $0x4] sm:$0xf] %vm270_vm1, %v267_v30 }
  0x37   : > { %301 = vst [vmem:[%s283_s12] sm:$0xf] (%p517_p5), %v300_v42 }
  0x38   : > { %v257_v33 = vadd.f32 %v256_v31, %v254_v27 }
  0x3a   : > { %vm258_vm3 = vcmp.gt.f32.partialorder %v257_v33, 0.5 }
  0x3b   : > { %v259_v34 = vsel %vm258_vm3, 1.0, %v466_v16  ;;  %v260_v35 = vsel %vm258_vm3, 0.0, %v257_v33 }
  0x3c   : > { %v261_v36 = vsub.f32 %v243_v32, %v260_v35  ;;  %v268_v37 = vpack.c.bf16 %v259_v34, %v259_v34 }
  0x3d   : > { %v302_v43 = vld [vmem:[%s536_s8 + $0x4] sm:$0xf] (%p517_p5) }
  0x3e   : > { %273 = vst.msk [vmem:[%s536_s8 + $0x8] sm:$0xf] %vm270_vm1, %v268_v37  ;;  %v262_v38 = vmul.f32 0.5, %v261_v36 }
  0x3f   : > { %303 = vst [vmem:[%s283_s12 + $0x8] sm:$0xf] (%p517_p5), %v302_v43 }
  0x40   : > { %v263_v39 = vadd.f32 %v262_v38, %v260_v35 }
  0x42   : > { %vm264_vm4 = vcmp.gt.f32.partialorder %v263_v39, 0.5  ;;  %281 = sbr.rel (!%p517_p5) target bundleno = 79 (0x4f), region = 77 }
  0x43   : > { %v265_v40 = vsel %vm264_vm4, 1.0, %v466_v16 }
  0x44   : > { %v269_v41 = vpack.c.bf16 %v265_v40, %v265_v40 }
  0x45   : > { %v304_v44 = vld [vmem:[%s536_s8 + $0x8] sm:$0xf] (%p517_p5) }
  0x46   : > { %274 = vst.msk [vmem:[%s536_s8 + $0xc] sm:$0xf] %vm270_vm1, %v269_v41 }
  0x47   : > { %305 = vst [vmem:[%s283_s12 + $0x10] sm:$0xf] %v304_v44 }
  0x4d   : > { %v306_v45 = vld [vmem:[%s536_s8 + $0xc] sm:$0xf] }
  0x4e   : > { %307 = vst [vmem:[%s283_s12 + $0x18] sm:$0xf] %v306_v45 }
  0x4f PF: > { %p10_p10 = scmp.ge.s32.totalorder %s504_s16, 4   ;;  %s572_s12 = smov %s460_s13 }
  0x50   : > { %s573_s13 = smov %s515_s19  ;;  %s574_s14 = smov %s504_s16 }
  0x51   :  { %12 = sbr.rel (!%p10_p10) target bundleno = 2 (0x2), region = 149 }

// kernel: spikf_block_forward.8
= control target key start
LH: loop header
LB: loop body
LE: loop exit
PB: predicated region body
PF: predicated region fallthrough
CT: control target
= control target key end

     0   :  { %s598_s15 = smov 0   ;;  %s600_s16 = smov 0   ;;  %s694_s0 = inlined_call_operand.vmem [shape: f32[4,16,32], index: 0, kind: input, shape index: {}]   ;;  %s695_s1 = inlined_call_operand.vmem [shape: bf16[32,96], index: 1, kind: input, shape index: {}]   ;;  %s696_s2 = inlined_call_operand.vmem [shape: f32[1,96], index: 2, kind: input, shape index: {}]   ;;  %s697_s3 = inlined_call_operand.vmem [shape: bf16[4,16,96], index: 3, kind: output, shape index: {0}]   ;;  %s698_s4 = inlined_call_operand.vmem [shape: f32[2,2,96], index: 4, kind: output, shape index: {1}]  }
   0x1   :  { %s602_s17 = smov 0  }
   0x2 LB: > { %s614_s18 = sadd.s32 4294967295, %s571_s17   ;;  %s617_s19 = sadd.s32 1, %s571_s17   ;;  %s571_s17 = sphi %s602_s17, %s702_s17   ;;  %s567_s16 = sphi %s600_s16, %s701_s16   ;;  %s563_s15 = sphi %s598_s15, %s700_s15  }
   0x3   : > { %s19_s20 = ssub.s32 %s571_s17, %s617_s19  ;;  %s22_s21 = sadd.s32 1, %s567_s16 }
   0x4   : > { %p20_p0 = scmp.eq.s32.totalorder %s19_s20, 0  ;;  %p29_p1 = scmp.ne.s32.totalorder %s567_s16, %s563_s15 }
   0x5   : > { %p30_p2 = scmp.eq.s32.totalorder %s571_s17, 0  ;;  %p101_p3 = scmp.eq.s32.totalorder %s614_s18, 1 }
   0x6   : > { %s627_s22 = scalar_select %p20_p0, %s567_s16, %s22_s21  }
   0x7   : > { %p31_p4 = por %p30_p2, %p29_p1  ;;  %p629_p5 = por %p101_p3, %p29_p1 }
   0x8   : > { %p499_p6 = scmp.ge.s32.totalorder %s571_s17, 2 }
   0xa   : > { %155 = sbr.rel (%p499_p6) target bundleno = 23 (0x17), region = 24 }
   0xf   : > { %158 = sbr.rel (!%p31_p4) target bundleno = 23 (0x17), region = 28  ;;  %s160_s24 = sand.u32 (%p31_p4), 1, %s567_s16  }
  0x10   : > { %s501_s25 = sshll.u32 (%p31_p4), %s571_s17, 3  ;;  %s500_s26 = sshll.u32 (%p31_p4), %s160_s24, 5 }
  0x11   : > { %s164_s29 = scalar_lea.vmem (%p31_p4), %s694_s0, %s501_s25  ;;  %s162_s30 = scalar_lea.vmem (%p31_p4), [#allocation2], %s500_s26 }
  0x12   : > { %v199_v0 = vld [vmem:[%s164_s29] sm:$0xff] (%p31_p4)  ;;  %v201_v1 = vld [vmem:[%s164_s29 + $0x10] sm:$0xff] (%p31_p4) }
  0x13   : > { %v203_v2 = vld [vmem:[%s164_s29 + $0x20] sm:$0xff] (%p31_p4)  ;;  %200 = vst [vmem:[%s162_s30] sm:$0xff] (%p31_p4), %v199_v0  ;;  %v205_v3 = vld [vmem:[%s164_s29 + $0x30] sm:$0xff] (%p31_p4) }
  0x14   : > { %202 = vst [vmem:[%s162_s30 + $0x8] sm:$0xff] %v201_v1 }
  0x15   : > { %204 = vst [vmem:[%s162_s30 + $0x10] sm:$0xff] %v203_v2 }
  0x16   : > { %206 = vst [vmem:[%s162_s30 + $0x18] sm:$0xff] %v205_v3 }
  0x17 PF: > { %p502_p7 = scmp.ge.s32.totalorder %s571_s17, 1  ;;  %p211_p8 = scmp.lt.s32.totalorder %s571_s17, 3 }
  0x19   : > { %p212_p9 = pnand %p502_p7, %p211_p8 }
  0x1a   : > { %s218_s7 = sand.u32 (!%p212_p9), 1, %s563_s15   ;;  %p246_p10 = scmp.lt.s32.totalorder (!%p212_p9), %s614_s18, 1 }
  0x1b   : > { %215 = sbr.rel (%p212_p9) target bundleno = 199 (0xc7), region = 66  ;;  %s503_s8 = sshll.u32 (!%p212_p9), %s218_s7, 5 }
  0x1c   : > { %s220_s11 = scalar_lea.vmem (!%p212_p9), [#allocation2], %s503_s8  ;;  %s504_s14 = sshll.u32 (!%p212_p9), %s218_s7, 4 }
  0x1d   : > { %s651_s15 = scalar_lea.vmem (!%p212_p9), [#allocation3], %s504_s14 }
  0x20   : > { %v521_v4 = vld [vmem:[%s695_s1 + $0x8] sm:$0xff]  ;;  %v520_v5 = vld [vmem:[%s695_s1] sm:$0xff]  ;;  %v253_v8 = vld [vmem:[%s220_s11 + $0x10] sm:$0xff]  ;;  %vm277_vm0 = vcmask 261120   ;;  %vm307_vm1 = vcmask 781312   ;;  %vm312_vm2 = vcmask 785408  }
  0x21   : > { %290 = vmatpush.bf16.msra.mxu0 %v521_v4  ;;  %522 = vmatpush.bf16.msra.mxu1 %v521_v4  ;;  %v251_v6 = vld [vmem:[%s220_s11] sm:$0xff]  ;;  %v252_v7 = vld [vmem:[%s220_s11 + $0x8] sm:$0xff]  ;;  %v254_v9 = vld [vmem:[%s220_s11 + $0x18] sm:$0xff]  ;;  %s247_s17 = scalar_select %p246_p10, %s614_s18, 1  ;;  %vm343_vm3 = vcmask 1040384   ;;  %vm345_vm4 = vcmask 779264  }
  0x22   : > { %v255_v10 = vpack.c.bf16 %v252_v7, %v251_v6  ;;  %v256_v11 = vpack.c.bf16 %v254_v9, %v253_v8  ;;  %v548_v12 = vld [vmem:[%s696_s2] ss:$0 sm:$0xff]  ;;  %s517_s26 = sshll.u32 (%p629_p5), %s614_s18, 2 }
  0x23   : > { %s505_s20 = sshll.u32 %s247_s17, 1  ;;  %s359_s29 = scalar_lea.vmem (%p629_p5), %s697_s3, %s517_s26 }
  0x24   : > { %s249_s25 = scalar_lea.vmem %s698_s4, %s505_s20 }
  0x25   : > { %291 = vmatpush.bf16.msra.mxu0 %v520_v5  ;;  %523 = vmatpush.bf16.msra.mxu1 %v520_v5 }
  0x28   : > { %514 = vmatmul.msk.bf16.vlgmr.msra.gmra.mxu0 %vm277_vm0, %v255_v10  ;;  %515 = vmatmul.msk.bf16.vlgmr.msra.gmra.mxu1 %vm277_vm0, %v256_v11 }
  0xa5   : > { %v293_v13 = vpop.f32.mrf.mxu0  ;;  %v298_v14 = vpop.f32.mrf.mxu1 }
  0xa6   : > { %v294_v15 = vadd.f32 %v548_v12, %v293_v13  ;;  %v299_v16 = vadd.f32 %v548_v12, %v298_v14 }
  0xa8   : > { %v303_v17 = vpack.c.bf16 %v294_v15, %v294_v15  ;;  %v305_v18 = vpack.c.bf16 %v299_v16, %v299_v16  ;;  %v326_v21 = vmul.f32 %v294_v15, %v294_v15  ;;  %v313_v24 = vsel %vm312_vm2, %v294_v15, 0.0 }
  0xa9   : > { %v328_v25 = vmul.f32 %v299_v16, %v299_v16  ;;  %v316_v32 = vsel %vm312_vm2, %v299_v16, 0.0 }
  0xaa   : > { %308 = vst.msk [vmem:[%s651_s15] sm:$0xf] %vm307_vm1, %v303_v17  ;;  %v330_v31 = vsel %vm312_vm2, %v326_v21, 0.0 }
  0xab   : > { %310 = vst.msk [vmem:[%s651_s15 + $0x8] sm:$0xf] %vm307_vm1, %v305_v18  ;;  %v333_v37 = vsel %vm312_vm2, %v328_v25, 0.0 }
  0xad   : > { %v295_v19 = vpop.f32.mrf.mxu0  ;;  %v300_v20 = vpop.f32.mrf.mxu1 }
  0xae   : > { %v296_v22 = vadd.f32 %v548_v12, %v295_v19  ;;  %v301_v23 = vadd.f32 %v548_v12, %v300_v20 }
  0xb0   : > { %v304_v26 = vpack.c.bf16 %v296_v22, %v296_v22  ;;  %v314_v27 = vsel %vm312_vm2, %v296_v22, 0.0  ;;  %v327_v28 = vmul.f32 %v296_v22, %v296_v22  ;;  %v306_v29 = vpack.c.bf16 %v301_v23, %v301_v23 }
  0xb1   : > { %v315_v30 = vadd.f32 %v314_v27, %v313_v24  ;;  %v329_v34 = vmul.f32 %v301_v23, %v301_v23  ;;  %v318_v38 = vsel %vm312_vm2, %v301_v23, 0.0  ;;  %v376_v56 = vld [vmem:[%s651_s15] sm:$0xf] (%p629_p5) }
  0xb2   : > { %309 = vst.msk [vmem:[%s651_s15 + $0x4] sm:$0xf] %vm307_vm1, %v304_v26  ;;  %v331_v33 = vsel %vm312_vm2, %v327_v28, 0.0  ;;  %v380_v58 = vld [vmem:[%s651_s15 + $0x8] sm:$0xf] (%p629_p5) }
  0xb3   : > { %v332_v35 = vadd.f32 %v331_v33, %v330_v31  ;;  %311 = vst.msk [vmem:[%s651_s15 + $0xc] sm:$0xf] %vm307_vm1, %v306_v29  ;;  %v317_v36 = vadd.f32 %v316_v32, %v315_v30  ;;  %v335_v41 = vsel %vm312_vm2, %v329_v34, 0.0 }
  0xb4   : > { %377 = vst [vmem:[%s359_s29] sm:$0xf] (%p629_p5), %v376_v56 }
  0xb5   : > { %v319_v39 = vadd.f32 %v318_v38, %v317_v36  ;;  %v334_v40 = vadd.f32 %v333_v37, %v332_v35  ;;  %381 = vst [vmem:[%s359_s29 + $0x10] sm:$0xf] (%p629_p5), %v380_v58 }
  0xb7   : > { %v320_v42 = vrot.slane %v319_v39, 4  ;;  %v336_v43 = vadd.f32 %v335_v41, %v334_v40 }
  0xb9   : > { %v321_v44 = vadd.f32 %v320_v42, %v319_v39  ;;  %v337_v45 = vrot.slane %v336_v43, 4  ;;  %v378_v57 = vld [vmem:[%s651_s15 + $0x4] sm:$0xf] (%p629_p5) }
  0xba   : > { %v382_v59 = vld [vmem:[%s651_s15 + $0xc] sm:$0xf] (%p629_p5)  ;;  %379 = vst [vmem:[%s359_s29 + $0x8] sm:$0xf] (%p629_p5), %v378_v57 }
  0xbb   : > { %v322_v46 = vrot.slane %v321_v44, 2  ;;  %v338_v47 = vadd.f32 %v337_v45, %v336_v43  ;;  %383 = vst [vmem:[%s359_s29 + $0x18] sm:$0xf] (%p629_p5), %v382_v59 }
  0xbd   : > { %v323_v48 = vadd.f32 %v322_v46, %v321_v44  ;;  %v339_v49 = vrot.slane %v338_v47, 2 }
  0xbf   : > { %v324_v50 = vrot.slane %v323_v48, 1  ;;  %v340_v51 = vadd.f32 %v339_v49, %v338_v47 }
  0xc1   : > { %v341_v52 = vrot.slane %v340_v51, 1  ;;  %v325_v53 = vadd.f32 %v324_v50, %v323_v48 }
  0xc2   : > { %357 = sbr.rel (!%p629_p5) target bundleno = 199 (0xc7), region = 74 }
  0xc3   : > { %v342_v54 = vadd.f32 %v341_v52, %v340_v51 }
  0xc5   : > { %v344_v55 = vsel %vm343_vm3, %v325_v53, %v342_v54 }
  0xc6   : > { %346 = vst.msk [vmem:[%s249_s25] sm:$0x3] %vm345_vm4, %v344_v55 }
  0xc7 PF: > { %p12_p11 = scmp.ge.s32.totalorder %s617_s19, 4   ;;  %s700_s15 = smov %s567_s16 }
  0xc8   : > { %s701_s16 = smov %s627_s22  ;;  %s702_s17 = smov %s617_s19 }
  0xc9   :  { %14 = sbr.rel (!%p12_p11) target bundleno = 2 (0x2), region = 158 }

// kernel: spikf_block_forward.11
= control target key start
LH: loop header
LB: loop body
LE: loop exit
PB: predicated region body
PF: predicated region fallthrough
CT: control target
= control target key end

     0   :  { %s642_s15 = smov 0   ;;  %s644_s16 = smov 0   ;;  %s744_s0 = inlined_call_operand.vmem [shape: bf16[4,16,32], index: 0, kind: input, shape index: {}]   ;;  %s745_s1 = inlined_call_operand.vmem [shape: bf16[32,32], index: 1, kind: input, shape index: {}]   ;;  %s746_s2 = inlined_call_operand.vmem [shape: f32[1,32], index: 2, kind: input, shape index: {}]   ;;  %s747_s3 = inlined_call_operand.vmem [shape: bf16[4,16,32], index: 3, kind: output, shape index: {0}]   ;;  %s748_s4 = inlined_call_operand.vmem [shape: f32[2,2,32], index: 4, kind: output, shape index: {1}]  }
   0x1   :  { %s646_s17 = smov 0  }
   0x2 LB: > { %s658_s18 = sadd.s32 4294967295, %s614_s17   ;;  %s661_s19 = sadd.s32 1, %s614_s17   ;;  %s614_s17 = sphi %s646_s17, %s752_s17   ;;  %s610_s16 = sphi %s644_s16, %s751_s16   ;;  %s606_s15 = sphi %s642_s15, %s750_s15  }
   0x3   : > { %s19_s20 = ssub.s32 %s614_s17, %s661_s19  ;;  %s22_s21 = sadd.s32 1, %s610_s16 }
   0x4   : > { %p20_p0 = scmp.eq.s32.totalorder %s19_s20, 0  ;;  %p29_p1 = scmp.ne.s32.totalorder %s610_s16, %s606_s15 }
   0x5   : > { %p30_p2 = scmp.eq.s32.totalorder %s614_s17, 0  ;;  %p101_p3 = scmp.eq.s32.totalorder %s658_s18, 1 }
   0x6   : > { %s671_s22 = scalar_select %p20_p0, %s610_s16, %s22_s21  }
   0x7   : > { %p31_p4 = por %p30_p2, %p29_p1  ;;  %p673_p5 = por %p101_p3, %p29_p1 }
   0x8   : > { %p532_p6 = scmp.ge.s32.totalorder %s614_s17, 2 }
   0xa   : > { %155 = sbr.rel (%p532_p6) target bundleno = 23 (0x17), region = 24 }
   0xf   : > { %158 = sbr.rel (!%p31_p4) target bundleno = 23 (0x17), region = 28  ;;  %s160_s24 = sand.u32 (%p31_p4), 1, %s610_s16  }
  0x10   : > { %s534_s25 = sshll.u32 (%p31_p4), %s614_s17, 2  ;;  %s533_s26 = sshll.u32 (%p31_p4), %s160_s24, 4 }
  0x11   : > { %s164_s29 = scalar_lea.vmem (%p31_p4), %s744_s0, %s534_s25  ;;  %s162_s30 = scalar_lea.vmem (%p31_p4), [#allocation2], %s533_s26 }
  0x12   : > { %v181_v0 = vld [vmem:[%s164_s29] sm:$0xf] (%p31_p4)  ;;  %v183_v1 = vld [vmem:[%s164_s29 + $0x8] sm:$0xf] (%p31_p4)  ;;  %v185_v2 = vld [vmem:[%s164_s29 + $0x10] sm:$0xf] (%p31_p4) }
  0x13   : > { %182 = vst [vmem:[%s162_s30] sm:$0xf] (%p31_p4), %v181_v0  ;;  %v187_v3 = vld [vmem:[%s164_s29 + $0x18] sm:$0xf] (%p31_p4) }
  0x14   : > { %184 = vst [vmem:[%s162_s30 + $0x4] sm:$0xf] %v183_v1 }
  0x15   : > { %186 = vst [vmem:[%s162_s30 + $0x8] sm:$0xf] %v185_v2 }
  0x16   : > { %188 = vst [vmem:[%s162_s30 + $0xc] sm:$0xf] %v187_v3 }
  0x17 PF: > { %p535_p7 = scmp.ge.s32.totalorder %s614_s17, 1  ;;  %p219_p8 = scmp.lt.s32.totalorder %s614_s17, 3 }
  0x19   : > { %p220_p9 = pnand %p535_p7, %p219_p8 }
  0x1a   : > { %s226_s7 = sand.u32 (!%p220_p9), 1, %s606_s15   ;;  %p254_p10 = scmp.lt.s32.totalorder (!%p220_p9), %s658_s18, 1 }
  0x1b   : > { %223 = sbr.rel (%p220_p9) target bundleno = 221 (0xdd), region = 69  ;;  %s689_s8 = sshll.u32 (!%p220_p9), %s226_s7, 4 }
  0x1c   : > { %s228_s11 = scalar_lea.vmem (!%p220_p9), [#allocation2], %s689_s8  ;;  %s701_s14 = scalar_lea.vmem (!%p220_p9), [#allocation3], %s689_s8 }
  0x20   : > { %v554_v4 = vld [vmem:[%s745_s1 + $0x8] sm:$0xff]  ;;  %v553_v5 = vld [vmem:[%s745_s1] sm:$0xff]  ;;  %v616_v16 = vmov 0.0   ;;  %vm311_vm2 = vcmask 261120   ;;  %vm341_vm5 = vcmask 257024   ;;  %s255_s15 = scalar_select %p254_p10, %s658_s18, 1 }
  0x21   : > { %324 = vmatpush.bf16.msra.mxu0 %v554_v4  ;;  %564 = vmatpush.bf16.msra.mxu1 %v554_v4  ;;  %v556_v6 = vld [vmem:[%s228_s11] sm:$0xff]   ;;  %v563_v12 = vld [vmem:[%s228_s11 + $0x8] sm:$0xff]   ;;  %vm376_vm6 = vcmask 1040384   ;;  %vm378_vm7 = vcmask 254976   ;;  %s550_s25 = sshll.u32 (%p673_p5), %s658_s18, 2 }
  0x22   : > { %v557_v7 = vunpack.c.l.bf16 %v556_v6  ;;  %v558_v8 = vunpack.c.h.bf16 %v556_v6  ;;  %v561_v14 = vunpack.c.l.bf16 %v563_v12  ;;  %v562_v23 = vunpack.c.h.bf16 %v563_v12  ;;  %v591_v32 = vld [vmem:[%s746_s2] ss:$0 sm:$0xff]  ;;  %s538_s17 = sshll.u32 %s255_s15, 1  ;;  %s392_s28 = scalar_lea.vmem (%p673_p5), %s747_s3, %s550_s25 }
  0x23   : > { %s257_s24 = scalar_lea.vmem %s748_s4, %s538_s17 }
  0x24   : > { %v267_v9 = vmul.f32 0.5, %v557_v7 }
  0x25   : > { %325 = vmatpush.bf16.msra.mxu0 %v553_v5  ;;  %565 = vmatpush.bf16.msra.mxu1 %v553_v5 }
  0x26   : > { %vm269_vm0 = vcmp.gt.f32.partialorder %v267_v9, 0.5 }
  0x27   : > { %v271_v10 = vsel %vm269_vm0, 0.0, %v267_v9  ;;  %v270_v17 = vsel %vm269_vm0, 1.0, %v616_v16 }
  0x28   : > { %v272_v11 = vsub.f32 %v558_v8, %v271_v10 }
  0x2a   : > { %v273_v13 = vmul.f32 0.5, %v272_v11 }
  0x2c   : > { %v274_v15 = vadd.f32 %v273_v13, %v271_v10 }
  0x2e   : > { %vm275_vm1 = vcmp.gt.f32.partialorder %v274_v15, 0.5 }
  0x2f   : > { %v276_v18 = vsel %vm275_vm1, 1.0, %v616_v16  ;;  %v277_v19 = vsel %vm275_vm1, 0.0, %v274_v15 }
  0x30   : > { %v278_v20 = vsub.f32 %v561_v14, %v277_v19  ;;  %v289_v21 = vpack.c.bf16 %v276_v18, %v270_v17 }
  0x32   : > { %v279_v22 = vmul.f32 0.5, %v278_v20  ;;  %547 = vmatmul.msk.bf16.vlgmr.msra.gmra.mxu0 %vm311_vm2, %v289_v21 }
  0x34   : > { %v280_v24 = vadd.f32 %v279_v22, %v277_v19 }
  0x36   : > { %vm281_vm3 = vcmp.gt.f32.partialorder %v280_v24, 0.5 }
  0x37   : > { %v283_v25 = vsel %vm281_vm3, 0.0, %v280_v24  ;;  %v282_v29 = vsel %vm281_vm3, 1.0, %v616_v16 }
  0x38   : > { %v284_v26 = vsub.f32 %v562_v23, %v283_v25 }
  0x3a   : > { %v285_v27 = vmul.f32 0.5, %v284_v26 }
  0x3c   : > { %v286_v28 = vadd.f32 %v285_v27, %v283_v25 }
  0x3e   : > { %vm287_vm4 = vcmp.gt.f32.partialorder %v286_v28, 0.5 }
  0x3f   : > { %v288_v30 = vsel %vm287_vm4, 1.0, %v616_v16 }
  0x40   : > { %v290_v31 = vpack.c.bf16 %v288_v30, %v282_v29 }
  0x42   : > { %548 = vmatmul.msk.bf16.vlgmr.msra.gmra.mxu1 %vm311_vm2, %v290_v31 }
  0xaf   : > { %v327_v33 = vpop.f32.mrf.mxu0 }
  0xb0   : > { %v328_v34 = vadd.f32 %v591_v32, %v327_v33 }
  0xb2   : > { %v337_v35 = vpack.c.bf16 %v328_v34, %v328_v34  ;;  %v359_v41 = vmul.f32 %v328_v34, %v328_v34  ;;  %v346_v44 = vsel %vm311_vm2, %v328_v34, 0.0 }
  0xb4   : > { %342 = vst.msk [vmem:[%s701_s14] sm:$0xf] %vm341_vm5, %v337_v35  ;;  %v363_v47 = vsel %vm311_vm2, %v359_v41, 0.0 }
  0xb7   : > { %v329_v36 = vpop.f32.mrf.mxu0 }
  0xb8   : > { %v330_v37 = vadd.f32 %v591_v32, %v329_v36 }
  0xba   : > { %v338_v38 = vpack.c.bf16 %v330_v37, %v330_v37  ;;  %v360_v42 = vmul.f32 %v330_v37, %v330_v37  ;;  %v347_v45 = vsel %vm311_vm2, %v330_v37, 0.0 }
  0xbb   : > { %v348_v50 = vadd.f32 %v347_v45, %v346_v44  ;;  %v409_v12 = vld [vmem:[%s701_s14] sm:$0xf] (%p673_p5) }
  0xbc   : > { %343 = vst.msk [vmem:[%s701_s14 + $0x4] sm:$0xf] %vm341_vm5, %v338_v38  ;;  %v364_v48 = vsel %vm311_vm2, %v360_v42, 0.0 }
  0xbd   : > { %v365_v54 = vadd.f32 %v364_v48, %v363_v47  ;;  %410 = vst [vmem:[%s392_s28] sm:$0xf] (%p673_p5), %v409_v12 }
  0xbf   : > { %v332_v39 = vpop.f32.mrf.mxu1 }
  0xc0   : > { %v333_v40 = vadd.f32 %v591_v32, %v332_v39 }
  0xc2   : > { %v339_v43 = vpack.c.bf16 %v333_v40, %v333_v40  ;;  %v361_v46 = vmul.f32 %v333_v40, %v333_v40  ;;  %v349_v49 = vsel %vm311_vm2, %v333_v40, 0.0 }
  0xc3   : > { %v350_v55 = vadd.f32 %v349_v49, %v348_v50  ;;  %v411_v13 = vld [vmem:[%s701_s14 + $0x4] sm:$0xf] (%p673_p5) }
  0xc4   : > { %344 = vst.msk [vmem:[%s701_s14 + $0x8] sm:$0xf] %vm341_vm5, %v339_v43  ;;  %v366_v52 = vsel %vm311_vm2, %v361_v46, 0.0 }
  0xc5   : > { %v367_v59 = vadd.f32 %v366_v52, %v365_v54  ;;  %412 = vst [vmem:[%s392_s28 + $0x8] sm:$0xf] (%p673_p5), %v411_v13 }
  0xc7   : > { %v334_v51 = vpop.f32.mrf.mxu1 }
  0xc8   : > { %v335_v53 = vadd.f32 %v591_v32, %v334_v51 }
  0xca   : > { %v340_v56 = vpack.c.bf16 %v335_v53, %v335_v53  ;;  %v351_v57 = vsel %vm311_vm2, %v335_v53, 0.0  ;;  %v362_v58 = vmul.f32 %v335_v53, %v335_v53 }
  0xcb   : > { %v352_v60 = vadd.f32 %v351_v57, %v350_v55  ;;  %v413_v14 = vld [vmem:[%s701_s14 + $0x8] sm:$0xf] (%p673_p5) }
  0xcc   : > { %345 = vst.msk [vmem:[%s701_s14 + $0xc] sm:$0xf] %vm341_vm5, %v340_v56  ;;  %v368_v61 = vsel %vm311_vm2, %v362_v58, 0.0 }
  0xcd   : > { %v353_v62 = vrot.slane %v352_v60, 4  ;;  %v369_v63 = vadd.f32 %v368_v61, %v367_v59  ;;  %414 = vst [vmem:[%s392_s28 + $0x10] sm:$0xf] (%p673_p5), %v413_v14 }
  0xcf   : > { %v354_v0 = vadd.f32 %v353_v62, %v352_v60  ;;  %v370_v1 = vrot.slane %v369_v63, 4 }
  0xd1   : > { %v355_v2 = vrot.slane %v354_v0, 2  ;;  %v371_v3 = vadd.f32 %v370_v1, %v369_v63 }
  0xd3   : > { %v356_v4 = vadd.f32 %v355_v2, %v354_v0  ;;  %v372_v5 = vrot.slane %v371_v3, 2  ;;  %v415_v15 = vld [vmem:[%s701_s14 + $0xc] sm:$0xf] (%p673_p5) }
  0xd4   : > { %416 = vst [vmem:[%s392_s28 + $0x18] sm:$0xf] (%p673_p5), %v415_v15 }
  0xd5   : > { %v357_v6 = vrot.slane %v356_v4, 1  ;;  %v373_v7 = vadd.f32 %v372_v5, %v371_v3 }
  0xd7   : > { %v374_v8 = vrot.slane %v373_v7, 1  ;;  %v358_v9 = vadd.f32 %v357_v6, %v356_v4 }
  0xd8   : > { %390 = sbr.rel (!%p673_p5) target bundleno = 221 (0xdd), region = 77 }
  0xd9   : > { %v375_v10 = vadd.f32 %v374_v8, %v373_v7 }
  0xdb   : > { %v377_v11 = vsel %vm376_vm6, %v358_v9, %v375_v10 }
  0xdc   : > { %379 = vst.msk [vmem:[%s257_s24] sm:$0x3] %vm378_vm7, %v377_v11 }
  0xdd PF: > { %p12_p11 = scmp.ge.s32.totalorder %s661_s19, 4   ;;  %s750_s15 = smov %s610_s16 }
  0xde   : > { %s751_s16 = smov %s671_s22  ;;  %s752_s17 = smov %s661_s19 }
  0xdf   :  { %14 = sbr.rel (!%p12_p11) target bundleno = 2 (0x2), region = 161 }

// kernel: spikf_block_forward.10
= control target key start
LH: loop header
LB: loop body
LE: loop exit
PB: predicated region body
PF: predicated region fallthrough
CT: control target
= control target key end

     0   :  { %s822_s6 = smov 0   ;;  %s922_s0 = inlined_call_operand.vmem [shape: bf16[8,8,96], index: 0, kind: input, shape index: {}]   ;;  %s923_s1 = inlined_call_operand.vmem [shape: bf16[8,8,32], index: 1, kind: output, shape index: {}]  }
   0x1 LB: > { %s731_s7 = sadd.s32 4294967295, %s796_s6   ;;  %p735_p0 = scmp.ge.s32.totalorder %s796_s6, 1  ;;  %s796_s6 = sphi %s822_s6, %s11_s6  }
   0x2   : > { %p88_p1 = scmp.lt.s32.totalorder %s796_s6, 5 }
   0x4   : > { %p89_p2 = pnand %p735_p0, %p88_p1 }
   0x5   : > { %s736_s8 = sshll.u32 (!%p89_p2), %s731_s7, 1  ;;  %s798_s13 = smov (!%p89_p2), 64  }
   0x6   : > { %92 = sbr.rel (%p89_p2) target bundleno = 851 (0x353), region = 24  ;;  %p109_p3 = scmp.lt.s32.totalorder (!%p89_p2), %s736_s8, 7 }
   0x7   : > { %s799_s14 = smov (!%p89_p2), 96   ;;  %s800_s15 = smov (!%p89_p2), 88  }
   0x8   : > { %s801_s16 = smov (!%p89_p2), 80   ;;  %s802_s17 = smov (!%p89_p2), 56  }
   0x9   : > { %s803_s18 = smov (!%p89_p2), 72   ;;  %s804_s19 = smov (!%p89_p2), 48  }
   0xa   : > { %s805_s20 = smov (!%p89_p2), 40   ;;  %s806_s21 = smov (!%p89_p2), 112  }
   0xb   : > { %s925_s8 = smov (!%p109_p3, %s736_s8), 7  ;;  %vm151_vm0 = vcmask 1043456   ;;  %vm147_vm1 = vcmask 64512   ;;  %s807_s22 = smov 104   ;;  %vm255_vm2 = vcmask 60416   ;;  %vm394_vm3 = vcmask 126016  }
   0xc   : > { %s737_s9 = sshll.u32 %s925_s8, 2  ;;  %s808_s23 = smov 120   ;;  %vm533_vm4 = vcmask 191616   ;;  %vm672_vm5 = vcmask 257216  }
   0xd   : > { %s112_s12 = scalar_lea.vmem %s922_s0, %s737_s9  ;;  %s904_s26 = scalar_lea.vmem %s923_s1, %s737_s9 }
   0xe   : > { %v838_v0 = vld [vmem:[%s112_s12] sm:$0xf]  ;;  %v841_v2 = vld [vmem:[%s112_s12 + $0x4] sm:$0xf]  ;;  %s809_s27 = smov 8   ;;  %s810_s28 = smov 16  }
   0xf   : > { %v124_v1 = vunpack.c.l.b16 %v838_v0  ;;  %v169_v4 = vunpack.c.l.b16 %v841_v2  ;;  %s811_s29 = smov 24  }
  0x11   : > { %v843_v3 = vpack.c.b16 %v124_v1, %v124_v1  ;;  %v849_v5 = vpack.c.b16 %v169_v4, %v169_v4 }
  0x13   : > { %145 = vrot.lane.b32.xlu1 %v843_v3, %s798_s13  ;;  %126 = vrot.lane.b32.xlu0 %v843_v3, %s799_s14 }
  0x14   : > { %258 = vrot.lane.b32.xlu2 %v843_v3, %s800_s15 }
  0x1b   : > { %171 = vrot.lane.b32.xlu1 %v849_v5, %s799_s14 }
  0x1c   : > { %298 = vrot.lane.b32.xlu2 %v849_v5, %s800_s15 }
  0x23   : > { %190 = vrot.lane.b32.xlu1 %v849_v5, %s798_s13 }
  0x2b   : > { %397 = vrot.lane.b32.xlu1 %v843_v3, %s801_s16 }
  0x33   : > { %277 = vrot.lane.b32.xlu1 %v843_v3, %s802_s17 }
  0x3b   : > { %437 = vrot.lane.b32.xlu1 %v849_v5, %s801_s16 }
  0x43   : > { %536 = vrot.lane.b32.xlu1 %v843_v3, %s803_s18 }
  0x4b   : > { %576 = vrot.lane.b32.xlu1 %v849_v5, %s803_s18 }
  0x53   : > { %456 = vrot.lane.b32.xlu1 %v849_v5, %s804_s19 }
  0x6e   : > { %v259_v9 = vpop.permute.xlu2 %258 }
  0x76   : > { %v299_v13 = vpop.permute.xlu2 %298 }
  0x85   : > { %v146_v6 = vpop.permute.xlu1 %145  ;;  %v127_v7 = vpop.permute.xlu0 %126 }
  0x86   : > { %129 = vxpose.xlu0.c.b16.start.end [1/1] (short) (narrow) %v127_v7, 16  ;;  %v153_v8 = vsel %vm151_vm0, %v146_v6, 0 }
  0x87   : > { %162 = vmatpush.bf16.msra.mxu0 %v153_v8 }
  0x8d   : > { %v172_v10 = vpop.permute.xlu1 %171 }
  0x8e   : > { %781 = vxpose.binary.xlu2.c.b16.start.end [1/2] (short) (narrow) %v259_v9, %v172_v10, 16 }
  0x95   : > { %v191_v11 = vpop.permute.xlu1 %190 }
  0x96   : > { %v196_v12 = vsel %vm151_vm0, %v191_v11, 0 }
  0x97   : > { %205 = vmatpush.bf16.msra.mxu1 %v196_v12 }
  0x9d   : > { %v398_v14 = vpop.permute.xlu1 %397 }
  0x9e   : > { %784 = vxpose.binary.xlu1.c.b16.start.end [1/2] (short) (narrow) %v398_v14, %v299_v13, 16 }
  0xa5   : > { %v278_v15 = vpop.permute.xlu1 %277 }
  0xa6   : > { %v283_v16 = vsel %vm151_vm0, %v278_v15, 0 }
  0xa7   : > { %292 = vmatpush.bf16.msrb.mxu0 %v283_v16 }
  0xad   : > { %v438_v17 = vpop.permute.xlu1 %437 }
  0xb5   : > { %v537_v18 = vpop.permute.xlu1 %536 }
  0xbd   : > { %v577_v19 = vpop.permute.xlu1 %576 }
  0xc5   : > { %v457_v23 = vpop.permute.xlu1 %456 }
  0xc6   : > { %v462_v30 = vsel %vm151_vm0, %v457_v23, 0 }
  0xf4   : > { %317 = vrot.lane.b32.xlu0 %v849_v5, %s802_s17 }
  0xf7   : > { %416 = vrot.lane.b32.xlu2 %v843_v3, %s804_s19 }
  0xf8   : > { %555 = vrot.lane.b32.xlu1 %v843_v3, %s805_s20 }
  0xfc   : > { %595 = vrot.lane.b32.xlu0 %v849_v5, %s805_s20 }
 0x100   : > { %479 = vrot.lane.b32.xlu1 %v843_v3, %s806_s21 }
 0x108   : > { %500 = vrot.lane.b32.xlu1 %v849_v5, %s806_s21 }
 0x110   : > { %618 = vrot.lane.b32.xlu1 %v843_v3, %s807_s22 }
 0x118   : > { %639 = vrot.lane.b32.xlu1 %v849_v5, %s807_s22 }
 0x11d   : > { %440 = vxpose.xlu2.c.b16.start.end [1/1] (short) (narrow) %v438_v17, 16 }
 0x11e   : > { %787 = vxpose.binary.xlu0.c.b16.start.end [1/2] (short) (narrow) %v577_v19, %v537_v18, 16 }
 0x12f   : > { %v782_v20 = vpop.trf.xlu2 }
 0x130   : > { %741 = vmatmul.msk.bf16.vlgmr.msra.gmra.mxu1 %vm147_vm1, %v782_v20 }
 0x132   : > { %v137_v21 = vpop.trf.xlu0 }
 0x133   : > { %740 = vmatmul.msk.bf16.vlgmr.msra.gmra.mxu0 %vm147_vm1, %v137_v21 }
 0x137   : > { %v783_v22 = vpop.trf.xlu2 }
 0x143   : > { %744 = vmatmul.msk.bf16.vlgmr.msrb.gmra.mxu0 %vm147_vm1, %v783_v22 }
 0x14a   : > { %v785_v24 = vpop.trf.xlu1 }
 0x151   : > { %v417_v25 = vpop.permute.xlu2 %416 }
 0x152   : > { %v422_v26 = vsel %vm151_vm0, %v417_v25, 0  ;;  %v786_v27 = vpop.trf.xlu1 }
 0x153   : > { %431 = vmatpush.bf16.msra.mxu0 %v422_v26 }
 0x156   : > { %748 = vmatmul.msk.bf16.vlgmr.msra.gmra.mxu0 %vm147_vm1, %v786_v27 }
 0x166   : > { %v318_v28 = vpop.permute.xlu0 %317 }
 0x167   : > { %v323_v29 = vsel %vm151_vm0, %v318_v28, 0 }
 0x168   : > { %332 = vmatpush.bf16.msrb.mxu1 %v323_v29 }
 0x16a   : > { %v556_v33 = vpop.permute.xlu1 %555 }
 0x16b   : > { %745 = vmatmul.msk.bf16.vlgmr.msrb.gmra.mxu1 %vm147_vm1, %v785_v24  ;;  %v561_v34 = vsel %vm151_vm0, %v556_v33, 0 }
 0x16c   : > { %471 = vmatpush.bf16.msra.mxu1 %v462_v30  ;;  %570 = vmatpush.bf16.msrb.mxu0 %v561_v34 }
 0x16e   : > { %v596_v31 = vpop.permute.xlu0 %595 }
 0x16f   : > { %v601_v32 = vsel %vm151_vm0, %v596_v31, 0 }
 0x170   : > { %610 = vmatpush.bf16.msrb.mxu1 %v601_v32 }
 0x172   : > { %v480_v60 = vpop.permute.xlu1 %479 }
 0x17a   : > { %v501_v4 = vpop.permute.xlu1 %500 }
 0x182   : > { %v619_v12 = vpop.permute.xlu1 %618 }
 0x186   : > { %361 = vrot.lane.b32.xlu2 %v849_v5, %s808_s23 }
 0x18a   : > { %v640_v18 = vpop.permute.xlu1 %639 }
 0x18c   : > { %340 = vrot.lane.b32.xlu0 %v843_v3, %s808_s23 }
 0x1ad   : > { %v207_v36 = vpop.f32.mrf.mxu1 }
 0x1ae   : > { %v212_v38 = vpack.c.bf16 %v207_v36, %v207_v36 }
 0x1b0   : > { %v164_v35 = vpop.f32.mrf.mxu0  ;;  %v236_v40 = vsel %vm151_vm0, %v212_v38, 0 }
 0x1b1   : > { %v211_v37 = vpack.c.bf16 %v164_v35, %v164_v35  ;;  %245 = vmatpush.bf16.msra.mxu3 %v236_v40 }
 0x1b3   : > { %v217_v39 = vsel %vm151_vm0, %v211_v37, 0 }
 0x1b4   : > { %226 = vmatpush.bf16.msra.mxu2 %v217_v39  ;;  %743 = vmatmul.msk.bf16.vlgmr.msra.gmra.mxu3 %vm147_vm1, %v841_v2 }
 0x1b5   : > { %v209_v42 = vpop.f32.mrf.mxu1 }
 0x1b7   : > { %742 = vmatmul.msk.bf16.vlgmr.msra.gmra.mxu2 %vm147_vm1, %v838_v0 }
 0x1b8   : > { %v166_v41 = vpop.f32.mrf.mxu0 }
 0x1be   : > { %v448_v43 = vpop.trf.xlu2 }
 0x1bf   : > { %749 = vmatmul.msk.bf16.vlgmr.msra.gmra.mxu1 %vm147_vm1, %v448_v43 }
 0x1c0   : > { %v294_v44 = vpop.f32.mrf.mxu0 }
 0x1c1   : > { %v338_v45 = vpack.c.bf16 %v294_v44, %v294_v44 }
 0x1c3   : > { %v346_v46 = vsel %vm151_vm0, %v338_v45, 0 }
 0x1c4   : > { %355 = vmatpush.bf16.msrb.mxu2 %v346_v46 }
 0x1c8   : > { %v296_v48 = vpop.f32.mrf.mxu0 }
 0x1ca   : > { %v788_v47 = vpop.trf.xlu0 }
 0x1cb   : > { %752 = vmatmul.msk.bf16.vlgmr.msrb.gmra.mxu0 %vm147_vm1, %v788_v47 }
 0x1d2   : > { %v789_v49 = vpop.trf.xlu0 }
 0x1d3   : > { %753 = vmatmul.msk.bf16.vlgmr.msrb.gmra.mxu1 %vm147_vm1, %v789_v49  ;;  %v433_v50 = vpop.f32.mrf.mxu0 }
 0x1d4   : > { %v477_v51 = vpack.c.bf16 %v433_v50, %v433_v50 }
 0x1d6   : > { %v485_v52 = vsel %vm151_vm0, %v477_v51, 0 }
 0x1d7   : > { %494 = vmatpush.bf16.msra.mxu2 %v485_v52 }
 0x1db   : > { %v435_v53 = vpop.f32.mrf.mxu0 }
 0x1e0   : > { %v362_v57 = vpop.permute.xlu2 %361 }
 0x1e8   : > { %v334_v54 = vpop.f32.mrf.mxu1 }
 0x1e9   : > { %v339_v55 = vpack.c.bf16 %v334_v54, %v334_v54 }
 0x1eb   : > { %v367_v56 = vsel %vm151_vm0, %v339_v55, 0 }
 0x1ec   : > { %376 = vmatpush.bf16.msrb.mxu3 %v367_v56 }
 0x1ef   : > { %747 = vmatmul.msk.bf16.vlgmr.msrb.gmra.mxu3 %vm147_vm1, %v362_v57 }
 0x1f0   : > { %v336_v58 = vpop.f32.mrf.mxu1 }
 0x1fe   : > { %v341_v59 = vpop.permute.xlu0 %340 }
 0x1ff   : > { %746 = vmatmul.msk.bf16.vlgmr.msrb.gmra.mxu2 %vm147_vm1, %v341_v59 }
 0x20f   : > { %750 = vmatmul.msk.bf16.vlgmr.msra.gmra.mxu2 %vm147_vm1, %v480_v60 }
 0x237   : > { %v247_v0 = vpop.f32.mrf.mxu3 }
 0x238   : > { %v252_v2 = vmul.f32 0.015625, %v247_v0 }
 0x23a   : > { %v228_v63 = vpop.f32.mrf.mxu2  ;;  %v254_v6 = vpack.c.bf16 %v252_v2, %v252_v2 }
 0x23b   : > { %v251_v1 = vmul.f32 0.015625, %v228_v63 }
 0x23c   : > { %v473_v61 = vpop.f32.mrf.mxu1  ;;  %257 = vst.msk [vmem:[%s904_s26 + $0x4] sm:$0xf] %vm255_vm2, %v254_v6 }
 0x23d   : > { %v478_v62 = vpack.c.bf16 %v473_v61, %v473_v61  ;;  %v253_v5 = vpack.c.bf16 %v251_v1, %v251_v1 }
 0x23f   : > { %v506_v3 = vsel %vm151_vm0, %v478_v62, 0  ;;  %256 = vst.msk [vmem:[%s904_s26] sm:$0xf] %vm255_vm2, %v253_v5  ;;  %v249_v9 = vpop.f32.mrf.mxu3 }
 0x240   : > { %515 = vmatpush.bf16.msra.mxu3 %v506_v3 }
 0x242   : > { %v230_v8 = vpop.f32.mrf.mxu2 }
 0x243   : > { %751 = vmatmul.msk.bf16.vlgmr.msra.gmra.mxu3 %vm147_vm1, %v501_v4 }
 0x244   : > { %v475_v7 = vpop.f32.mrf.mxu1 }
 0x248   : > { %v572_v10 = vpop.f32.mrf.mxu0 }
 0x249   : > { %v616_v11 = vpack.c.bf16 %v572_v10, %v572_v10 }
 0x24b   : > { %v624_v13 = vsel %vm151_vm0, %v616_v11, 0 }
 0x24c   : > { %633 = vmatpush.bf16.msrb.mxu2 %v624_v13 }
 0x24f   : > { %754 = vmatmul.msk.bf16.vlgmr.msrb.gmra.mxu2 %vm147_vm1, %v619_v12 }
 0x250   : > { %v574_v14 = vpop.f32.mrf.mxu0  ;;  %v612_v15 = vpop.f32.mrf.mxu1 }
 0x251   : > { %v617_v16 = vpack.c.bf16 %v612_v15, %v612_v15 }
 0x253   : > { %v645_v17 = vsel %vm151_vm0, %v617_v16, 0 }
 0x254   : > { %654 = vmatpush.bf16.msrb.mxu3 %v645_v17 }
 0x257   : > { %755 = vmatmul.msk.bf16.vlgmr.msrb.gmra.mxu3 %vm147_vm1, %v640_v18 }
 0x258   : > { %v614_v19 = vpop.f32.mrf.mxu1 }
 0x272   : > { %v378_v20 = vpop.f32.mrf.mxu3 }
 0x273   : > { %v383_v25 = vmul.f32 0.015625, %v378_v20 }
 0x275   : > { %v385_v27 = vpack.c.bf16 %v383_v25, %v383_v25 }
 0x27a   : > { %v380_v21 = vpop.f32.mrf.mxu3 }
 0x282   : > { %v357_v22 = vpop.f32.mrf.mxu2 }
 0x283   : > { %v382_v23 = vmul.f32 0.015625, %v357_v22 }
 0x285   : > { %v384_v24 = vpack.c.bf16 %v382_v23, %v382_v23 }
 0x287   : > { %388 = vrot.lane.b32.xlu1 %v384_v24, %s809_s27 }
 0x28a   : > { %v359_v26 = vpop.f32.mrf.mxu2 }
 0x28f   : > { %390 = vrot.lane.b32.xlu1 %v385_v27, %s809_s27 }
 0x292   : > { %v496_v28 = vpop.f32.mrf.mxu2 }
 0x293   : > { %v521_v29 = vmul.f32 0.015625, %v496_v28 }
 0x295   : > { %v523_v30 = vpack.c.bf16 %v521_v29, %v521_v29 }
 0x297   : > { %527 = vrot.lane.b32.xlu1 %v523_v30, %s810_s28 }
 0x29a   : > { %v498_v31 = vpop.f32.mrf.mxu2 }
 0x2c6   : > { %v517_v32 = vpop.f32.mrf.mxu3 }
 0x2c7   : > { %v522_v33 = vmul.f32 0.015625, %v517_v32 }
 0x2c9   : > { %v524_v34 = vpack.c.bf16 %v522_v33, %v522_v33 }
 0x2cb   : > { %529 = vrot.lane.b32.xlu1 %v524_v34, %s810_s28 }
 0x2ce   : > { %v519_v35 = vpop.f32.mrf.mxu3 }
 0x2d2   : > { %v635_v36 = vpop.f32.mrf.mxu2 }
 0x2d3   : > { %v660_v37 = vmul.f32 0.015625, %v635_v36 }
 0x2d5   : > { %v662_v38 = vpack.c.bf16 %v660_v37, %v660_v37 }
 0x2d7   : > { %666 = vrot.lane.b32.xlu1 %v662_v38, %s811_s29 }
 0x2da   : > { %v637_v39 = vpop.f32.mrf.mxu2  ;;  %v656_v40 = vpop.f32.mrf.mxu3 }
 0x2db   : > { %v661_v41 = vmul.f32 0.015625, %v656_v40 }
 0x2dd   : > { %v663_v42 = vpack.c.bf16 %v661_v41, %v661_v41 }
 0x2df   : > { %668 = vrot.lane.b32.xlu1 %v663_v42, %s811_s29 }
 0x2e2   : > { %v658_v43 = vpop.f32.mrf.mxu3 }
 0x2f9   : > { %v389_v44 = vpop.permute.xlu1 %388 }
 0x2fa   : > { %395 = vst.msk [vmem:[%s904_s26] sm:$0xf] %vm394_vm3, %v389_v44 }
 0x301   : > { %v391_v45 = vpop.permute.xlu1 %390 }
 0x302   : > { %396 = vst.msk [vmem:[%s904_s26 + $0x4] sm:$0xf] %vm394_vm3, %v391_v45 }
 0x309   : > { %v528_v46 = vpop.permute.xlu1 %527 }
 0x30a   : > { %534 = vst.msk [vmem:[%s904_s26] sm:$0xf] %vm533_vm4, %v528_v46 }
 0x33d   : > { %v530_v47 = vpop.permute.xlu1 %529 }
 0x33e   : > { %535 = vst.msk [vmem:[%s904_s26 + $0x4] sm:$0xf] %vm533_vm4, %v530_v47 }
 0x349   : > { %v667_v48 = vpop.permute.xlu1 %666 }
 0x34a   : > { %673 = vst.msk [vmem:[%s904_s26] sm:$0xf] %vm672_vm5, %v667_v48 }
 0x351   : > { %v669_v49 = vpop.permute.xlu1 %668 }
 0x352   : > { %674 = vst.msk [vmem:[%s904_s26 + $0x4] sm:$0xf] %vm672_vm5, %v669_v49 }
 0x353 PF: > { %s11_s6 = sadd.s32 1, %s796_s6  }
 0x354   : > { %p8_p4 = scmp.ge.s32.totalorder %s11_s6, 6  }
 0x356   :  { %10 = sbr.rel (!%p8_p4) target bundleno = 1 (0x1), region = 54 }

// kernel: spikf_block_forward.12
= control target key start
LH: loop header
LB: loop body
LE: loop exit
PB: predicated region body
PF: predicated region fallthrough
CT: control target
= control target key end

     0   :  { %s603_s15 = smov 0   ;;  %s605_s16 = smov 0   ;;  %s702_s0 = inlined_call_operand.vmem [shape: bf16[4,16,32], index: 0, kind: input, shape index: {}]   ;;  %s703_s1 = inlined_call_operand.vmem [shape: f32[1,1,32], index: 1, kind: input, shape index: {}]   ;;  %s704_s2 = inlined_call_operand.vmem [shape: f32[1,1,32], index: 2, kind: input, shape index: {}]   ;;  %s705_s3 = inlined_call_operand.vmem [shape: f32[4,16,32], index: 3, kind: input, shape index: {}]   ;;  %s706_s4 = inlined_call_operand.vmem [shape: f32[4,16,32], index: 4, kind: output, shape index: {}]  }
   0x1   :  { %s607_s17 = smov 0  }
   0x2 LB: > { %s501_s18 = sadd.s32 4294967295, %s575_s17   ;;  %s620_s19 = sadd.s32 1, %s575_s17   ;;  %s575_s17 = sphi %s607_s17, %s711_s17   ;;  %s571_s16 = sphi %s605_s16, %s710_s16   ;;  %s567_s15 = sphi %s603_s15, %s709_s15  }
   0x3   : > { %s18_s20 = ssub.s32 %s575_s17, %s620_s19  ;;  %s21_s21 = sadd.s32 1, %s571_s16 }
   0x4   : > { %p19_p0 = scmp.eq.s32.totalorder %s18_s20, 0  ;;  %p28_p1 = scmp.ne.s32.totalorder %s571_s16, %s567_s15 }
   0x5   : > { %p29_p2 = scmp.eq.s32.totalorder %s575_s17, 0  ;;  %p126_p3 = scmp.eq.s32.totalorder %s501_s18, 1 }
   0x6   : > { %s631_s22 = scalar_select %p19_p0, %s571_s16, %s21_s21  }
   0x7   : > { %p633_p4 = por %p29_p2, %p28_p1  ;;  %p637_p5 = por %p126_p3, %p28_p1 }
   0x8   : > { %p504_p6 = scmp.ge.s32.totalorder %s575_s17, 2 }
   0xa   : > { %154 = sbr.rel (%p504_p6) target bundleno = 31 (0x1f), region = 24 }
   0xf   : > { %157 = sbr.rel (!%p633_p4) target bundleno = 23 (0x17), region = 28  ;;  %s159_s25 = sand.u32 (%p633_p4), 1, %s571_s16  }
  0x10   : > { %s506_s26 = sshll.u32 (%p633_p4), %s575_s17, 2  ;;  %s505_s27 = sshll.u32 (%p633_p4), %s159_s25, 4 }
  0x11   : > { %s163_s30 = scalar_lea.vmem (%p633_p4), %s702_s0, %s506_s26  ;;  %s161_s5 = scalar_lea.vmem (%p633_p4), [#allocation2], %s505_s27 }
  0x12   : > { %v180_v0 = vld [vmem:[%s163_s30] sm:$0xf] (%p633_p4)  ;;  %v182_v1 = vld [vmem:[%s163_s30 + $0x8] sm:$0xf] (%p633_p4)  ;;  %v184_v2 = vld [vmem:[%s163_s30 + $0x10] sm:$0xf] (%p633_p4) }
  0x13   : > { %181 = vst [vmem:[%s161_s5] sm:$0xf] (%p633_p4), %v180_v0  ;;  %v186_v3 = vld [vmem:[%s163_s30 + $0x18] sm:$0xf] (%p633_p4) }
  0x14   : > { %183 = vst [vmem:[%s161_s5 + $0x4] sm:$0xf] %v182_v1 }
  0x15   : > { %185 = vst [vmem:[%s161_s5 + $0x8] sm:$0xf] %v184_v2 }
  0x16   : > { %187 = vst [vmem:[%s161_s5 + $0xc] sm:$0xf] %v186_v3 }
  0x17 PF: > { %219 = sbr.rel (!%p633_p4) target bundleno = 31 (0x1f), region = 69  ;;  %s221_s6 = sand.u32 (%p633_p4), 1, %s571_s16  }
  0x18   : > { %s508_s7 = sshll.u32 (%p633_p4), %s575_s17, 3  ;;  %s507_s8 = sshll.u32 (%p633_p4), %s221_s6, 5 }
  0x19   : > { %s225_s11 = scalar_lea.vmem (%p633_p4), %s705_s3, %s508_s7  ;;  %s223_s12 = scalar_lea.vmem (%p633_p4), [#allocation3], %s507_s8 }
  0x1a   : > { %v260_v4 = vld [vmem:[%s225_s11] sm:$0xff] (%p633_p4)  ;;  %v262_v5 = vld [vmem:[%s225_s11 + $0x10] sm:$0xff] (%p633_p4) }
  0x1b   : > { %v264_v6 = vld [vmem:[%s225_s11 + $0x20] sm:$0xff] (%p633_p4)  ;;  %261 = vst [vmem:[%s223_s12] sm:$0xff] (%p633_p4), %v260_v4  ;;  %v266_v7 = vld [vmem:[%s225_s11 + $0x30] sm:$0xff] (%p633_p4) }
  0x1c   : > { %263 = vst [vmem:[%s223_s12 + $0x8] sm:$0xff] %v262_v5 }
  0x1d   : > { %265 = vst [vmem:[%s223_s12 + $0x10] sm:$0xff] %v264_v6 }
  0x1e   : > { %267 = vst [vmem:[%s223_s12 + $0x18] sm:$0xff] %v266_v7 }
  0x1f PF: > { %p509_p7 = scmp.ge.s32.totalorder %s575_s17, 1  ;;  %p272_p8 = scmp.lt.s32.totalorder %s575_s17, 3 }
  0x21   : > { %p273_p9 = pnand %p509_p7, %p272_p8 }
  0x22   : > { %s279_s13 = sand.u32 (!%p273_p9), 1, %s567_s15  }
  0x23   : > { %276 = sbr.rel (%p273_p9) target bundleno = 87 (0x57), region = 107  ;;  %s510_s14 = sshll.u32 (!%p273_p9), %s279_s13, 4 }
  0x24   : > { %s281_s23 = scalar_lea.vmem (!%p273_p9), [#allocation2], %s510_s14  ;;  %s511_s27 = sshll.u32 (!%p273_p9), %s279_s13, 5 }
  0x25   : > { %s665_s15 = scalar_lea.vmem (!%p273_p9), [#allocation3], %s511_s27  ;;  %s668_s28 = scalar_lea.vmem (!%p273_p9), [#allocation4], %s511_s27 }
  0x28   : > { %v551_v8 = vld [vmem:[%s703_s1] ss:$0 sm:$0xff]  ;;  %v525_v15 = vld [vmem:[%s281_s23 + $0x8] sm:$0xff]   ;;  %v577_v21 = vmov 0.0   ;;  %vm368_vm1 = vcmask 261120   ;;  %v362_v40 = vld [vmem:[%s665_s15 + $0x10] sm:$0xff] }
  0x29   : > { %v518_v9 = vld [vmem:[%s281_s23] sm:$0xff]   ;;  %v523_v17 = vunpack.c.l.bf16 %v525_v15  ;;  %v524_v28 = vunpack.c.h.bf16 %v525_v15  ;;  %v361_v31 = vld [vmem:[%s665_s15 + $0x8] sm:$0xff]  ;;  %v363_v47 = vld [vmem:[%s665_s15 + $0x18] sm:$0xff]  ;;  %s514_s29 = sshll.u32 (%p637_p5), %s501_s18, 3 }
  0x2a   : > { %v519_v10 = vunpack.c.l.bf16 %v518_v9  ;;  %v520_v11 = vunpack.c.h.bf16 %v518_v9  ;;  %v552_v12 = vld [vmem:[%s704_s2] ss:$0 sm:$0xff]  ;;  %s381_s6 = scalar_lea.vmem (%p637_p5), %s706_s4, %s514_s29 }
  0x2b   : > { %v360_v20 = vld [vmem:[%s665_s15] sm:$0xff]  ;;  %v328_v24 = vmul.f32 %v551_v8, %v523_v17  ;;  %v329_v34 = vmul.f32 %v551_v8, %v524_v28 }
  0x2c   : > { %v326_v13 = vmul.f32 %v551_v8, %v519_v10  ;;  %v327_v14 = vmul.f32 %v551_v8, %v520_v11 }
  0x2d   : > { %v336_v29 = vadd.f32 %v552_v12, %v328_v24  ;;  %v337_v38 = vadd.f32 %v552_v12, %v329_v34 }
  0x2e   : > { %v334_v16 = vadd.f32 %v552_v12, %v326_v13  ;;  %v335_v18 = vadd.f32 %v552_v12, %v327_v14 }
  0x30   : > { %v338_v19 = vmul.f32 0.5, %v334_v16 }
  0x32   : > { %vm340_vm0 = vcmp.gt.f32.partialorder %v338_v19, 0.5 }
  0x33   : > { %v341_v22 = vsel %vm340_vm0, 1.0, %v577_v21  ;;  %v342_v23 = vsel %vm340_vm0, 0.0, %v338_v19 }
  0x34   : > { %v343_v25 = vsub.f32 %v335_v18, %v342_v23  ;;  %v364_v26 = vadd.f32 %v360_v20, %v341_v22 }
  0x36   : > { %v344_v27 = vmul.f32 0.5, %v343_v25  ;;  %369 = vst.msk [vmem:[%s668_s28] sm:$0xff] %vm368_vm1, %v364_v26 }
  0x38   : > { %v345_v30 = vadd.f32 %v344_v27, %v342_v23 }
  0x3a   : > { %vm346_vm2 = vcmp.gt.f32.partialorder %v345_v30, 0.5 }
  0x3b   : > { %v347_v32 = vsel %vm346_vm2, 1.0, %v577_v21  ;;  %v348_v33 = vsel %vm346_vm2, 0.0, %v345_v30 }
  0x3c   : > { %v349_v35 = vsub.f32 %v336_v29, %v348_v33  ;;  %v365_v36 = vadd.f32 %v361_v31, %v347_v32 }
  0x3d   : > { %v416_v50 = vld [vmem:[%s668_s28] sm:$0xff] (%p637_p5) }
  0x3e   : > { %v350_v37 = vmul.f32 0.5, %v349_v35  ;;  %370 = vst.msk [vmem:[%s668_s28 + $0x8] sm:$0xff] %vm368_vm1, %v365_v36 }
  0x3f   : > { %417 = vst [vmem:[%s381_s6] sm:$0xff] (%p637_p5), %v416_v50 }
  0x40   : > { %v351_v39 = vadd.f32 %v350_v37, %v348_v33 }
  0x42   : > { %vm352_vm3 = vcmp.gt.f32.partialorder %v351_v39, 0.5 }
  0x43   : > { %v353_v41 = vsel %vm352_vm3, 1.0, %v577_v21  ;;  %v354_v42 = vsel %vm352_vm3, 0.0, %v351_v39 }
  0x44   : > { %v355_v43 = vsub.f32 %v337_v38, %v354_v42  ;;  %v366_v44 = vadd.f32 %v362_v40, %v353_v41 }
  0x45   : > { %v418_v51 = vld [vmem:[%s668_s28 + $0x8] sm:$0xff] (%p637_p5) }
  0x46   : > { %371 = vst.msk [vmem:[%s668_s28 + $0x10] sm:$0xff] %vm368_vm1, %v366_v44  ;;  %v356_v45 = vmul.f32 0.5, %v355_v43 }
  0x47   : > { %419 = vst [vmem:[%s381_s6 + $0x10] sm:$0xff] (%p637_p5), %v418_v51 }
  0x48   : > { %v357_v46 = vadd.f32 %v356_v45, %v354_v42 }
  0x4a   : > { %vm358_vm4 = vcmp.gt.f32.partialorder %v357_v46, 0.5  ;;  %379 = sbr.rel (!%p637_p5) target bundleno = 87 (0x57), region = 119 }
  0x4b   : > { %v359_v48 = vsel %vm358_vm4, 1.0, %v577_v21 }
  0x4c   : > { %v367_v49 = vadd.f32 %v363_v47, %v359_v48 }
  0x4d   : > { %v420_v52 = vld [vmem:[%s668_s28 + $0x10] sm:$0xff] (%p637_p5) }
  0x4e   : > { %372 = vst.msk [vmem:[%s668_s28 + $0x18] sm:$0xff] %vm368_vm1, %v367_v49 }
  0x4f   : > { %421 = vst [vmem:[%s381_s6 + $0x20] sm:$0xff] %v420_v52 }
  0x55   : > { %v422_v53 = vld [vmem:[%s668_s28 + $0x18] sm:$0xff] }
  0x56   : > { %423 = vst [vmem:[%s381_s6 + $0x30] sm:$0xff] %v422_v53 }
  0x57 PF: > { %p11_p10 = scmp.ge.s32.totalorder %s620_s19, 4   ;;  %s709_s15 = smov %s571_s16 }
  0x58   : > { %s710_s16 = smov %s631_s22  ;;  %s711_s17 = smov %s620_s19 }
  0x59   :  { %13 = sbr.rel (!%p11_p10) target bundleno = 2 (0x2), region = 196 }

// kernel: spikf_block_forward.13
= control target key start
LH: loop header
LB: loop body
LE: loop exit
PB: predicated region body
PF: predicated region fallthrough
CT: control target
= control target key end

     0   :  { %s598_s15 = smov 0   ;;  %s600_s16 = smov 0   ;;  %s680_s0 = inlined_call_operand.vmem [shape: f32[4,16,32], index: 0, kind: input, shape index: {}]   ;;  %s681_s1 = inlined_call_operand.vmem [shape: bf16[32,128], index: 1, kind: input, shape index: {}]   ;;  %s682_s2 = inlined_call_operand.vmem [shape: f32[1,128], index: 2, kind: input, shape index: {}]   ;;  %s683_s3 = inlined_call_operand.vmem [shape: bf16[4,16,128], index: 3, kind: output, shape index: {0}]   ;;  %s684_s4 = inlined_call_operand.vmem [shape: f32[2,2,128], index: 4, kind: output, shape index: {1}]  }
   0x1   :  { %s602_s17 = smov 0  }
   0x2 LB: > { %s614_s18 = sadd.s32 4294967295, %s571_s17   ;;  %s617_s19 = sadd.s32 1, %s571_s17   ;;  %s571_s17 = sphi %s602_s17, %s688_s17   ;;  %s567_s16 = sphi %s600_s16, %s687_s16   ;;  %s563_s15 = sphi %s598_s15, %s686_s15  }
   0x3   : > { %s19_s20 = ssub.s32 %s571_s17, %s617_s19  ;;  %s22_s21 = sadd.s32 1, %s567_s16 }
   0x4   : > { %p20_p0 = scmp.eq.s32.totalorder %s19_s20, 0  ;;  %p29_p1 = scmp.ne.s32.totalorder %s567_s16, %s563_s15 }
   0x5   : > { %p30_p2 = scmp.eq.s32.totalorder %s571_s17, 0  ;;  %p101_p3 = scmp.eq.s32.totalorder %s614_s18, 1 }
   0x6   : > { %s627_s22 = scalar_select %p20_p0, %s567_s16, %s22_s21  }
   0x7   : > { %p31_p4 = por %p30_p2, %p29_p1  ;;  %p629_p5 = por %p101_p3, %p29_p1 }
   0x8   : > { %p488_p6 = scmp.ge.s32.totalorder %s571_s17, 2 }
   0xa   : > { %155 = sbr.rel (%p488_p6) target bundleno = 23 (0x17), region = 24 }
   0xf   : > { %158 = sbr.rel (!%p31_p4) target bundleno = 23 (0x17), region = 28  ;;  %s160_s24 = sand.u32 (%p31_p4), 1, %s567_s16  }
  0x10   : > { %s490_s25 = sshll.u32 (%p31_p4), %s571_s17, 3  ;;  %s489_s26 = sshll.u32 (%p31_p4), %s160_s24, 5 }
  0x11   : > { %s164_s29 = scalar_lea.vmem (%p31_p4), %s680_s0, %s490_s25  ;;  %s162_s30 = scalar_lea.vmem (%p31_p4), [#allocation2], %s489_s26 }
  0x12   : > { %v199_v0 = vld [vmem:[%s164_s29] sm:$0xff] (%p31_p4)  ;;  %v201_v1 = vld [vmem:[%s164_s29 + $0x10] sm:$0xff] (%p31_p4) }
  0x13   : > { %v203_v2 = vld [vmem:[%s164_s29 + $0x20] sm:$0xff] (%p31_p4)  ;;  %200 = vst [vmem:[%s162_s30] sm:$0xff] (%p31_p4), %v199_v0  ;;  %v205_v3 = vld [vmem:[%s164_s29 + $0x30] sm:$0xff] (%p31_p4) }
  0x14   : > { %202 = vst [vmem:[%s162_s30 + $0x8] sm:$0xff] %v201_v1 }
  0x15   : > { %204 = vst [vmem:[%s162_s30 + $0x10] sm:$0xff] %v203_v2 }
  0x16   : > { %206 = vst [vmem:[%s162_s30 + $0x18] sm:$0xff] %v205_v3 }
  0x17 PF: > { %p491_p7 = scmp.ge.s32.totalorder %s571_s17, 1  ;;  %p211_p8 = scmp.lt.s32.totalorder %s571_s17, 3 }
  0x19   : > { %p212_p9 = pnand %p491_p7, %p211_p8 }
  0x1a   : > { %s218_s7 = sand.u32 (!%p212_p9), 1, %s563_s15   ;;  %p246_p10 = scmp.lt.s32.totalorder (!%p212_p9), %s614_s18, 1 }
  0x1b   : > { %215 = sbr.rel (%p212_p9) target bundleno = 198 (0xc6), region = 66  ;;  %s492_s8 = sshll.u32 (!%p212_p9), %s218_s7, 5 }
  0x1c   : > { %s220_s11 = scalar_lea.vmem (!%p212_p9), [#allocation2], %s492_s8  ;;  %s493_s14 = sshll.u32 (!%p212_p9), %s218_s7, 4 }
  0x1d   : > { %s651_s15 = scalar_lea.vmem (!%p212_p9), [#allocation3], %s493_s14 }
  0x20   : > { %v510_v4 = vld [vmem:[%s681_s1 + $0x8] sm:$0xff]  ;;  %v509_v5 = vld [vmem:[%s681_s1] sm:$0xff]  ;;  %v253_v8 = vld [vmem:[%s220_s11 + $0x10] sm:$0xff]  ;;  %vm277_vm0 = vcmask 261120   ;;  %s247_s17 = scalar_select %p246_p10, %s614_s18, 1  ;;  %vm333_vm1 = vcmask 1040384  }
  0x21   : > { %290 = vmatpush.bf16.msra.mxu0 %v510_v4  ;;  %522 = vmatpush.bf16.msra.mxu1 %v510_v4  ;;  %v251_v6 = vld [vmem:[%s220_s11] sm:$0xff]  ;;  %v252_v7 = vld [vmem:[%s220_s11 + $0x8] sm:$0xff]  ;;  %v254_v9 = vld [vmem:[%s220_s11 + $0x18] sm:$0xff]  ;;  %s506_s26 = sshll.u32 (%p629_p5), %s614_s18, 2 }
  0x22   : > { %v255_v10 = vpack.c.bf16 %v252_v7, %v251_v6  ;;  %v256_v11 = vpack.c.bf16 %v254_v9, %v253_v8  ;;  %v548_v14 = vld [vmem:[%s682_s2] ss:$0 sm:$0xff]  ;;  %s494_s20 = sshll.u32 %s247_s17, 1  ;;  %s348_s29 = scalar_lea.vmem (%p629_p5), %s683_s3, %s506_s26 }
  0x23   : > { %s249_s25 = scalar_lea.vmem %s684_s4, %s494_s20 }
  0x25   : > { %291 = vmatpush.bf16.msra.mxu0 %v509_v5  ;;  %523 = vmatpush.bf16.msra.mxu1 %v509_v5 }
  0x28   : > { %503 = vmatmul.msk.bf16.vlgmr.msra.gmra.mxu0 %vm277_vm0, %v255_v10  ;;  %504 = vmatmul.msk.bf16.vlgmr.msra.gmra.mxu1 %vm277_vm0, %v256_v11 }
  0xa5   : > { %v293_v12 = vpop.f32.mrf.mxu0  ;;  %v298_v13 = vpop.f32.mrf.mxu1 }
  0xa6   : > { %v294_v15 = vadd.f32 %v548_v14, %v293_v12  ;;  %v299_v18 = vadd.f32 %v548_v14, %v298_v13 }
  0xa8   : > { %v320_v21 = vmul.f32 %v294_v15, %v294_v15  ;;  %v322_v26 = vmul.f32 %v299_v18, %v299_v18 }
  0xad   : > { %v295_v16 = vpop.f32.mrf.mxu0  ;;  %v300_v17 = vpop.f32.mrf.mxu1 }
  0xae   : > { %v296_v19 = vadd.f32 %v548_v14, %v295_v16  ;;  %v301_v20 = vadd.f32 %v548_v14, %v300_v17 }
  0xb0   : > { %v514_v22 = vpack.c.bf16 %v296_v19, %v294_v15  ;;  %v311_v23 = vadd.f32 %v296_v19, %v294_v15  ;;  %v321_v24 = vmul.f32 %v296_v19, %v296_v19  ;;  %v519_v25 = vpack.c.bf16 %v301_v20, %v299_v18 }
  0xb1   : > { %v323_v30 = vmul.f32 %v301_v20, %v301_v20 }
  0xb2   : > { %515 = vst [vmem:[%s651_s15] sm:$0xff] %v514_v22   ;;  %v324_v27 = vadd.f32 %v321_v24, %v320_v21  ;;  %v312_v28 = vadd.f32 %v311_v23, %v299_v18 }
  0xb3   : > { %521 = vst [vmem:[%s651_s15 + $0x8] sm:$0xff] %v519_v25  }
  0xb4   : > { %v313_v29 = vadd.f32 %v312_v28, %v301_v20  ;;  %v325_v31 = vadd.f32 %v324_v27, %v322_v26 }
  0xb6   : > { %v314_v32 = vrot.slane %v313_v29, 4  ;;  %v326_v33 = vadd.f32 %v325_v31, %v323_v30 }
  0xb8   : > { %v315_v34 = vadd.f32 %v314_v32, %v313_v29  ;;  %v327_v35 = vrot.slane %v326_v33, 4 }
  0xb9   : > { %v365_v46 = vld [vmem:[%s651_s15] sm:$0xf] (%p629_p5)  ;;  %v367_v47 = vld [vmem:[%s651_s15 + $0x4] sm:$0xf] (%p629_p5) }
  0xba   : > { %v316_v36 = vrot.slane %v315_v34, 2  ;;  %v328_v37 = vadd.f32 %v327_v35, %v326_v33  ;;  %v369_v48 = vld [vmem:[%s651_s15 + $0x8] sm:$0xf] (%p629_p5)  ;;  %366 = vst [vmem:[%s348_s29] sm:$0xf] (%p629_p5), %v365_v46  ;;  %v371_v49 = vld [vmem:[%s651_s15 + $0xc] sm:$0xf] (%p629_p5) }
  0xbb   : > { %368 = vst [vmem:[%s348_s29 + $0x8] sm:$0xf] (%p629_p5), %v367_v47 }
  0xbc   : > { %v317_v38 = vadd.f32 %v316_v36, %v315_v34  ;;  %v329_v39 = vrot.slane %v328_v37, 2  ;;  %370 = vst [vmem:[%s348_s29 + $0x10] sm:$0xf] (%p629_p5), %v369_v48 }
  0xbd   : > { %372 = vst [vmem:[%s348_s29 + $0x18] sm:$0xf] (%p629_p5), %v371_v49 }
  0xbe   : > { %v318_v40 = vrot.slane %v317_v38, 1  ;;  %v330_v41 = vadd.f32 %v329_v39, %v328_v37 }
  0xc0   : > { %v331_v42 = vrot.slane %v330_v41, 1  ;;  %v319_v43 = vadd.f32 %v318_v40, %v317_v38 }
  0xc1   : > { %346 = sbr.rel (!%p629_p5) target bundleno = 198 (0xc6), region = 74 }
  0xc2   : > { %v332_v44 = vadd.f32 %v331_v42, %v330_v41 }
  0xc4   : > { %v334_v45 = vsel %vm333_vm1, %v319_v43, %v332_v44 }
  0xc5   : > { %335 = vst [vmem:[%s249_s25] sm:$0x3] %v334_v45 }
  0xc6 PF: > { %p12_p11 = scmp.ge.s32.totalorder %s617_s19, 4   ;;  %s686_s15 = smov %s567_s16 }
  0xc7   : > { %s687_s16 = smov %s627_s22  ;;  %s688_s17 = smov %s617_s19 }
  0xc8   :  { %14 = sbr.rel (!%p12_p11) target bundleno = 2 (0x2), region = 158 }

// kernel: spikf_block_forward.14
= control target key start
LH: loop header
LB: loop body
LE: loop exit
PB: predicated region body
PF: predicated region fallthrough
CT: control target
= control target key end

     0   :  { %s803_s21 = smov 0   ;;  %s805_s22 = smov 0   ;;  %s931_s0 = inlined_call_operand.vmem [shape: bf16[4,16,128], index: 0, kind: input, shape index: {}]   ;;  %s932_s1 = inlined_call_operand.vmem [shape: f32[1,1,128], index: 1, kind: input, shape index: {}]   ;;  %s933_s2 = inlined_call_operand.vmem [shape: f32[1,1,128], index: 2, kind: input, shape index: {}]   ;;  %s934_s3 = inlined_call_operand.vmem [shape: bf16[128,32], index: 3, kind: input, shape index: {}]   ;;  %s935_s4 = inlined_call_operand.vmem [shape: f32[1,32], index: 4, kind: input, shape index: {}]   ;;  %s936_s5 = inlined_call_operand.vmem [shape: bf16[4,16,32], index: 5, kind: output, shape index: {0}]   ;;  %s937_s6 = inlined_call_operand.vmem [shape: f32[2,2,32], index: 6, kind: output, shape index: {1}]  }
   0x1   :  { %s807_s23 = smov 0  }
   0x2 LB: > { %s819_s24 = sadd.s32 4294967295, %s765_s23   ;;  %s822_s25 = sadd.s32 1, %s765_s23   ;;  %s765_s23 = sphi %s807_s23, %s941_s23   ;;  %s761_s22 = sphi %s805_s22, %s940_s22   ;;  %s757_s21 = sphi %s803_s21, %s939_s21  }
   0x3   : > { %s21_s26 = ssub.s32 %s765_s23, %s822_s25  ;;  %s24_s27 = sadd.s32 1, %s761_s22 }
   0x4   : > { %p22_p0 = scmp.eq.s32.totalorder %s21_s26, 0  ;;  %p31_p1 = scmp.ne.s32.totalorder %s761_s22, %s757_s21 }
   0x5   : > { %p32_p2 = scmp.eq.s32.totalorder %s765_s23, 0  ;;  %p145_p3 = scmp.eq.s32.totalorder %s819_s24, 1 }
   0x6   : > { %s832_s28 = scalar_select %p22_p0, %s761_s22, %s24_s27  }
   0x7   : > { %p33_p4 = por %p32_p2, %p31_p1  ;;  %p834_p5 = por %p145_p3, %p31_p1 }
   0x8   : > { %p643_p6 = scmp.ge.s32.totalorder %s765_s23, 2 }
   0xa   : > { %205 = sbr.rel (%p643_p6) target bundleno = 23 (0x17), region = 32 }
   0xf   : > { %208 = sbr.rel (!%p33_p4) target bundleno = 23 (0x17), region = 36  ;;  %s210_s30 = sand.u32 (%p33_p4), 1, %s761_s22  }
  0x10   : > { %s645_s7 = sshll.u32 (%p33_p4), %s765_s23, 2  ;;  %s644_s8 = sshll.u32 (%p33_p4), %s210_s30, 4 }
  0x11   : > { %s214_s11 = scalar_lea.vmem (%p33_p4), %s931_s0, %s645_s7  ;;  %s212_s12 = scalar_lea.vmem (%p33_p4), [#allocation2], %s644_s8 }
  0x12   : > { %v231_v0 = vld [vmem:[%s214_s11] sm:$0xf] (%p33_p4)  ;;  %v233_v1 = vld [vmem:[%s214_s11 + $0x8] sm:$0xf] (%p33_p4)  ;;  %v235_v2 = vld [vmem:[%s214_s11 + $0x10] sm:$0xf] (%p33_p4) }
  0x13   : > { %232 = vst [vmem:[%s212_s12] sm:$0xf] (%p33_p4), %v231_v0  ;;  %v237_v3 = vld [vmem:[%s214_s11 + $0x18] sm:$0xf] (%p33_p4) }
  0x14   : > { %234 = vst [vmem:[%s212_s12 + $0x4] sm:$0xf] %v233_v1 }
  0x15   : > { %236 = vst [vmem:[%s212_s12 + $0x8] sm:$0xf] %v235_v2 }
  0x16   : > { %238 = vst [vmem:[%s212_s12 + $0xc] sm:$0xf] %v237_v3 }
  0x17 PF: > { %p646_p7 = scmp.ge.s32.totalorder %s765_s23, 1  ;;  %p269_p8 = scmp.lt.s32.totalorder %s765_s23, 3 }
  0x19   : > { %p270_p9 = pnand %p646_p7, %p269_p8 }
  0x1a   : > { %s276_s15 = sand.u32 (!%p270_p9), 1, %s757_s21   ;;  %p308_p10 = scmp.lt.s32.totalorder (!%p270_p9), %s819_s24, 1 }
  0x1b   : > { %273 = sbr.rel (%p270_p9) target bundleno = 223 (0xdf), region = 77  ;;  %s850_s16 = sshll.u32 (!%p270_p9), %s276_s15, 4 }
  0x1c   : > { %s278_s19 = scalar_lea.vmem (!%p270_p9), [#allocation2], %s850_s16  ;;  %s888_s20 = scalar_lea.vmem (!%p270_p9), [#allocation3], %s850_s16 }
  0x20   : > { %v697_v4 = vld [vmem:[%s934_s3 + $0x38] sm:$0xff]  ;;  %v696_v5 = vld [vmem:[%s934_s3 + $0x30] sm:$0xff]  ;;  %v740_v7 = vld [vmem:[%s932_s1] ss:$0 sm:$0xff]  ;;  %v767_v40 = vmov 1.0|1.0  }
  0x21   : > { %428 = vmatpush.bf16.msra.mxu0 %v697_v4  ;;  %707 = vmatpush.bf16.msra.mxu1 %v697_v4  ;;  %v699_v6 = vld [vmem:[%s278_s19] sm:$0xff]   ;;  %v695_v11 = vld [vmem:[%s934_s3 + $0x28] sm:$0xff]  ;;  %v693_v21 = vld [vmem:[%s934_s3 + $0x18] sm:$0xff]  ;;  %vm451_vm6 = vcmask 257024   ;;  %vm456_vm7 = vcmask 261120   ;;  %s309_s16 = scalar_select %p308_p10, %s819_s24, 1 }
  0x22   : > { %v700_v8 = vunpack.c.l.bf16 %v699_v6  ;;  %v701_v9 = vunpack.c.h.bf16 %v699_v6  ;;  %v741_v10 = vld [vmem:[%s933_s2] ss:$0 sm:$0xff]  ;;  %v706_v14 = vld [vmem:[%s278_s19 + $0x8] sm:$0xff]   ;;  %v692_v25 = vld [vmem:[%s934_s3 + $0x10] sm:$0xff]  ;;  %vm487_vm8 = vcmask 1040384   ;;  %vm489_vm9 = vcmask 254976  }
  0x23   : > { %v694_v16 = vld [vmem:[%s934_s3 + $0x20] sm:$0xff]  ;;  %v704_v17 = vunpack.c.l.bf16 %v706_v14  ;;  %v705_v28 = vunpack.c.h.bf16 %v706_v14  ;;  %v691_v30 = vld [vmem:[%s934_s3 + $0x8] sm:$0xff]  ;;  %s649_s23 = sshll.u32 %s309_s16, 1  ;;  %s687_s30 = sshll.u32 (%p834_p5), %s819_s24, 2 }
  0x24   : > { %v324_v12 = vmul.f32 %v740_v7, %v700_v8  ;;  %v325_v13 = vmul.f32 %v740_v7, %v701_v9  ;;  %v690_v34 = vld [vmem:[%s934_s3] sm:$0xff]  ;;  %s311_s21 = scalar_lea.vmem %s937_s6, %s649_s23  ;;  %s503_s9 = scalar_lea.vmem (%p834_p5), %s936_s5, %s687_s30 }
  0x25   : > { %429 = vmatpush.bf16.msra.mxu0 %v696_v5  ;;  %708 = vmatpush.bf16.msra.mxu1 %v696_v5  ;;  %v326_v22 = vmul.f32 %v740_v7, %v704_v17  ;;  %v327_v32 = vmul.f32 %v740_v7, %v705_v28  ;;  %v742_v42 = vld [vmem:[%s935_s4] ss:$0 sm:$0xff] }
  0x26   : > { %v332_v15 = vadd.f32 %v741_v10, %v324_v12  ;;  %v333_v18 = vadd.f32 %v741_v10, %v325_v13 }
  0x27   : > { %v334_v26 = vadd.f32 %v741_v10, %v326_v22  ;;  %v335_v35 = vadd.f32 %v741_v10, %v327_v32 }
  0x28   : > { %v336_v19 = vmul.f32 0.5, %v332_v15 }
  0x29   : > { %430 = vmatpush.bf16.msra.mxu0 %v695_v11  ;;  %709 = vmatpush.bf16.msra.mxu1 %v695_v11 }
  0x2a   : > { %vm338_vm0 = vcmp.gt.f32.partialorder %v336_v19, 0.5 }
  0x2b   : > { %v340_v20 = vsel %vm338_vm0, 0.0, %v336_v19 }
  0x2c   : > { %v341_v23 = vsub.f32 %v333_v18, %v340_v20 }
  0x2d   : > { %431 = vmatpush.bf16.msra.mxu0 %v694_v16  ;;  %710 = vmatpush.bf16.msra.mxu1 %v694_v16 }
  0x2e   : > { %v342_v24 = vmul.f32 0.5, %v341_v23 }
  0x30   : > { %v343_v27 = vadd.f32 %v342_v24, %v340_v20 }
  0x31   : > { %432 = vmatpush.bf16.msra.mxu0 %v693_v21  ;;  %711 = vmatpush.bf16.msra.mxu1 %v693_v21 }
  0x32   : > { %vm344_vm1 = vcmp.gt.f32.partialorder %v343_v27, 0.5 }
  0x33   : > { %v346_v29 = vsel %vm344_vm1, 0.0, %v343_v27  ;;  %vm682_vm3 = vmpackc.low %vm344_vm1, %vm338_vm0 }
  0x34   : > { %v347_v31 = vsub.f32 %v334_v26, %v346_v29 }
  0x35   : > { %433 = vmatpush.bf16.msra.mxu0 %v692_v25  ;;  %712 = vmatpush.bf16.msra.mxu1 %v692_v25 }
  0x36   : > { %v348_v33 = vmul.f32 0.5, %v347_v31 }
  0x38   : > { %v349_v36 = vadd.f32 %v348_v33, %v346_v29 }
  0x39   : > { %434 = vmatpush.bf16.msra.mxu0 %v691_v30  ;;  %713 = vmatpush.bf16.msra.mxu1 %v691_v30 }
  0x3a   : > { %vm350_vm2 = vcmp.gt.f32.partialorder %v349_v36, 0.5 }
  0x3b   : > { %v352_v37 = vsel %vm350_vm2, 0.0, %v349_v36 }
  0x3c   : > { %v353_v38 = vsub.f32 %v335_v35, %v352_v37 }
  0x3d   : > { %435 = vmatpush.bf16.msra.mxu0 %v690_v34  ;;  %714 = vmatpush.bf16.msra.mxu1 %v690_v34 }
  0x3e   : > { %v354_v39 = vmul.f32 0.5, %v353_v38 }
  0x40   : > { %683 = vmatmul.msk.bf16.vlgmr.msra.gmra.mxu0 %vm682_vm3, %v767_v40  ;;  %v355_v41 = vadd.f32 %v354_v39, %v352_v37 }
  0x42   : > { %vm356_vm4 = vcmp.gt.f32.partialorder %v355_v41, 0.5 }
  0x43   : > { %vm684_vm5 = vmpackc.low %vm356_vm4, %vm350_vm2 }
  0x44   : > { %685 = vmatmul.msk.bf16.vlgmr.msra.gmra.mxu1 %vm684_vm5, %v767_v40 }
  0xbd   : > { %v437_v43 = vpop.f32.mrf.mxu0 }
  0xbe   : > { %v438_v44 = vadd.f32 %v742_v42, %v437_v43 }
  0xc0   : > { %v447_v45 = vpack.c.bf16 %v438_v44, %v438_v44  ;;  %v470_v50 = vmul.f32 %v438_v44, %v438_v44  ;;  %v457_v52 = vsel %vm456_vm7, %v438_v44, 0.0 }
  0xc1   : > { %v442_v46 = vpop.f32.mrf.mxu1 }
  0xc2   : > { %452 = vst.msk [vmem:[%s888_s20] sm:$0xf] %vm451_vm6, %v447_v45  ;;  %v443_v47 = vadd.f32 %v742_v42, %v442_v46  ;;  %v474_v58 = vsel %vm456_vm7, %v470_v50, 0.0 }
  0xc4   : > { %v449_v48 = vpack.c.bf16 %v443_v47, %v443_v47  ;;  %v472_v53 = vmul.f32 %v443_v47, %v443_v47  ;;  %v460_v59 = vsel %vm456_vm7, %v443_v47, 0.0 }
  0xc5   : > { %v439_v49 = vpop.f32.mrf.mxu0 }
  0xc6   : > { %v440_v51 = vadd.f32 %v742_v42, %v439_v49  ;;  %454 = vst.msk [vmem:[%s888_s20 + $0x8] sm:$0xf] %vm451_vm6, %v449_v48  ;;  %v477_v1 = vsel %vm456_vm7, %v472_v53, 0.0 }
  0xc8   : > { %v448_v54 = vpack.c.bf16 %v440_v51, %v440_v51  ;;  %v458_v55 = vsel %vm456_vm7, %v440_v51, 0.0  ;;  %v471_v56 = vmul.f32 %v440_v51, %v440_v51 }
  0xc9   : > { %v459_v57 = vadd.f32 %v458_v55, %v457_v52  ;;  %v444_v61 = vpop.f32.mrf.mxu1  ;;  %v520_v22 = vld [vmem:[%s888_s20] sm:$0xf] (%p834_p5) }
  0xca   : > { %453 = vst.msk [vmem:[%s888_s20 + $0x4] sm:$0xf] %vm451_vm6, %v448_v54  ;;  %v475_v60 = vsel %vm456_vm7, %v471_v56, 0.0  ;;  %v445_v63 = vadd.f32 %v742_v42, %v444_v61 }
  0xcb   : > { %v476_v62 = vadd.f32 %v475_v60, %v474_v58  ;;  %v461_v0 = vadd.f32 %v460_v59, %v459_v57  ;;  %521 = vst [vmem:[%s503_s9] sm:$0xf] (%p834_p5), %v520_v22 }
  0xcc   : > { %v450_v2 = vpack.c.bf16 %v445_v63, %v445_v63  ;;  %v462_v3 = vsel %vm456_vm7, %v445_v63, 0.0  ;;  %v473_v4 = vmul.f32 %v445_v63, %v445_v63 }
  0xcd   : > { %v478_v5 = vadd.f32 %v477_v1, %v476_v62  ;;  %v463_v6 = vadd.f32 %v462_v3, %v461_v0  ;;  %v524_v24 = vld [vmem:[%s888_s20 + $0x8] sm:$0xf] (%p834_p5) }
  0xce   : > { %455 = vst.msk [vmem:[%s888_s20 + $0xc] sm:$0xf] %vm451_vm6, %v450_v2  ;;  %v479_v7 = vsel %vm456_vm7, %v473_v4, 0.0 }
  0xcf   : > { %v464_v8 = vrot.slane %v463_v6, 4  ;;  %v480_v9 = vadd.f32 %v479_v7, %v478_v5  ;;  %525 = vst [vmem:[%s503_s9 + $0x10] sm:$0xf] (%p834_p5), %v524_v24 }
  0xd1   : > { %v465_v10 = vadd.f32 %v464_v8, %v463_v6  ;;  %v481_v11 = vrot.slane %v480_v9, 4  ;;  %v522_v23 = vld [vmem:[%s888_s20 + $0x4] sm:$0xf] (%p834_p5) }
  0xd2   : > { %523 = vst [vmem:[%s503_s9 + $0x8] sm:$0xf] (%p834_p5), %v522_v23 }
  0xd3   : > { %v466_v12 = vrot.slane %v465_v10, 2  ;;  %v482_v13 = vadd.f32 %v481_v11, %v480_v9 }
  0xd5   : > { %v467_v14 = vadd.f32 %v466_v12, %v465_v10  ;;  %v483_v15 = vrot.slane %v482_v13, 2  ;;  %v526_v25 = vld [vmem:[%s888_s20 + $0xc] sm:$0xf] (%p834_p5) }
  0xd6   : > { %527 = vst [vmem:[%s503_s9 + $0x18] sm:$0xf] (%p834_p5), %v526_v25 }
  0xd7   : > { %v468_v16 = vrot.slane %v467_v14, 1  ;;  %v484_v17 = vadd.f32 %v483_v15, %v482_v13 }
  0xd9   : > { %v485_v18 = vrot.slane %v484_v17, 1  ;;  %v469_v19 = vadd.f32 %v468_v16, %v467_v14 }
  0xda   : > { %501 = sbr.rel (!%p834_p5) target bundleno = 223 (0xdf), region = 85 }
  0xdb   : > { %v486_v20 = vadd.f32 %v485_v18, %v484_v17 }
  0xdd   : > { %v488_v21 = vsel %vm487_vm8, %v469_v19, %v486_v20 }
  0xde   : > { %490 = vst.msk [vmem:[%s311_s21] sm:$0x3] %vm489_vm9, %v488_v21 }
  0xdf PF: > { %p14_p11 = scmp.ge.s32.totalorder %s822_s25, 4   ;;  %s939_s21 = smov %s761_s22 }
  0xe0   : > { %s940_s22 = smov %s832_s28  ;;  %s941_s23 = smov %s822_s25 }
  0xe1   :  { %16 = sbr.rel (!%p14_p11) target bundleno = 2 (0x2), region = 169 }

// kernel: spikf_block_forward.15
= control target key start
LH: loop header
LB: loop body
LE: loop exit
PB: predicated region body
PF: predicated region fallthrough
CT: control target
= control target key end

     0   :  { %9 = vsyncpa [#allocation5], 0  ;;  %s774_s0 = inlined_call_operand.vmem [shape: bf16[4,16,32], index: 0, kind: input, shape index: {}]   ;;  %s775_s1 = inlined_call_operand.vmem [shape: f32[1,1,32], index: 1, kind: input, shape index: {}]   ;;  %s776_s2 = inlined_call_operand.vmem [shape: f32[1,1,32], index: 2, kind: input, shape index: {}]   ;;  %s777_s3 = inlined_call_operand.vmem [shape: f32[4,16,32], index: 3, kind: input, shape index: {}]   ;;  %s778_s4 = inlined_call_operand.hbm [shape: f32[4,16,32], index: 4, kind: output, shape index: {}]  }
   0x1   :  { %11 = vsyncpa [#allocation5 + $0x1], 0  ;;  %s640_s15 = smov 0   ;;  %s642_s16 = smov 0  }
   0x2   :  { %s644_s17 = smov 0   ;;  %s646_s18 = smov 0  }
   0x3 LB: > { %s477_s19 = sadd.s32 4294967295, %s609_s18   ;;  %s478_s20 = sadd.s32 4294967294, %s609_s18   ;;  %s609_s18 = sphi %s646_s18, %s785_s18   ;;  %s605_s17 = sphi %s644_s17, %s784_s17   ;;  %s601_s16 = sphi %s642_s16, %s783_s16   ;;  %s597_s15 = sphi %s640_s15, %s782_s15  }
   0x4   : > { %s663_s21 = sadd.s32 1, %s609_s18   ;;  %s24_s22 = sadd.s32 1, %s605_s17 }
   0x5   : > { %s21_s23 = ssub.s32 %s609_s18, %s663_s21  ;;  %p31_p0 = scmp.ne.s32.totalorder %s605_s17, %s601_s16 }
   0x6   : > { %p22_p1 = scmp.eq.s32.totalorder %s21_s23, 0  ;;  %p32_p2 = scmp.eq.s32.totalorder %s609_s18, 0 }
   0x7   : > { %p129_p3 = scmp.eq.s32.totalorder %s477_s19, 1  ;;  %p134_p4 = scmp.ne.s32.totalorder %s601_s16, %s597_s15 }
   0x8   : > { %s676_s24 = scalar_select %p22_p1, %s605_s17, %s24_s22  }
   0x9   : > { %p678_p5 = por %p32_p2, %p31_p0  ;;  %p682_p6 = por %p129_p3, %p31_p0 }
   0xa   : > { %p135_p7 = scmp.eq.s32.totalorder %s478_s20, 1  ;;  %p480_p9 = scmp.ge.s32.totalorder %s609_s18, 2 }
   0xc   : > { %p686_p8 = por %p135_p7, %p134_p4  ;;  %157 = sbr.rel (%p480_p9) target bundleno = 33 (0x21), region = 24 }
  0x11   : > { %160 = sbr.rel (!%p678_p5) target bundleno = 25 (0x19), region = 28  ;;  %s162_s28 = sand.u32 (%p678_p5), 1, %s605_s17  }
  0x12   : > { %s482_s29 = sshll.u32 (%p678_p5), %s609_s18, 2  ;;  %s481_s30 = sshll.u32 (%p678_p5), %s162_s28, 4 }
  0x13   : > { %s166_s7 = scalar_lea.vmem (%p678_p5), %s774_s0, %s482_s29  ;;  %s164_s8 = scalar_lea.vmem (%p678_p5), [#allocation2], %s481_s30 }
  0x14   : > { %v183_v0 = vld [vmem:[%s166_s7] sm:$0xf] (%p678_p5)  ;;  %v185_v1 = vld [vmem:[%s166_s7 + $0x8] sm:$0xf] (%p678_p5)  ;;  %v187_v2 = vld [vmem:[%s166_s7 + $0x10] sm:$0xf] (%p678_p5) }
  0x15   : > { %184 = vst [vmem:[%s164_s8] sm:$0xf] (%p678_p5), %v183_v0  ;;  %v189_v3 = vld [vmem:[%s166_s7 + $0x18] sm:$0xf] (%p678_p5) }
  0x16   : > { %186 = vst [vmem:[%s164_s8 + $0x4] sm:$0xf] %v185_v1 }
  0x17   : > { %188 = vst [vmem:[%s164_s8 + $0x8] sm:$0xf] %v187_v2 }
  0x18   : > { %190 = vst [vmem:[%s164_s8 + $0xc] sm:$0xf] %v189_v3 }
  0x19 PF: > { %222 = sbr.rel (!%p678_p5) target bundleno = 33 (0x21), region = 69  ;;  %s224_s9 = sand.u32 (%p678_p5), 1, %s605_s17  }
  0x1a   : > { %s484_s10 = sshll.u32 (%p678_p5), %s609_s18, 3  ;;  %s483_s11 = sshll.u32 (%p678_p5), %s224_s9, 5 }
  0x1b   : > { %s228_s14 = scalar_lea.vmem (%p678_p5), %s777_s3, %s484_s10  ;;  %s226_s20 = scalar_lea.vmem (%p678_p5), [#allocation3], %s483_s11 }
  0x1c   : > { %v263_v4 = vld [vmem:[%s228_s14] sm:$0xff] (%p678_p5)  ;;  %v265_v5 = vld [vmem:[%s228_s14 + $0x10] sm:$0xff] (%p678_p5) }
  0x1d   : > { %v267_v6 = vld [vmem:[%s228_s14 + $0x20] sm:$0xff] (%p678_p5)  ;;  %264 = vst [vmem:[%s226_s20] sm:$0xff] (%p678_p5), %v263_v4  ;;  %v269_v7 = vld [vmem:[%s228_s14 + $0x30] sm:$0xff] (%p678_p5) }
  0x1e   : > { %266 = vst [vmem:[%s226_s20 + $0x8] sm:$0xff] %v265_v5 }
  0x1f   : > { %268 = vst [vmem:[%s226_s20 + $0x10] sm:$0xff] %v267_v6 }
  0x20   : > { %270 = vst [vmem:[%s226_s20 + $0x18] sm:$0xff] %v269_v7 }
  0x21 PF: > { %p485_p10 = scmp.ge.s32.totalorder %s609_s18, 1  ;;  %p275_p11 = scmp.lt.s32.totalorder %s609_s18, 3 }
  0x23   : > { %p276_p12 = pnand %p485_p10, %p275_p11 }
  0x24   : > { %s710_s22 = sand.u32 (!%p276_p12), 1, %s601_s16   ;;  %s490_s9 = sshll.u32 (!%p276_p12), %s477_s19, 3 }
  0x25   : > { %279 = sbr.rel (%p276_p12) target bundleno = 85 (0x55), region = 107  ;;  %s486_s23 = sshll.u32 (!%p276_p12), %s710_s22, 4 }
  0x26   : > { %s284_s29 = scalar_lea.vmem (!%p276_p12), [#allocation2], %s486_s23  ;;  %s487_s6 = sshll.u32 (!%p276_p12), %s710_s22, 5 }
  0x27   : > { %s720_s7 = scalar_lea.vmem (!%p276_p12), [#allocation3], %s487_s6  ;;  %s723_s8 = scalar_lea.vmem (!%p276_p12), [#allocation4], %s487_s6 }
  0x28   : > { %s388_s12 = scalar_lea.hbm (!%p276_p12), %s778_s4, %s490_s9  ;;  %s389_s13 = sshll.u32 (!%p276_p12), %s723_s8, 4  ;;  %s390_s13 = int_to_ptr.vmem [resolvable:$true] %s389_s13 }
  0x29   : > { %s739_s14 = sshll.u32 (!%p276_p12), %s388_s12, 4  ;;  %s378_s19 = scalar_lea.sflag (!%p276_p12), [#allocation5], %s710_s22  ;;  %s392_s14 = int_to_ptr.hbm [resolvable:$true] %s739_s14 }
  0x2a   : > { %v545_v8 = vld [vmem:[%s775_s1] ss:$0 sm:$0xff]  ;;  %v501_v15 = vld [vmem:[%s284_s29 + $0x8] sm:$0xff]   ;;  %v611_v21 = vmov 0.0   ;;  %vm372_vm1 = vcmask 261120   ;;  %v366_v40 = vld [vmem:[%s720_s7 + $0x10] sm:$0xff] }
  0x2b   : > { %v494_v9 = vld [vmem:[%s284_s29] sm:$0xff]   ;;  %v499_v17 = vunpack.c.l.bf16 %v501_v15  ;;  %v500_v28 = vunpack.c.h.bf16 %v501_v15  ;;  %v365_v31 = vld [vmem:[%s720_s7 + $0x8] sm:$0xff]  ;;  %v367_v47 = vld [vmem:[%s720_s7 + $0x18] sm:$0xff]  ;;  %s561_s20 = sshra.s32 %s392_s14, 4  ;;  %s567_s29 = scalar_lea.hbm %s778_s4, 64  ;;  %s562_s20 = int_to_ptr.hbm [resolvable:$true] %s561_s20 }
  0x2c   : > { %v495_v10 = vunpack.c.l.bf16 %v494_v9  ;;  %v496_v11 = vunpack.c.h.bf16 %v494_v9  ;;  %v546_v12 = vld [vmem:[%s776_s2] ss:$0 sm:$0xff]  ;;  %s563_s23 = scalar_lea.hbm %s562_s20, 32  ;;  %p568_p2 = scmp.lt.s32.totalorder %s562_s20, %s778_s4 }
  0x2d   : > { %v364_v20 = vld [vmem:[%s720_s7] sm:$0xff]  ;;  %v332_v26 = vmul.f32 %v545_v8, %v499_v17  ;;  %v333_v36 = vmul.f32 %v545_v8, %v500_v28  ;;  %p564_p13 = scmp.ne.s32.totalorder %s562_s20, %s563_s23  ;;  %p569_p3 = scmp.lt.s32.totalorder %s567_s29, %s563_s23 }
  0x2e   : > { %v330_v13 = vmul.f32 %v545_v8, %v495_v10  ;;  %v331_v14 = vmul.f32 %v545_v8, %v496_v11 }
  0x2f   : > { %v340_v29 = vadd.f32 %v546_v12, %v332_v26  ;;  %v341_v38 = vadd.f32 %v546_v12, %v333_v36  ;;  %p565_p0 = pnand %p564_p13, %p682_p6  ;;  %p570_p4 = por %p569_p3, %p568_p2 }
  0x30   : > { %v338_v16 = vadd.f32 %v546_v12, %v330_v13  ;;  %v339_v18 = vadd.f32 %v546_v12, %v331_v14 }
  0x31   : > { %p566_p1 = pneg %p565_p0 }
  0x32   : > { %v342_v19 = vmul.f32 0.5, %v338_v16 }
  0x33   : > { %p571_p5 = pnand %p570_p4, %p566_p1 }
  0x34   : > { %vm344_vm0 = vcmp.gt.f32.partialorder %v342_v19, 0.5 }
  0x35   : > { %v345_v22 = vsel %vm344_vm0, 1.0, %v611_v21  ;;  %v346_v23 = vsel %vm344_vm0, 0.0, %v342_v19 }
  0x36   : > { %v347_v24 = vsub.f32 %v339_v18, %v346_v23  ;;  %v368_v25 = vadd.f32 %v364_v20, %v345_v22 }
  0x38   : > { %v348_v27 = vmul.f32 0.5, %v347_v24  ;;  %373 = vst.msk [vmem:[%s723_s8] sm:$0xff] %vm372_vm1, %v368_v25 }
  0x3a   : > { %v349_v30 = vadd.f32 %v348_v27, %v346_v23 }
  0x3c   : > { %vm350_vm2 = vcmp.gt.f32.partialorder %v349_v30, 0.5 }
  0x3d   : > { %v351_v32 = vsel %vm350_vm2, 1.0, %v611_v21  ;;  %v352_v33 = vsel %vm350_vm2, 0.0, %v349_v30 }
  0x3e   : > { %v353_v34 = vsub.f32 %v340_v29, %v352_v33  ;;  %v369_v35 = vadd.f32 %v365_v31, %v351_v32 }
  0x40   : > { %v354_v37 = vmul.f32 0.5, %v353_v34  ;;  %374 = vst.msk [vmem:[%s723_s8 + $0x8] sm:$0xff] %vm372_vm1, %v369_v35 }
  0x42   : > { %v355_v39 = vadd.f32 %v354_v37, %v352_v33 }
  0x44   : > { %vm356_vm3 = vcmp.gt.f32.partialorder %v355_v39, 0.5 }
  0x45   : > { %v357_v41 = vsel %vm356_vm3, 1.0, %v611_v21  ;;  %v358_v42 = vsel %vm356_vm3, 0.0, %v355_v39 }
  0x46   : > { %v359_v43 = vsub.f32 %v341_v38, %v358_v42  ;;  %v370_v44 = vadd.f32 %v366_v40, %v357_v41 }
  0x48   : > { %375 = vst.msk [vmem:[%s723_s8 + $0x10] sm:$0xff] %vm372_vm1, %v370_v44  ;;  %v360_v45 = vmul.f32 0.5, %v359_v43 }
  0x4a   : > { %v361_v46 = vadd.f32 %v360_v45, %v358_v42 }
  0x4c   : > { %vm362_vm4 = vcmp.gt.f32.partialorder %v361_v46, 0.5 }
  0x4d   : > { %v363_v48 = vsel %vm362_vm4, 1.0, %v611_v21 }
  0x4e   : > { %v371_v49 = vadd.f32 %v367_v47, %v363_v48 }
  0x50   : > { %376 = vst.msk [vmem:[%s723_s8 + $0x18] sm:$0xff] %vm372_vm1, %v371_v49 }
  0x51   : > { %574 = shalt.err (!%p571_p5)
}
  0x52   : > { %s612_s22 = smov 128   ;;  %s613_s6 = smov 256  }
  0x53   : > { %s614_s7 = smov 8  }
  0x54   : > { %502 = dma.vmem_to_hbm [thread:$0]  (%p682_p6), %s390_s13, 512, %s392_s14, %s378_s19, %s612_s22, %s613_s6, %s614_s7  }
  0x55 PF: > { %s406_s8 = sand.u32 1, %s597_s15   ;;  %p505_p7 = pnand %p480_p9, %p686_p8 }
  0x56   : > { %s407_s9 = scalar_lea.sflag [#allocation5], %s406_s8 }
  0x57   : > { %p506_p10 = pneg %p505_p7 }
  0x59   : > { %592 = dma.done.wait (%p506_p10), %s407_s9, 512  }
  0x5a   : > { %594 = vsyncadd (%p506_p10), %s407_s9, 4294966784  ;;  %p14_p11 = scmp.ge.s32.totalorder %s663_s21, 4   ;;  %s782_s15 = smov %s601_s16 }
  0x5b   : > { %s783_s16 = smov %s605_s17  ;;  %s784_s17 = smov %s676_s24 }
  0x5c   : > { %s785_s18 = smov %s663_s21  ;;  %16 = sbr.rel (!%p14_p11) target bundleno = 3 (0x3), region = 163 }
  0x61   :  { %413 = vsyncpa [#allocation5], 1 }
  0x62   :  { %415 = vsyncpa [#allocation5 + $0x1], 1 }

</bundles_post_ra>
